<compile_context>
chip_gen: v7x
topology: tpu7x:2x2x1
jax: 0.10.0
libtpu: 0.0.40
codegen_flags: <defaults>
</compile_context>

<pallas_src>
import jax
import jax.numpy as jnp
import numpy as np
from jax import lax
from jax.experimental import pallas as pl
from jax.experimental.pallas import tpu as pltpu

LANES = 128      # lane width: every in-kernel "slot" is one 128-lane column
K = 5            # conv kernel size
NEG_INF = -1e30  # padded-class logit bias (keeps in-kernel log_softmax exact)


# ------------------------------ fused kernel ------------------------------- #

def _fused_kernel(x_ref, t1e_ref, t1o_ref, b1_ref, t2e_ref, t2o_ref, b2_ref,
                  tf1_ref, bf1_ref, wf2_ref, bf2_ref,
                  o_ref, lhs1_ref, lhs2_ref, lhs3_ref):
    f32 = jnp.float32
    bf16 = jnp.bfloat16
    tb = o_ref.shape[0]
    cin = x_ref.shape[0] // 28

    # ---- conv1 + 2x2 maxpool + ReLU -------------------------------------- #
    # H-unfold the raw image into lane-aligned 128-wide slots (one per (c,di)
    # tap), then two 640-deep GEMMs (even / odd pooled output column) cover the
    # whole 25-tap contraction for all 24 output rows at once.
    for c in range(cin):
        for di in range(K):
            s = c * K + di
            lhs1_ref[:, s * LANES:(s + 1) * LANES] = (
                x_ref[c * 28 + di: c * 28 + di + 24, :, :].reshape(24 * tb, LANES))
    lhs1 = lhs1_ref[...]
    c1e = jnp.dot(lhs1, t1e_ref[...], preferred_element_type=f32)
    c1o = jnp.dot(lhs1, t1o_ref[...], preferred_element_type=f32)
    c1 = jnp.maximum(c1e, c1o).reshape(24, tb, LANES)      # W-pool (even/odd cols)
    c1 = jnp.max(c1.reshape(12, 2, tb, LANES), axis=1)     # H-pool
    h1 = jnp.maximum(c1 + b1_ref[...], 0.0).astype(bf16)   # bias + ReLU, (12,tb,128)
    # h1 lanes: n*12 + j1  (n = conv1 out channel, j1 = pooled column)

    # ---- conv2 + 2x2 maxpool + ReLU --------------------------------------- #
    # Same trick: the 25*10-tap contraction is folded into 640 lanes, two GEMMs.
    for di in range(K):
        lhs2_ref[:, di * LANES:(di + 1) * LANES] = (
            h1[di:di + 8].reshape(8 * tb, LANES))
    lhs2 = lhs2_ref[...]
    c2e = jnp.dot(lhs2, t2e_ref[...], preferred_element_type=f32)
    c2o = jnp.dot(lhs2, t2o_ref[...], preferred_element_type=f32)
    c2 = jnp.maximum(c2e, c2o).reshape(8, tb, LANES)        # W-pool
    c2 = jnp.max(c2.reshape(4, 2, tb, LANES), axis=1)       # H-pool
    # TODO(synk): nn.Dropout2d / F.dropout are identity in eval mode; train-mode
    # masking is not implemented.
    h2 = jnp.maximum(c2 + b2_ref[...], 0.0).astype(bf16)    # (4, tb, 128)
    # h2 lanes: m*4 + j2  (m = conv2 out channel, j2 = pooled column)

    # ---- fc1 (single 512-deep GEMM) -> fc2 -> log_softmax ------------------ #
    for i2 in range(4):
        lhs3_ref[:, i2 * LANES:(i2 + 1) * LANES] = h2[i2]
    f1 = jnp.dot(lhs3_ref[...], tf1_ref[...], preferred_element_type=f32) + bf1_ref[...]
    f1 = jnp.maximum(f1, 0.0).astype(bf16)
    logits = jnp.dot(f1, wf2_ref[...], preferred_element_type=f32) + bf2_ref[...]
    mx = jnp.max(logits, axis=-1, keepdims=True)
    s = logits - mx
    o_ref[...] = s - jnp.log(jnp.sum(jnp.exp(s), axis=-1, keepdims=True))


# ------------------------------ host-side prep ----------------------------- #

def _pick_tb(batch):
    if batch >= 64:
        return 64
    if batch >= 32:
        return 32
    return 16


def _scatter2d(shape, rows, cols, vals):
    """Dense matrix from (static numpy index arrays, traced values)."""
    return jnp.zeros(shape, jnp.float32).at[rows, cols].set(vals)


def _prepare_params(params):
    w1, b1, w2, b2, wf1, bf1, wf2, bf2 = [jnp.asarray(p, jnp.float32) for p in params]
    cout1, cin = w1.shape[0], w1.shape[1]
    cout2 = w2.shape[0]
    nf1 = wf1.shape[0]
    nc = wf2.shape[0]
    assert cout1 * 12 <= LANES and cout2 * 4 <= LANES
    assert nf1 <= LANES and nc <= LANES
    assert wf1.shape[1] == cout2 * 16, "fc1 expects 20*4*4 inputs (28x28 geometry)"
    bf = jnp.bfloat16

    # conv1: banded (Toeplitz-over-W) weight, even/odd pooled-output columns.
    # lhs lane = (c*K + di)*128 + j (image column), output lane = n*12 + j1.
    n, c, di, dj, j1 = [a.ravel() for a in np.meshgrid(
        np.arange(cout1), np.arange(cin), np.arange(K), np.arange(K),
        np.arange(12), indexing="ij")]
    w1v = w1[n, c, di, dj]
    t1 = []
    for p in range(2):                       # p=0 even pooled col, p=1 odd
        rows = (c * K + di) * LANES + 2 * j1 + p + dj
        cols = n * 12 + j1
        t1.append(_scatter2d((cin * K * LANES, LANES), rows, cols, w1v).astype(bf))
    b1v = jnp.zeros((1, LANES), jnp.float32).at[0, :cout1 * 12].set(jnp.repeat(b1, 12))

    # conv2: lhs lane = di*128 + n*12 + (jo2+dj); output lane = m*4 + j2.
    m, n, di, dj, j2 = [a.ravel() for a in np.meshgrid(
        np.arange(cout2), np.arange(cout1), np.arange(K), np.arange(K),
        np.arange(4), indexing="ij")]
    w2v = w2[m, n, di, dj]
    t2 = []
    for p in range(2):
        rows = di * LANES + n * 12 + 2 * j2 + p + dj
        cols = m * 4 + j2
        t2.append(_scatter2d((K * LANES, LANES), rows, cols, w2v).astype(bf))
    b2v = jnp.zeros((1, LANES), jnp.float32).at[0, :cout2 * 4].set(jnp.repeat(b2, 4))

    # fc1: reorder PyTorch's (c, h, w) flatten to our (h-row, m*4 + j2) lanes.
    f, m, i2, j2 = [a.ravel() for a in np.meshgrid(
        np.arange(nf1), np.arange(cout2), np.arange(4), np.arange(4), indexing="ij")]
    rows = i2 * LANES + m * 4 + j2
    tf1 = _scatter2d((4 * LANES, LANES), rows, f,
                     wf1[f, m * 16 + i2 * 4 + j2]).astype(bf)
    bf1v = jnp.zeros((1, LANES), jnp.float32).at[0, :nf1].set(bf1)

    # fc2: padded class logits get a -inf-ish bias so log_softmax stays exact.
    wf2p = jnp.zeros((LANES, LANES), jnp.float32).at[:nf1, :nc].set(wf2.T).astype(bf)
    bf2v = jnp.full((1, LANES), NEG_INF, jnp.float32).at[0, :nc].set(bf2)

    return (t1[0], t1[1], b1v, t2[0], t2[1], b2v, tf1, bf1v, wf2p, bf2v)


def _prepare_input(x, tb):
    """x: (B, cin, 28, 28) NCHW -> (cin*28, B_pad, 128) bf16 (W zero-padded)."""
    B, cin, H, W = x.shape
    assert H == 28 and W == 28, "fc1(320) forces MNIST 28x28 geometry"
    bp = ((B + tb - 1) // tb) * tb
    xt = jnp.transpose(x, (1, 2, 0, 3)).reshape(cin * 28, B, 28)
    xt = jnp.pad(xt, ((0, 0), (0, bp - B), (0, LANES - 28)))
    return xt.astype(jnp.bfloat16), bp


def cnn_mnist_forward(x, params):
    """x: (B, num_channels, 28, 28) NCHW float32 (same as the PyTorch module)."""
    x = jnp.asarray(x, jnp.float32)
    B, cin = x.shape[0], x.shape[1]
    assert cin == params[0].shape[1]
    nc = params[6].shape[0]

    tb = _pick_tb(B)
    xp, bp = _prepare_input(x, tb)
    (t1e, t1o, b1v, t2e, t2o, b2v, tf1, bf1v, wf2p, bf2v) = _prepare_params(params)

    c1k = cin * K * LANES
    grid_n = bp // tb

    # True (padded) MXU flops and actual HBM bytes (bf16 weights/activations).
    flops_tile = (2 * 2 * (24 * tb) * c1k * LANES          # conv1 (even+odd)
                  + 2 * 2 * (8 * tb) * (K * LANES) * LANES  # conv2 (even+odd)
                  + 2 * tb * (4 * LANES) * LANES            # fc1
                  + 2 * tb * LANES * LANES)                 # fc2
    weight_bytes = 2 * (t1e.size + t1o.size + t2e.size + t2o.size
                        + tf1.size + wf2p.size)
    bias_bytes = 4 * (b1v.size + b2v.size + bf1v.size + bf2v.size)
    bytes_accessed = xp.size * 2 + weight_bytes + bias_bytes + bp * LANES * 4

    out = pl.pallas_call(
        _fused_kernel,
        out_shape=jax.ShapeDtypeStruct((bp, LANES), jnp.float32),
        grid=(grid_n,),
        in_specs=[
            pl.BlockSpec((cin * 28, tb, LANES), lambda ib: (0, ib, 0)),   # image
            pl.BlockSpec((c1k, LANES), lambda ib: (0, 0)),                # t1 even
            pl.BlockSpec((c1k, LANES), lambda ib: (0, 0)),                # t1 odd
            pl.BlockSpec((1, LANES), lambda ib: (0, 0)),                  # b1
            pl.BlockSpec((K * LANES, LANES), lambda ib: (0, 0)),          # t2 even
            pl.BlockSpec((K * LANES, LANES), lambda ib: (0, 0)),          # t2 odd
            pl.BlockSpec((1, LANES), lambda ib: (0, 0)),                  # b2
            pl.BlockSpec((4 * LANES, LANES), lambda ib: (0, 0)),          # fc1
            pl.BlockSpec((1, LANES), lambda ib: (0, 0)),                  # bf1
            pl.BlockSpec((LANES, LANES), lambda ib: (0, 0)),              # fc2
            pl.BlockSpec((1, LANES), lambda ib: (0, 0)),                  # bf2
        ],
        out_specs=pl.BlockSpec((tb, LANES), lambda ib: (ib, 0)),
        scratch_shapes=[
            pltpu.VMEM((24 * tb, c1k), jnp.bfloat16),       # conv1 unfolded lhs
            pltpu.VMEM((8 * tb, K * LANES), jnp.bfloat16),  # conv2 unfolded lhs
            pltpu.VMEM((tb, 4 * LANES), jnp.bfloat16),      # fc1 staging
        ],
        compiler_params=pltpu.CompilerParams(
            dimension_semantics=("parallel",),
            vmem_limit_bytes=32 * 1024 * 1024),
        cost_estimate=pl.CostEstimate(
            flops=int(grid_n * flops_tile),
            transcendentals=int(bp * LANES),
            bytes_accessed=int(bytes_accessed)),
    )(xp, t1e, t1o, b1v, t2e, t2o, b2v, tf1, bf1v, wf2p, bf2v)

    return out[:B, :nc]


# ------------------------------ reference / init --------------------------- #

def init_params(key, num_channels=1, num_classes=10):
    keys = jax.random.split(key, 8)

    def u(k, shape, fan_in):
        bound = 1.0 / jnp.sqrt(jnp.float32(fan_in))
        return jax.random.uniform(k, shape, jnp.float32, -bound, bound)

    w1 = u(keys[0], (10, num_channels, 5, 5), num_channels * 25)
    b1 = u(keys[1], (10,), num_channels * 25)
    w2 = u(keys[2], (20, 10, 5, 5), 10 * 25)
    b2 = u(keys[3], (20,), 10 * 25)
    wf1 = u(keys[4], (50, 320), 320)
    bf1 = u(keys[5], (50,), 320)
    wf2 = u(keys[6], (num_classes, 50), 50)
    bf2 = u(keys[7], (num_classes,), 50)
    return (w1, b1, w2, b2, wf1, bf1, wf2, bf2)


def ref_forward(x, params):
    """Pure-JAX f32 reference matching the PyTorch forward (eval mode)."""
    w1, b1, w2, b2, wf1, bf1, wf2, bf2 = params
    dn = ("NCHW", "OIHW", "NCHW")
    y = lax.conv_general_dilated(x, w1, (1, 1), "VALID",
                                 dimension_numbers=dn) + b1[None, :, None, None]
    y = lax.reduce_window(y, -jnp.inf, lax.max, (1, 1, 2, 2), (1, 1, 2, 2), "VALID")
    y = jnp.maximum(y, 0.0)
    y = lax.conv_general_dilated(y, w2, (1, 1), "VALID",
                                 dimension_numbers=dn) + b2[None, :, None, None]
    y = lax.reduce_window(y, -jnp.inf, lax.max, (1, 1, 2, 2), (1, 1, 2, 2), "VALID")
    y = jnp.maximum(y, 0.0)
    y = y.reshape(y.shape[0], -1)
    y = jnp.maximum(y @ wf1.T + bf1, 0.0)
    y = y @ wf2.T + bf2
    return jax.nn.log_softmax(y, axis=1)


if __name__ == "__main__":
    key = jax.random.PRNGKey(0)
    pkey, xkey = jax.random.split(key)

    num_channels, num_classes, batch = 1, 10, 2
    params = init_params(pkey, num_channels=num_channels, num_classes=num_classes)
    # 28x28 input is forced by fc1's 320 = 20*4*4 (MNIST geometry).
    x = jax.random.normal(xkey, (batch, num_channels, 28, 28), jnp.float32)

    fwd = jax.jit(cnn_mnist_forward)
    out = jax.block_until_ready(fwd(x, params))
    ref = ref_forward(x, params)

    assert out.shape == (batch, num_classes)
    assert bool(jnp.all(jnp.isfinite(out)))
    # bf16 MXU operands with f32 accumulation -> compare against the f32
    # reference with a correspondingly loose tolerance.
    assert jnp.allclose(out, ref, atol=5e-2, rtol=5e-2), (out, ref)
    print("KERNEL_OK")
</pallas_src>

<mosaic_0001>
module attributes {stable_mosaic.version = 11 : i64} {
  func.func private @main(%arg0: i32) attributes {dimension_semantics = [#tpu.dimension_semantics<core_parallel>], iteration_bounds = array<i64: 2>, tpu.core_type = #tpu.core_type<sc_scalar_subcore>, window_params = []} {
    return
  }
}

module attributes {stable_mosaic.version = 11 : i64} {
  func.func private @main(%arg0: i32) attributes {dimension_semantics = [#tpu.dimension_semantics<core_parallel>], iteration_bounds = array<i64: 2>, tpu.core_type = #tpu.core_type<sc_scalar_subcore>, window_params = []} {
    return
  }
}

module attributes {stable_mosaic.version = 11 : i64} {
  func.func @_fused_kernel(%arg0: i32, %arg1: memref<28x16x128xbf16, #tpu.memory_space<vmem>>, %arg2: memref<640x128xbf16, #tpu.memory_space<vmem>>, %arg3: memref<640x128xbf16, #tpu.memory_space<vmem>>, %arg4: memref<1x128xf32, #tpu.memory_space<vmem>>, %arg5: memref<640x128xbf16, #tpu.memory_space<vmem>>, %arg6: memref<640x128xbf16, #tpu.memory_space<vmem>>, %arg7: memref<1x128xf32, #tpu.memory_space<vmem>>, %arg8: memref<512x128xbf16, #tpu.memory_space<vmem>>, %arg9: memref<1x128xf32, #tpu.memory_space<vmem>>, %arg10: memref<128x128xbf16, #tpu.memory_space<vmem>>, %arg11: memref<1x128xf32, #tpu.memory_space<vmem>>, %arg12: memref<16x128xf32, #tpu.memory_space<vmem>>, %arg13: memref<384x640xbf16, #tpu.memory_space<vmem>>, %arg14: memref<128x640xbf16, #tpu.memory_space<vmem>>, %arg15: memref<16x512xbf16, #tpu.memory_space<vmem>>) attributes {dimension_semantics = [#tpu.dimension_semantics<parallel>], iteration_bounds = array<i64: 1>, scalar_prefetch = 0 : i64, scratch_operands = 3 : i64, tpu.core_type = #tpu.core_type<tc>, window_params = [{transform_indices = @transform_0, window_bounds = array<i64: 28, 16, 128>}, {pipeline_mode = #tpu.pipeline_mode<synchronous>, transform_indices = @transform_1, window_bounds = array<i64: 640, 128>}, {pipeline_mode = #tpu.pipeline_mode<synchronous>, transform_indices = @transform_2, window_bounds = array<i64: 640, 128>}, {pipeline_mode = #tpu.pipeline_mode<synchronous>, transform_indices = @transform_3, window_bounds = array<i64: 1, 128>}, {pipeline_mode = #tpu.pipeline_mode<synchronous>, transform_indices = @transform_4, window_bounds = array<i64: 640, 128>}, {pipeline_mode = #tpu.pipeline_mode<synchronous>, transform_indices = @transform_5, window_bounds = array<i64: 640, 128>}, {pipeline_mode = #tpu.pipeline_mode<synchronous>, transform_indices = @transform_6, window_bounds = array<i64: 1, 128>}, {pipeline_mode = #tpu.pipeline_mode<synchronous>, transform_indices = @transform_7, window_bounds = array<i64: 512, 128>}, {pipeline_mode = #tpu.pipeline_mode<synchronous>, transform_indices = @transform_8, window_bounds = array<i64: 1, 128>}, {pipeline_mode = #tpu.pipeline_mode<synchronous>, transform_indices = @transform_9, window_bounds = array<i64: 128, 128>}, {pipeline_mode = #tpu.pipeline_mode<synchronous>, transform_indices = @transform_10, window_bounds = array<i64: 1, 128>}, {transform_indices = @transform_11, window_bounds = array<i64: 16, 128>}]} {
    %c0 = arith.constant 0 : index
    %c0_0 = arith.constant 0 : index
    %c0_1 = arith.constant 0 : index
    %0 = vector.load %arg1[%c0, %c0_0, %c0_1] : memref<28x16x128xbf16, #tpu.memory_space<vmem>>, vector<24x16x128xbf16>
    %1 = vector.shape_cast %0 : vector<24x16x128xbf16> to vector<384x128xbf16>
    %c0_2 = arith.constant 0 : index
    %c0_3 = arith.constant 0 : index
    %2 = vector.load %arg13[%c0_2, %c0_3] : memref<384x640xbf16, #tpu.memory_space<vmem>>, vector<384x128xbf16>
    tpu.vector_store %arg13[%c0_2, %c0_3], %1 {strides = array<i32>} : memref<384x640xbf16, #tpu.memory_space<vmem>>, vector<384x128xbf16>,
    %c1 = arith.constant 1 : index
    %c0_4 = arith.constant 0 : index
    %c0_5 = arith.constant 0 : index
    %3 = vector.load %arg1[%c1, %c0_4, %c0_5] : memref<28x16x128xbf16, #tpu.memory_space<vmem>>, vector<24x16x128xbf16>
    %4 = vector.shape_cast %3 : vector<24x16x128xbf16> to vector<384x128xbf16>
    %c0_6 = arith.constant 0 : index
    %c128 = arith.constant 128 : index
    %5 = vector.load %arg13[%c0_6, %c128] : memref<384x640xbf16, #tpu.memory_space<vmem>>, vector<384x128xbf16>
    tpu.vector_store %arg13[%c0_6, %c128], %4 {strides = array<i32>} : memref<384x640xbf16, #tpu.memory_space<vmem>>, vector<384x128xbf16>,
    %c2 = arith.constant 2 : index
    %c0_7 = arith.constant 0 : index
    %c0_8 = arith.constant 0 : index
    %6 = vector.load %arg1[%c2, %c0_7, %c0_8] : memref<28x16x128xbf16, #tpu.memory_space<vmem>>, vector<24x16x128xbf16>
    %7 = vector.shape_cast %6 : vector<24x16x128xbf16> to vector<384x128xbf16>
    %c0_9 = arith.constant 0 : index
    %c256 = arith.constant 256 : index
    %8 = vector.load %arg13[%c0_9, %c256] : memref<384x640xbf16, #tpu.memory_space<vmem>>, vector<384x128xbf16>
    tpu.vector_store %arg13[%c0_9, %c256], %7 {strides = array<i32>} : memref<384x640xbf16, #tpu.memory_space<vmem>>, vector<384x128xbf16>,
    %c3 = arith.constant 3 : index
    %c0_10 = arith.constant 0 : index
    %c0_11 = arith.constant 0 : index
    %9 = vector.load %arg1[%c3, %c0_10, %c0_11] : memref<28x16x128xbf16, #tpu.memory_space<vmem>>, vector<24x16x128xbf16>
    %10 = vector.shape_cast %9 : vector<24x16x128xbf16> to vector<384x128xbf16>
    %c0_12 = arith.constant 0 : index
    %c384 = arith.constant 384 : index
    %11 = vector.load %arg13[%c0_12, %c384] : memref<384x640xbf16, #tpu.memory_space<vmem>>, vector<384x128xbf16>
    tpu.vector_store %arg13[%c0_12, %c384], %10 {strides = array<i32>} : memref<384x640xbf16, #tpu.memory_space<vmem>>, vector<384x128xbf16>,
    %c4 = arith.constant 4 : index
    %c0_13 = arith.constant 0 : index
    %c0_14 = arith.constant 0 : index
    %12 = vector.load %arg1[%c4, %c0_13, %c0_14] : memref<28x16x128xbf16, #tpu.memory_space<vmem>>, vector<24x16x128xbf16>
    %13 = vector.shape_cast %12 : vector<24x16x128xbf16> to vector<384x128xbf16>
    %c0_15 = arith.constant 0 : index
    %c512 = arith.constant 512 : index
    %14 = vector.load %arg13[%c0_15, %c512] : memref<384x640xbf16, #tpu.memory_space<vmem>>, vector<384x128xbf16>
    tpu.vector_store %arg13[%c0_15, %c512], %13 {strides = array<i32>} : memref<384x640xbf16, #tpu.memory_space<vmem>>, vector<384x128xbf16>,
    %c0_16 = arith.constant 0 : index
    %c0_17 = arith.constant 0 : index
    %15 = vector.load %arg13[%c0_16, %c0_17] : memref<384x640xbf16, #tpu.memory_space<vmem>>, vector<384x640xbf16>
    %c0_18 = arith.constant 0 : index
    %c0_19 = arith.constant 0 : index
    %16 = vector.load %arg2[%c0_18, %c0_19] : memref<640x128xbf16, #tpu.memory_space<vmem>>, vector<640x128xbf16>
    %cst = arith.constant dense<0.000000e+00> : vector<384x128xf32>
    %17 = tpu.matmul %15, %16, %cst {dimension_numbers = #tpu.dot_dimension_numbers<[1], [0], [0], [1], [0, 0, 1, 1], [], []>} : vector<384x640xbf16>, vector<640x128xbf16>, vector<384x128xf32> -> vector<384x128xf32>
    %c0_20 = arith.constant 0 : index
    %c0_21 = arith.constant 0 : index
    %18 = vector.load %arg3[%c0_20, %c0_21] : memref<640x128xbf16, #tpu.memory_space<vmem>>, vector<640x128xbf16>
    %cst_22 = arith.constant dense<0.000000e+00> : vector<384x128xf32>
    %19 = tpu.matmul %15, %18, %cst_22 {dimension_numbers = #tpu.dot_dimension_numbers<[1], [0], [0], [1], [0, 0, 1, 1], [], []>} : vector<384x640xbf16>, vector<640x128xbf16>, vector<384x128xf32> -> vector<384x128xf32>
    %20 = arith.maximumf %17, %19 : vector<384x128xf32>
    %21 = vector.shape_cast %20 : vector<384x128xf32> to vector<24x16x128xf32>
    %22 = vector.shape_cast %21 : vector<24x16x128xf32> to vector<12x2x16x128xf32>
    %cst_23 = arith.constant dense<0xFF800000> : vector<12x16x128xf32>
    %23 = vector.multi_reduction <maximumf>, %22, %cst_23 [1] : vector<12x2x16x128xf32> to vector<12x16x128xf32>
    %c0_24 = arith.constant 0 : index
    %c0_25 = arith.constant 0 : index
    %24 = vector.load %arg4[%c0_24, %c0_25] : memref<1x128xf32, #tpu.memory_space<vmem>>, vector<1x128xf32>
    %25 = vector.shape_cast %24 : vector<1x128xf32> to vector<1x1x128xf32>
    %26 = vector.broadcast %25 : vector<1x1x128xf32> to vector<12x16x128xf32>
    %27 = arith.addf %23, %26 : vector<12x16x128xf32>
    %cst_26 = arith.constant 0.000000e+00 : f32
    %28 = vector.broadcast %cst_26 : f32 to vector<12x16x128xf32>
    %29 = arith.maximumf %27, %28 : vector<12x16x128xf32>
    %30 = arith.truncf %29 : vector<12x16x128xf32> to vector<12x16x128xbf16>
    %31 = vector.extract_strided_slice %30 {offsets = [0, 0, 0], sizes = [8, 16, 128], strides = [1, 1, 1]} : vector<12x16x128xbf16> to vector<8x16x128xbf16>
    %32 = vector.shape_cast %31 : vector<8x16x128xbf16> to vector<128x128xbf16>
    %c0_27 = arith.constant 0 : index
    %c0_28 = arith.constant 0 : index
    %33 = vector.load %arg14[%c0_27, %c0_28] : memref<128x640xbf16, #tpu.memory_space<vmem>>, vector<128x128xbf16>
    tpu.vector_store %arg14[%c0_27, %c0_28], %32 {strides = array<i32>} : memref<128x640xbf16, #tpu.memory_space<vmem>>, vector<128x128xbf16>,
    %34 = vector.extract_strided_slice %30 {offsets = [1, 0, 0], sizes = [8, 16, 128], strides = [1, 1, 1]} : vector<12x16x128xbf16> to vector<8x16x128xbf16>
    %35 = vector.shape_cast %34 : vector<8x16x128xbf16> to vector<128x128xbf16>
    %c0_29 = arith.constant 0 : index
    %c128_30 = arith.constant 128 : index
    %36 = vector.load %arg14[%c0_29, %c128_30] : memref<128x640xbf16, #tpu.memory_space<vmem>>, vector<128x128xbf16>
    tpu.vector_store %arg14[%c0_29, %c128_30], %35 {strides = array<i32>} : memref<128x640xbf16, #tpu.memory_space<vmem>>, vector<128x128xbf16>,
    %37 = vector.extract_strided_slice %30 {offsets = [2, 0, 0], sizes = [8, 16, 128], strides = [1, 1, 1]} : vector<12x16x128xbf16> to vector<8x16x128xbf16>
    %38 = vector.shape_cast %37 : vector<8x16x128xbf16> to vector<128x128xbf16>
    %c0_31 = arith.constant 0 : index
    %c256_32 = arith.constant 256 : index
    %39 = vector.load %arg14[%c0_31, %c256_32] : memref<128x640xbf16, #tpu.memory_space<vmem>>, vector<128x128xbf16>
    tpu.vector_store %arg14[%c0_31, %c256_32], %38 {strides = array<i32>} : memref<128x640xbf16, #tpu.memory_space<vmem>>, vector<128x128xbf16>,
    %40 = vector.extract_strided_slice %30 {offsets = [3, 0, 0], sizes = [8, 16, 128], strides = [1, 1, 1]} : vector<12x16x128xbf16> to vector<8x16x128xbf16>
    %41 = vector.shape_cast %40 : vector<8x16x128xbf16> to vector<128x128xbf16>
    %c0_33 = arith.constant 0 : index
    %c384_34 = arith.constant 384 : index
    %42 = vector.load %arg14[%c0_33, %c384_34] : memref<128x640xbf16, #tpu.memory_space<vmem>>, vector<128x128xbf16>
    tpu.vector_store %arg14[%c0_33, %c384_34], %41 {strides = array<i32>} : memref<128x640xbf16, #tpu.memory_space<vmem>>, vector<128x128xbf16>,
    %43 = vector.extract_strided_slice %30 {offsets = [4, 0, 0], sizes = [8, 16, 128], strides = [1, 1, 1]} : vector<12x16x128xbf16> to vector<8x16x128xbf16>
    %44 = vector.shape_cast %43 : vector<8x16x128xbf16> to vector<128x128xbf16>
    %c0_35 = arith.constant 0 : index
    %c512_36 = arith.constant 512 : index
    %45 = vector.load %arg14[%c0_35, %c512_36] : memref<128x640xbf16, #tpu.memory_space<vmem>>, vector<128x128xbf16>
    tpu.vector_store %arg14[%c0_35, %c512_36], %44 {strides = array<i32>} : memref<128x640xbf16, #tpu.memory_space<vmem>>, vector<128x128xbf16>,
    %c0_37 = arith.constant 0 : index
    %c0_38 = arith.constant 0 : index
    %46 = vector.load %arg14[%c0_37, %c0_38] : memref<128x640xbf16, #tpu.memory_space<vmem>>, vector<128x640xbf16>
    %c0_39 = arith.constant 0 : index
    %c0_40 = arith.constant 0 : index
    %47 = vector.load %arg5[%c0_39, %c0_40] : memref<640x128xbf16, #tpu.memory_space<vmem>>, vector<640x128xbf16>
    %cst_41 = arith.constant dense<0.000000e+00> : vector<128x128xf32>
    %48 = tpu.matmul %46, %47, %cst_41 {dimension_numbers = #tpu.dot_dimension_numbers<[1], [0], [0], [1], [0, 0, 1, 1], [], []>} : vector<128x640xbf16>, vector<640x128xbf16>, vector<128x128xf32> -> vector<128x128xf32>
    %c0_42 = arith.constant 0 : index
    %c0_43 = arith.constant 0 : index
    %49 = vector.load %arg6[%c0_42, %c0_43] : memref<640x128xbf16, #tpu.memory_space<vmem>>, vector<640x128xbf16>
    %cst_44 = arith.constant dense<0.000000e+00> : vector<128x128xf32>
    %50 = tpu.matmul %46, %49, %cst_44 {dimension_numbers = #tpu.dot_dimension_numbers<[1], [0], [0], [1], [0, 0, 1, 1], [], []>} : vector<128x640xbf16>, vector<640x128xbf16>, vector<128x128xf32> -> vector<128x128xf32>
    %51 = arith.maximumf %48, %50 : vector<128x128xf32>
    %52 = vector.shape_cast %51 : vector<128x128xf32> to vector<8x16x128xf32>
    %53 = vector.shape_cast %52 : vector<8x16x128xf32> to vector<4x2x16x128xf32>
    %cst_45 = arith.constant dense<0xFF800000> : vector<4x16x128xf32>
    %54 = vector.multi_reduction <maximumf>, %53, %cst_45 [1] : vector<4x2x16x128xf32> to vector<4x16x128xf32>
    %c0_46 = arith.constant 0 : index
    %c0_47 = arith.constant 0 : index
    %55 = vector.load %arg7[%c0_46, %c0_47] : memref<1x128xf32, #tpu.memory_space<vmem>>, vector<1x128xf32>
    %56 = vector.shape_cast %55 : vector<1x128xf32> to vector<1x1x128xf32>
    %57 = vector.broadcast %56 : vector<1x1x128xf32> to vector<4x16x128xf32>
    %58 = arith.addf %54, %57 : vector<4x16x128xf32>
    %cst_48 = arith.constant 0.000000e+00 : f32
    %59 = vector.broadcast %cst_48 : f32 to vector<4x16x128xf32>
    %60 = arith.maximumf %58, %59 : vector<4x16x128xf32>
    %61 = arith.truncf %60 : vector<4x16x128xf32> to vector<4x16x128xbf16>
    %62 = vector.extract_strided_slice %61 {offsets = [0, 0, 0], sizes = [1, 16, 128], strides = [1, 1, 1]} : vector<4x16x128xbf16> to vector<1x16x128xbf16>
    %63 = vector.shape_cast %62 : vector<1x16x128xbf16> to vector<16x128xbf16>
    %c0_49 = arith.constant 0 : index
    %c0_50 = arith.constant 0 : index
    %64 = vector.load %arg15[%c0_49, %c0_50] : memref<16x512xbf16, #tpu.memory_space<vmem>>, vector<16x128xbf16>
    tpu.vector_store %arg15[%c0_49, %c0_50], %63 {strides = array<i32>} : memref<16x512xbf16, #tpu.memory_space<vmem>>, vector<16x128xbf16>,
    %65 = vector.extract_strided_slice %61 {offsets = [1, 0, 0], sizes = [1, 16, 128], strides = [1, 1, 1]} : vector<4x16x128xbf16> to vector<1x16x128xbf16>
    %66 = vector.shape_cast %65 : vector<1x16x128xbf16> to vector<16x128xbf16>
    %c0_51 = arith.constant 0 : index
    %c128_52 = arith.constant 128 : index
    %67 = vector.load %arg15[%c0_51, %c128_52] : memref<16x512xbf16, #tpu.memory_space<vmem>>, vector<16x128xbf16>
    tpu.vector_store %arg15[%c0_51, %c128_52], %66 {strides = array<i32>} : memref<16x512xbf16, #tpu.memory_space<vmem>>, vector<16x128xbf16>,
    %68 = vector.extract_strided_slice %61 {offsets = [2, 0, 0], sizes = [1, 16, 128], strides = [1, 1, 1]} : vector<4x16x128xbf16> to vector<1x16x128xbf16>
    %69 = vector.shape_cast %68 : vector<1x16x128xbf16> to vector<16x128xbf16>
    %c0_53 = arith.constant 0 : index
    %c256_54 = arith.constant 256 : index
    %70 = vector.load %arg15[%c0_53, %c256_54] : memref<16x512xbf16, #tpu.memory_space<vmem>>, vector<16x128xbf16>
    tpu.vector_store %arg15[%c0_53, %c256_54], %69 {strides = array<i32>} : memref<16x512xbf16, #tpu.memory_space<vmem>>, vector<16x128xbf16>,
    %71 = vector.extract_strided_slice %61 {offsets = [3, 0, 0], sizes = [1, 16, 128], strides = [1, 1, 1]} : vector<4x16x128xbf16> to vector<1x16x128xbf16>
    %72 = vector.shape_cast %71 : vector<1x16x128xbf16> to vector<16x128xbf16>
    %c0_55 = arith.constant 0 : index
    %c384_56 = arith.constant 384 : index
    %73 = vector.load %arg15[%c0_55, %c384_56] : memref<16x512xbf16, #tpu.memory_space<vmem>>, vector<16x128xbf16>
    tpu.vector_store %arg15[%c0_55, %c384_56], %72 {strides = array<i32>} : memref<16x512xbf16, #tpu.memory_space<vmem>>, vector<16x128xbf16>,
    %c0_57 = arith.constant 0 : index
    %c0_58 = arith.constant 0 : index
    %74 = vector.load %arg15[%c0_57, %c0_58] : memref<16x512xbf16, #tpu.memory_space<vmem>>, vector<16x512xbf16>
    %c0_59 = arith.constant 0 : index
    %c0_60 = arith.constant 0 : index
    %75 = vector.load %arg8[%c0_59, %c0_60] : memref<512x128xbf16, #tpu.memory_space<vmem>>, vector<512x128xbf16>
    %cst_61 = arith.constant dense<0.000000e+00> : vector<16x128xf32>
    %76 = tpu.matmul %74, %75, %cst_61 {dimension_numbers = #tpu.dot_dimension_numbers<[1], [0], [0], [1], [0, 0, 1, 1], [], []>} : vector<16x512xbf16>, vector<512x128xbf16>, vector<16x128xf32> -> vector<16x128xf32>
    %c0_62 = arith.constant 0 : index
    %c0_63 = arith.constant 0 : index
    %77 = vector.load %arg9[%c0_62, %c0_63] : memref<1x128xf32, #tpu.memory_space<vmem>>, vector<1x128xf32>
    %78 = vector.broadcast %77 : vector<1x128xf32> to vector<16x128xf32>
    %79 = arith.addf %76, %78 : vector<16x128xf32>
    %cst_64 = arith.constant 0.000000e+00 : f32
    %80 = vector.broadcast %cst_64 : f32 to vector<16x128xf32>
    %81 = arith.maximumf %79, %80 : vector<16x128xf32>
    %82 = arith.truncf %81 : vector<16x128xf32> to vector<16x128xbf16>
    %c0_65 = arith.constant 0 : index
    %c0_66 = arith.constant 0 : index
    %83 = vector.load %arg10[%c0_65, %c0_66] : memref<128x128xbf16, #tpu.memory_space<vmem>>, vector<128x128xbf16>
    %cst_67 = arith.constant dense<0.000000e+00> : vector<16x128xf32>
    %84 = tpu.matmul %82, %83, %cst_67 {dimension_numbers = #tpu.dot_dimension_numbers<[1], [0], [0], [1], [0, 0, 1, 1], [], []>} : vector<16x128xbf16>, vector<128x128xbf16>, vector<16x128xf32> -> vector<16x128xf32>
    %c0_68 = arith.constant 0 : index
    %c0_69 = arith.constant 0 : index
    %85 = vector.load %arg11[%c0_68, %c0_69] : memref<1x128xf32, #tpu.memory_space<vmem>>, vector<1x128xf32>
    %86 = vector.broadcast %85 : vector<1x128xf32> to vector<16x128xf32>
    %87 = arith.addf %84, %86 : vector<16x128xf32>
    %cst_70 = arith.constant dense<0xFF800000> : vector<16xf32>
    %88 = vector.multi_reduction <maximumf>, %87, %cst_70 [1] : vector<16x128xf32> to vector<16xf32>
    %89 = vector.shape_cast %88 : vector<16xf32> to vector<16x1xf32>
    %90 = vector.broadcast %89 : vector<16x1xf32> to vector<16x128xf32>
    %91 = arith.subf %87, %90 : vector<16x128xf32>
    %92 = math.exp %91 : vector<16x128xf32>
    %cst_71 = arith.constant dense<0.000000e+00> : vector<16xf32>
    %93 = vector.multi_reduction <add>, %92, %cst_71 [1] : vector<16x128xf32> to vector<16xf32>
    %94 = vector.shape_cast %93 : vector<16xf32> to vector<16x1xf32>
    %95 = math.log %94 : vector<16x1xf32>
    %96 = vector.broadcast %95 : vector<16x1xf32> to vector<16x128xf32>
    %97 = arith.subf %91, %96 : vector<16x128xf32>
    %c0_72 = arith.constant 0 : index
    %c0_73 = arith.constant 0 : index
    %98 = vector.load %arg12[%c0_72, %c0_73] : memref<16x128xf32, #tpu.memory_space<vmem>>, vector<16x128xf32>
    tpu.vector_store %arg12[%c0_72, %c0_73], %97 {strides = array<i32>} : memref<16x128xf32, #tpu.memory_space<vmem>>, vector<16x128xf32>,
    return
  }
  func.func @transform_0(%arg0: i32) -> (i32, i32, i32) {
    %c0_i32 = arith.constant 0 : i32
    %c0_i32_0 = arith.constant 0 : i32
    %c0_i32_1 = arith.constant 0 : i32
    return %c0_i32, %arg0, %c0_i32_0 : i32, i32, i32
  }
  func.func @transform_1(%arg0: i32) -> (i32, i32) {
    %c0_i32 = arith.constant 0 : i32
    %c0_i32_0 = arith.constant 0 : i32
    %c0_i32_1 = arith.constant 0 : i32
    return %c0_i32, %c0_i32_0 : i32, i32
  }
  func.func @transform_2(%arg0: i32) -> (i32, i32) {
    %c0_i32 = arith.constant 0 : i32
    %c0_i32_0 = arith.constant 0 : i32
    %c0_i32_1 = arith.constant 0 : i32
    return %c0_i32, %c0_i32_0 : i32, i32
  }
  func.func @transform_3(%arg0: i32) -> (i32, i32) {
    %c0_i32 = arith.constant 0 : i32
    %c0_i32_0 = arith.constant 0 : i32
    %c0_i32_1 = arith.constant 0 : i32
    return %c0_i32, %c0_i32_0 : i32, i32
  }
  func.func @transform_4(%arg0: i32) -> (i32, i32) {
    %c0_i32 = arith.constant 0 : i32
    %c0_i32_0 = arith.constant 0 : i32
    %c0_i32_1 = arith.constant 0 : i32
    return %c0_i32, %c0_i32_0 : i32, i32
  }
  func.func @transform_5(%arg0: i32) -> (i32, i32) {
    %c0_i32 = arith.constant 0 : i32
    %c0_i32_0 = arith.constant 0 : i32
    %c0_i32_1 = arith.constant 0 : i32
    return %c0_i32, %c0_i32_0 : i32, i32
  }
  func.func @transform_6(%arg0: i32) -> (i32, i32) {
    %c0_i32 = arith.constant 0 : i32
    %c0_i32_0 = arith.constant 0 : i32
    %c0_i32_1 = arith.constant 0 : i32
    return %c0_i32, %c0_i32_0 : i32, i32
  }
  func.func @transform_7(%arg0: i32) -> (i32, i32) {
    %c0_i32 = arith.constant 0 : i32
    %c0_i32_0 = arith.constant 0 : i32
    %c0_i32_1 = arith.constant 0 : i32
    return %c0_i32, %c0_i32_0 : i32, i32
  }
  func.func @transform_8(%arg0: i32) -> (i32, i32) {
    %c0_i32 = arith.constant 0 : i32
    %c0_i32_0 = arith.constant 0 : i32
    %c0_i32_1 = arith.constant 0 : i32
    return %c0_i32, %c0_i32_0 : i32, i32
  }
  func.func @transform_9(%arg0: i32) -> (i32, i32) {
    %c0_i32 = arith.constant 0 : i32
    %c0_i32_0 = arith.constant 0 : i32
    %c0_i32_1 = arith.constant 0 : i32
    return %c0_i32, %c0_i32_0 : i32, i32
  }
  func.func @transform_10(%arg0: i32) -> (i32, i32) {
    %c0_i32 = arith.constant 0 : i32
    %c0_i32_0 = arith.constant 0 : i32
    %c0_i32_1 = arith.constant 0 : i32
    return %c0_i32, %c0_i32_0 : i32, i32
  }
  func.func @transform_11(%arg0: i32) -> (i32, i32) {
    %c0_i32 = arith.constant 0 : i32
    %c0_i32_0 = arith.constant 0 : i32
    return %arg0, %c0_i32 : i32, i32
  }
}

</mosaic_0001>

<bundles_post_ra>
// kernel: cnn_mnist_forward.1
= control target key start
LH: loop header
LB: loop body
LE: loop exit
PB: predicated region body
PF: predicated region fallthrough
CT: control target
= control target key end

     0   :  { %v6899_v0 = vmov 0   ;;  %vm6901_vm0 = vmmov 0   ;;  %s9134_s1 = inlined_call_operand.vmem [shape: bf16[640,128], index: 1, kind: input, shape index: {}]   ;;  %s9135_s0 = inlined_call_operand.vmem [shape: bf16[28,16,128], index: 0, kind: input, shape index: {}]   ;;  %s9136_s2 = inlined_call_operand.vmem [shape: bf16[640,128], index: 2, kind: input, shape index: {}]   ;;  %s9137_s4 = inlined_call_operand.vmem [shape: bf16[640,128], index: 4, kind: input, shape index: {}]   ;;  %s9138_s5 = inlined_call_operand.vmem [shape: bf16[640,128], index: 5, kind: input, shape index: {}]   ;;  %s9139_s3 = inlined_call_operand.vmem [shape: f32[1,128], index: 3, kind: input, shape index: {}]   ;;  %s9140_s7 = inlined_call_operand.vmem [shape: bf16[512,128], index: 7, kind: input, shape index: {}]   ;;  %s9141_s9 = inlined_call_operand.vmem [shape: bf16[128,128], index: 9, kind: input, shape index: {}]   ;;  %s9142_s6 = inlined_call_operand.vmem [shape: f32[1,128], index: 6, kind: input, shape index: {}]   ;;  %s9143_s8 = inlined_call_operand.vmem [shape: f32[1,128], index: 8, kind: input, shape index: {}]   ;;  %s9144_s10 = inlined_call_operand.vmem [shape: f32[1,128], index: 10, kind: input, shape index: {}]   ;;  %s9145_s11 = inlined_call_operand.vmem [shape: f32[16,128], index: 11, kind: output, shape index: {}]  }
   0x1   :  { %1563 = vmatprep.subr.bf16.mxu0 %v6899_v0  ;;  %v6547_v1 = vld [vmem:[%s9134_s1] sm:$0xff]   ;;  %v6549_v3 = vld [vmem:[%s9134_s1 + $0x8] sm:$0xff]   ;;  %v6552_v5 = vld [vmem:[%s9134_s1 + $0x110] sm:$0xff]  }
   0x2   :  { %v6548_v2 = vld [vmem:[%s9134_s1 + $0x100] sm:$0xff]   ;;  %1564 = vmatpush1.bf16.msra.mxu0 %v6547_v1  ;;  %v6550_v4 = vld [vmem:[%s9134_s1 + $0x108] sm:$0xff]   ;;  %v6551_v6 = vld [vmem:[%s9134_s1 + $0x10] sm:$0xff]  }
   0x3   :  { %6140 = vmatprep.subr.bf16.mxu1 %v6548_v2  ;;  %1565 = vmatprep.subr.bf16.mxu0 %v6899_v0  ;;  %v6554_v7 = vld [vmem:[%s9134_s1 + $0x118] sm:$0xff]   ;;  %v6556_v9 = vld [vmem:[%s9134_s1 + $0x120] sm:$0xff]   ;;  %v6558_v12 = vld [vmem:[%s9134_s1 + $0x128] sm:$0xff]  }
   0x4   :  { %6141 = vmatpush3.bf16.msra.mxu1 %v6548_v2  ;;  %v6553_v8 = vld [vmem:[%s9134_s1 + $0x18] sm:$0xff]   ;;  %v6555_v10 = vld [vmem:[%s9134_s1 + $0x20] sm:$0xff]   ;;  %v6557_v13 = vld [vmem:[%s9134_s1 + $0x28] sm:$0xff]  }
   0x5   :  { %6142 = vmatprep.subr.bf16.mxu1 %v6550_v4  ;;  %v6563_v11 = vld [vmem:[%s9135_s0 + $0x20] sm:$0xff]   ;;  %v6560_v14 = vld [vmem:[%s9134_s1 + $0x130] sm:$0xff]   ;;  %v6562_v16 = vld [vmem:[%s9134_s1 + $0x138] sm:$0xff]  }
   0x6   :  { %1566 = vmatpush1.bf16.msra.mxu0 %v6549_v3  ;;  %6156 = vmatprep.mubr.bf16.mxu1 %v6563_v11  ;;  %v6559_v15 = vld [vmem:[%s9134_s1 + $0x30] sm:$0xff]   ;;  %v6561_v17 = vld [vmem:[%s9134_s1 + $0x38] sm:$0xff]   ;;  %v6564_v18 = vld [vmem:[%s9134_s1 + $0x40] sm:$0xff]  }
   0x7   :  { %1567 = vmatprep.subr.bf16.mxu0 %v6899_v0  ;;  %v6565_v19 = vld [vmem:[%s9135_s0 + $0x28] sm:$0xff]   ;;  %v6567_v20 = vld [vmem:[%s9135_s0 + $0x30] sm:$0xff]   ;;  %v6584_v24 = vld [vmem:[%s9136_s2] sm:$0xff]  }
   0x8   :  { %6143 = vmatpush3.bf16.msra.mxu1 %v6550_v4  ;;  %v7034_v21 = vld [vmem:[%s9135_s0 + $0x8] sm:$0xff]   ;;  %v6568_v23 = vld [vmem:[%s9134_s1 + $0x50] sm:$0xff]   ;;  %v6569_v25 = vld [vmem:[%s9135_s0 + $0x38] sm:$0xff]  }
   0x9   :  { %6144 = vmatprep.subr.bf16.mxu1 %v6552_v5  ;;  %v6566_v22 = vld [vmem:[%s9134_s1 + $0x48] sm:$0xff]   ;;  %1595 = vmatprep.mubr.bf16.mxu0 %v7034_v21  ;;  %v6571_v26 = vld [vmem:[%s9135_s0 + $0x40] sm:$0xff]   ;;  %v6570_v28 = vld [vmem:[%s9134_s1 + $0x58] sm:$0xff]  }
   0xa   :  { %1568 = vmatpush1.bf16.msra.mxu0 %v6551_v6  ;;  %v6585_v27 = vld [vmem:[%s9136_s2 + $0x8] sm:$0xff]   ;;  %v6590_v29 = vld [vmem:[%s9136_s2 + $0x10] sm:$0xff]   ;;  %v6572_v30 = vld [vmem:[%s9134_s1 + $0x60] sm:$0xff]  }
   0xb   :  { %1569 = vmatprep.subr.bf16.mxu0 %v6899_v0  ;;  %v6573_v31 = vld [vmem:[%s9135_s0 + $0x48] sm:$0xff]   ;;  %v6575_v32 = vld [vmem:[%s9135_s0 + $0x50] sm:$0xff]   ;;  %v6592_v33 = vld [vmem:[%s9136_s2 + $0x18] sm:$0xff]  }
   0xc   :  { %6145 = vmatpush3.bf16.msra.mxu1 %v6552_v5  ;;  %v6574_v34 = vld [vmem:[%s9134_s1 + $0x68] sm:$0xff]   ;;  %v6597_v35 = vld [vmem:[%s9136_s2 + $0x20] sm:$0xff]   ;;  %v6576_v36 = vld [vmem:[%s9134_s1 + $0x70] sm:$0xff]  }
   0xd   :  { %6146 = vmatprep.subr.bf16.mxu1 %v6554_v7  ;;  %v6577_v37 = vld [vmem:[%s9135_s0 + $0x58] sm:$0xff]   ;;  %v6581_v38 = vld [vmem:[%s9135_s0 + $0x60] sm:$0xff]   ;;  %v6598_v39 = vld [vmem:[%s9136_s2 + $0x28] sm:$0xff]  }
   0xe   :  { %1570 = vmatpush1.bf16.msra.mxu0 %v6553_v8  ;;  %v6578_v40 = vld [vmem:[%s9134_s1 + $0x78] sm:$0xff]   ;;  %v7110_v41 = vld [vmem:[%s9135_s0] sm:$0xff]   ;;  %v6604_v43 = vld [vmem:[%s9136_s2 + $0x30] sm:$0xff]  }
   0xf   :  { %1571 = vmatprep.subr.bf16.mxu0 %v6899_v0  ;;  %v6582_v42 = vld [vmem:[%s9134_s1 + $0x80] sm:$0xff]   ;;  %v6583_v44 = vld [vmem:[%s9135_s0 + $0x68] sm:$0xff]   ;;  %v7125_v45 = vld [vmem:[%s9135_s0 + $0x10] sm:$0xff]  }
  0x10   :  { %6147 = vmatpush3.bf16.msra.mxu1 %v6554_v7  ;;  %v6588_v46 = vld [vmem:[%s9135_s0 + $0x70] sm:$0xff]   ;;  %v6605_v47 = vld [vmem:[%s9136_s2 + $0x38] sm:$0xff]   ;;  %v6591_v48 = vld [vmem:[%s9134_s1 + $0x88] sm:$0xff]  }
  0x11   :  { %6148 = vmatprep.subr.bf16.mxu1 %v6556_v9  ;;  %v7143_v49 = vld [vmem:[%s9135_s0 + $0x8] sm:$0xff]   ;;  %v6610_v50 = vld [vmem:[%s9136_s2 + $0x40] sm:$0xff]   ;;  %v6589_v51 = vld [vmem:[%s9135_s0 + $0x78] sm:$0xff]  }
  0x12   :  { %1572 = vmatpush1.bf16.msra.mxu0 %v6555_v10  ;;  %v7155_v52 = vld [vmem:[%s9135_s0 + $0x18] sm:$0xff]   ;;  %v6602_v53 = vld [vmem:[%s9134_s1 + $0x90] sm:$0xff]   ;;  %v6595_v54 = vld [vmem:[%s9135_s0 + $0x80] sm:$0xff]  }
  0x13   :  { %1573 = vmatprep.subr.bf16.mxu0 %v6899_v0  ;;  %v6612_v55 = vld [vmem:[%s9136_s2 + $0x48] sm:$0xff]   ;;  %v6611_v56 = vld [vmem:[%s9134_s1 + $0x98] sm:$0xff]   ;;  %v7177_v57 = vld [vmem:[%s9135_s0 + $0x10] sm:$0xff]  }
  0x14   :  { %6149 = vmatpush3.bf16.msra.mxu1 %v6556_v9  ;;  %v6617_v58 = vld [vmem:[%s9136_s2 + $0x50] sm:$0xff]   ;;  %v6596_v59 = vld [vmem:[%s9135_s0 + $0x88] sm:$0xff]   ;;  %v7189_v60 = vld [vmem:[%s9135_s0 + $0x20] sm:$0xff]  }
  0x15   :  { %6150 = vmatprep.subr.bf16.mxu1 %v6558_v12  ;;  %v6622_v61 = vld [vmem:[%s9134_s1 + $0xa0] sm:$0xff]   ;;  %v6601_v62 = vld [vmem:[%s9135_s0 + $0x90] sm:$0xff]   ;;  %v6618_v63 = vld [vmem:[%s9136_s2 + $0x58] sm:$0xff]  }
  0x16   :  { %1574 = vmatpush1.bf16.msra.mxu0 %v6557_v13  ;;  %v7208_v1 = vld [vmem:[%s9135_s0 + $0x18] sm:$0xff]   ;;  %v6624_v2 = vld [vmem:[%s9136_s2 + $0x60] sm:$0xff]   ;;  %v6631_v3 = vld [vmem:[%s9134_s1 + $0xa8] sm:$0xff]  }
  0x17   :  { %1575 = vmatprep.subr.bf16.mxu0 %v6899_v0  ;;  %v6603_v4 = vld [vmem:[%s9135_s0 + $0x98] sm:$0xff]   ;;  %v7224_v5 = vld [vmem:[%s9135_s0 + $0x28] sm:$0xff]   ;;  %v6608_v6 = vld [vmem:[%s9135_s0 + $0xa0] sm:$0xff]  }
  0x18   :  { %6151 = vmatpush3.bf16.msra.mxu1 %v6558_v12  ;;  %v6625_v7 = vld [vmem:[%s9136_s2 + $0x68] sm:$0xff]   ;;  %v6637_v8 = vld [vmem:[%s9134_s1 + $0xb0] sm:$0xff]   ;;  %v7242_v9 = vld [vmem:[%s9135_s0 + $0x20] sm:$0xff]  }
  0x19   :  { %6152 = vmatprep.subr.bf16.mxu1 %v6560_v14  ;;  %v6630_v10 = vld [vmem:[%s9136_s2 + $0x70] sm:$0xff]   ;;  %v6609_v11 = vld [vmem:[%s9135_s0 + $0xa8] sm:$0xff]   ;;  %v6640_v13 = vld [vmem:[%s9134_s1 + $0xb8] sm:$0xff]  }
  0x1a   :  { %1576 = vmatpush1.bf16.msra.mxu0 %v6559_v15  ;;  %v7253_v12 = vld [vmem:[%s9135_s0 + $0x30] sm:$0xff]   ;;  %v6632_v15 = vld [vmem:[%s9136_s2 + $0x78] sm:$0xff]  }
  0x1b   :  { %1577 = vmatprep.subr.bf16.mxu0 %v6899_v0 }
  0x1c   :  { %6153 = vmatpush3.bf16.msra.mxu1 %v6560_v14  ;;  %v6615_v14 = vld [vmem:[%s9135_s0 + $0xb0] sm:$0xff]  }
  0x1d   :  { %6154 = vmatprep.subr.bf16.mxu1 %v6562_v16 }
  0x1e   :  { %1578 = vmatpush1.bf16.msra.mxu0 %v6561_v17  ;;  %v7276_v17 = vld [vmem:[%s9135_s0 + $0x28] sm:$0xff]  }
  0x1f   :  { %1579 = vmatprep.subr.bf16.mxu0 %v6899_v0 }
  0x20   :  { %6155 = vmatpush3.bf16.msra.mxu1 %v6562_v16  ;;  %v6645_v16 = vld [vmem:[%s9134_s1 + $0xc0] sm:$0xff]  }
  0x21   :  { %2558 = vmatprep.subr.bf16.mxu1 %v6899_v0 }
  0x22   :  { %1580 = vmatpush1.bf16.msra.mxu0 %v6564_v18  ;;  %v7281_v18 = vld [vmem:[%s9135_s0 + $0x38] sm:$0xff]  }
  0x23   :  { %6157 = vmatmul.mubr.bf16.vlgmr.msra.gmra.mrb[0].mxu1 %v6565_v19  ;;  %1581 = vmatprep.subr.bf16.mxu0 %v6899_v0  ;;  %v6649_v19 = vld [vmem:[%s9134_s1 + $0xc8] sm:$0xff]  }
  0x24   :  { %6160 = vmatprep.mubr.bf16.mxu1 %v6567_v20  ;;  %2559 = vmatpush1.bf16.msra.mxu1 %v6584_v24  ;;  %v6616_v20 = vld [vmem:[%s9135_s0 + $0xb8] sm:$0xff]   ;;  %v6655_v24 = vld [vmem:[%s9134_s1 + $0xd0] sm:$0xff]  }
  0x25   :  { %2560 = vmatprep.subr.bf16.mxu1 %v6899_v0 }
  0x26   :  { %1582 = vmatpush1.bf16.msra.mxu0 %v6566_v22  ;;  %v6621_v22 = vld [vmem:[%s9135_s0 + $0xc0] sm:$0xff]  }
  0x27   :  { %1583 = vmatprep.subr.bf16.mxu0 %v6899_v0 }
  0x28   :  { %2561 = vmatpush1.bf16.msra.mxu1 %v6585_v27  ;;  %v6628_v27 = vld [vmem:[%s9135_s0 + $0xd0] sm:$0xff]  }
  0x29   :  { %2562 = vmatprep.subr.bf16.mxu1 %v6899_v0 }
  0x2a   :  { %1584 = vmatpush1.bf16.msra.mxu0 %v6568_v23  ;;  %v7299_v23 = vld [vmem:[%s9135_s0 + $0x30] sm:$0xff]  }
  0x2b   :  { %6161 = vmatmul.mubr.bf16.gmra.mrb[4].mxu1 %v6569_v25  ;;  %1585 = vmatprep.subr.bf16.mxu0 %v6899_v0  ;;  %v6623_v25 = vld [vmem:[%s9135_s0 + $0xc8] sm:$0xff]  }
  0x2c   :  { %6164 = vmatprep.mubr.bf16.mxu1 %v6571_v26  ;;  %2563 = vmatpush1.bf16.msra.mxu1 %v6590_v29  ;;  %v7311_v26 = vld [vmem:[%s9135_s0 + $0x40] sm:$0xff]   ;;  %v7326_v29 = vld [vmem:[%s9135_s0 + $0x38] sm:$0xff]  }
  0x2d   :  { %2564 = vmatprep.subr.bf16.mxu1 %v6899_v0 }
  0x2e   :  { %1586 = vmatpush1.bf16.msra.mxu0 %v6570_v28  ;;  %v6659_v28 = vld [vmem:[%s9134_s1 + $0xd8] sm:$0xff]  }
  0x2f   :  { %1587 = vmatprep.subr.bf16.mxu0 %v6899_v0 }
  0x30   :  { %2565 = vmatpush1.bf16.msra.mxu1 %v6592_v33  ;;  %v6669_v33 = vld [vmem:[%s9134_s1 + $0xe8] sm:$0xff]  }
  0x31   :  { %2566 = vmatprep.subr.bf16.mxu1 %v6899_v0 }
  0x32   :  { %1588 = vmatpush1.bf16.msra.mxu0 %v6572_v30  ;;  %v7331_v30 = vld [vmem:[%s9135_s0 + $0x48] sm:$0xff]  }
  0x33   :  { %6165 = vmatmul.mubr.bf16.gmra.mrb[8].mxu1 %v6573_v31  ;;  %1589 = vmatprep.subr.bf16.mxu0 %v6899_v0  ;;  %v6665_v31 = vld [vmem:[%s9134_s1 + $0xe0] sm:$0xff]  }
  0x34   :  { %6168 = vmatprep.mubr.bf16.mxu1 %v6575_v32  ;;  %2567 = vmatpush1.bf16.msra.mxu1 %v6597_v35  ;;  %v6629_v32 = vld [vmem:[%s9135_s0 + $0xd8] sm:$0xff]   ;;  %v7355_v35 = vld [vmem:[%s9135_s0 + $0x50] sm:$0xff]  }
  0x35   :  { %2568 = vmatprep.subr.bf16.mxu1 %v6899_v0 }
  0x36   :  { %1590 = vmatpush1.bf16.msra.mxu0 %v6574_v34  ;;  %v7349_v34 = vld [vmem:[%s9135_s0 + $0x40] sm:$0xff]  }
  0x37   :  { %1591 = vmatprep.subr.bf16.mxu0 %v6899_v0 }
  0x38   :  { %2569 = vmatpush1.bf16.msra.mxu1 %v6598_v39  ;;  %v7377_v39 = vld [vmem:[%s9135_s0 + $0x48] sm:$0xff]  }
  0x39   :  { %2570 = vmatprep.subr.bf16.mxu1 %v6899_v0 }
  0x3a   :  { %1592 = vmatpush1.bf16.msra.mxu0 %v6576_v36  ;;  %v6648_v36 = vld [vmem:[%s9136_s2 + $0x80] sm:$0xff]  }
  0x3b   :  { %6169 = vmatmul.mubr.bf16.gmra.mrb[12].mxu1 %v6577_v37  ;;  %1593 = vmatprep.subr.bf16.mxu0 %v6899_v0  ;;  %v6652_v37 = vld [vmem:[%s9136_s2 + $0x88] sm:$0xff]  }
  0x3c   :  { %6172 = vmatprep.mubr.bf16.mxu1 %v6581_v38  ;;  %2571 = vmatpush1.bf16.msra.mxu1 %v6604_v43  ;;  %v6679_v38 = vld [vmem:[%s9134_s1 + $0xf8] sm:$0xff]  }
  0x3d   :  { %2572 = vmatprep.subr.bf16.mxu1 %v6899_v0  ;;  %v6662_v43 = vld [vmem:[%s9136_s2 + $0x98] sm:$0xff]  }
  0x3e   :  { %1594 = vmatpush1.bf16.msra.mxu0 %v6578_v40  ;;  %v7383_v40 = vld [vmem:[%s9135_s0 + $0x58] sm:$0xff]  }
  0x3f   :  { %1788 = vmatprep.subr.bf16.mxu0 %v6899_v0 }
  0x40   :  { %2573 = vmatpush1.bf16.msra.mxu1 %v6605_v47  ;;  %v7423_v47 = vld [vmem:[%s9135_s0 + $0x58] sm:$0xff]  }
  0x41   :  { %1596 = vmatmul.mubr.bf16.vlgmr.msra.gmra.mrb[0].mxu0 %v7110_v41  ;;  %2574 = vmatprep.subr.bf16.mxu1 %v6899_v0 }
  0x42   :  { %1789 = vmatpush1.bf16.msra.mxu0 %v6582_v42  ;;  %1603 = vmatprep.mubr.bf16.mxu0 %v7125_v45  ;;  %v7394_v42 = vld [vmem:[%s9136_s2 + $0x100] sm:$0xff]  }
  0x43   :  { %6173 = vmatmul.mubr.bf16.gmra.mrb[16].mxu1 %v6583_v44  ;;  %1790 = vmatprep.subr.bf16.mxu0 %v6899_v0  ;;  %v7404_v44 = vld [vmem:[%s9135_s0 + $0x50] sm:$0xff]  }
  0x44   :  { %6176 = vmatprep.mubr.bf16.mxu1 %v6588_v46  ;;  %2575 = vmatpush1.bf16.msra.mxu1 %v6610_v50  ;;  %v6668_v46 = vld [vmem:[%s9136_s2 + $0xa0] sm:$0xff]   ;;  %v6678_v50 = vld [vmem:[%s9136_s2 + $0xb0] sm:$0xff]  }
  0x45   :  { %2576 = vmatprep.subr.bf16.mxu1 %v6899_v0 }
  0x46   :  { %1791 = vmatpush1.bf16.msra.mxu0 %v6591_v48  ;;  %v6672_v48 = vld [vmem:[%s9136_s2 + $0xa8] sm:$0xff]  }
  0x47   :  { %1792 = vmatprep.subr.bf16.mxu0 %v6899_v0 }
  0x48   :  { %2577 = vmatpush1.bf16.msra.mxu1 %v6612_v55  ;;  %v7467_v55 = vld [vmem:[%s9135_s0 + $0x68] sm:$0xff]  }
  0x49   :  { %1604 = vmatmul.mubr.bf16.gmra.mrb[4].mxu0 %v7143_v49  ;;  %2578 = vmatprep.subr.bf16.mxu1 %v6899_v0 }
  0x4a   :  { %1611 = vmatprep.mubr.bf16.mxu0 %v7155_v52  ;;  %1793 = vmatpush1.bf16.msra.mxu0 %v6602_v53  ;;  %v7454_v53 = vld [vmem:[%s9135_s0 + $0x70] sm:$0xff]  }
  0x4b   :  { %6177 = vmatmul.mubr.bf16.gmra.mrb[20].mxu1 %v6589_v51  ;;  %1794 = vmatprep.subr.bf16.mxu0 %v6899_v0  ;;  %v7445_v51 = vld [vmem:[%s9135_s0 + $0x60] sm:$0xff]  }
  0x4c   :  { %6180 = vmatprep.mubr.bf16.mxu1 %v6595_v54  ;;  %2579 = vmatpush1.bf16.msra.mxu1 %v6617_v58  ;;  %v6688_v54 = vld [vmem:[%s9136_s2 + $0xc0] sm:$0xff]   ;;  %v6697_v58 = vld [vmem:[%s9136_s2 + $0xd0] sm:$0xff]  }
  0x4d   :  { %2580 = vmatprep.subr.bf16.mxu1 %v6899_v0 }
  0x4e   :  { %1795 = vmatpush1.bf16.msra.mxu0 %v6611_v56  ;;  %v6691_v56 = vld [vmem:[%s9136_s2 + $0xc8] sm:$0xff]  }
  0x4f   :  { %1796 = vmatprep.subr.bf16.mxu0 %v6899_v0 }
  0x50   :  { %2581 = vmatpush1.bf16.msra.mxu1 %v6618_v63  ;;  %v7511_v63 = vld [vmem:[%s9135_s0 + $0x78] sm:$0xff]  }
  0x51   :  { %1612 = vmatmul.mubr.bf16.gmra.mrb[8].mxu0 %v7177_v57  ;;  %2582 = vmatprep.subr.bf16.mxu1 %v6899_v0 }
  0x52   :  { %1619 = vmatprep.mubr.bf16.mxu0 %v7189_v60  ;;  %1797 = vmatpush1.bf16.msra.mxu0 %v6622_v61  ;;  %v7498_v61 = vld [vmem:[%s9135_s0 + $0x80] sm:$0xff]  }
  0x53   :  { %6181 = vmatmul.mubr.bf16.gmra.mrb[24].mxu1 %v6596_v59  ;;  %1798 = vmatprep.subr.bf16.mxu0 %v6899_v0  ;;  %v7489_v59 = vld [vmem:[%s9135_s0 + $0x70] sm:$0xff]  }
  0x54   :  { %6184 = vmatprep.mubr.bf16.mxu1 %v6601_v62  ;;  %2583 = vmatpush1.bf16.msra.mxu1 %v6624_v2  ;;  %v6704_v62 = vld [vmem:[%s9136_s2 + $0xe0] sm:$0xff]   ;;  %v7520_v2 = vld [vmem:[%s9135_s0 + $0x88] sm:$0xff]  }
  0x55   :  { %2584 = vmatprep.subr.bf16.mxu1 %v6899_v0 }
  0x56   :  { %1799 = vmatpush1.bf16.msra.mxu0 %v6631_v3  ;;  %v6708_v3 = vld [vmem:[%s9136_s2 + $0xf0] sm:$0xff]  }
  0x57   :  { %1800 = vmatprep.subr.bf16.mxu0 %v6899_v0 }
  0x58   :  { %2585 = vmatpush1.bf16.msra.mxu1 %v6625_v7  ;;  %v7552_v7 = vld [vmem:[%s9135_s0 + $0x88] sm:$0xff]  }
  0x59   :  { %1620 = vmatmul.mubr.bf16.gmra.mrb[12].mxu0 %v7208_v1  ;;  %2586 = vmatprep.subr.bf16.mxu1 %v6899_v0 }
  0x5a   :  { %1627 = vmatprep.mubr.bf16.mxu0 %v7224_v5  ;;  %1801 = vmatpush1.bf16.msra.mxu0 %v6637_v8  ;;  %v7566_v8 = vld [vmem:[%s9135_s0 + $0x90] sm:$0xff]  }
  0x5b   :  { %6185 = vmatmul.mubr.bf16.gmra.mrb[28].mxu1 %v6603_v4  ;;  %1802 = vmatprep.subr.bf16.mxu0 %v6899_v0  ;;  %v6709_v4 = vld [vmem:[%s9136_s2 + $0xf8] sm:$0xff]  }
  0x5c   :  { %6188 = vmatprep.mubr.bf16.mxu1 %v6608_v6  ;;  %2587 = vmatpush1.bf16.msra.mxu1 %v6630_v10  ;;  %v7543_v6 = vld [vmem:[%s9135_s0 + $0x90] sm:$0xff]   ;;  %v7580_v10 = vld [vmem:[%s9135_s0 + $0x98] sm:$0xff]  }
  0x5d   :  { %2588 = vmatprep.subr.bf16.mxu1 %v6899_v0 }
  0x5e   :  { %1803 = vmatpush1.bf16.msra.mxu0 %v6640_v13  ;;  %v7599_v13 = vld [vmem:[%s9135_s0 + $0xb0] sm:$0xff]  }
  0x5f   :  { %1804 = vmatprep.subr.bf16.mxu0 %v6899_v0 }
  0x60   :  { %2589 = vmatpush1.bf16.msra.mxu1 %v6632_v15  ;;  %v7613_v15 = vld [vmem:[%s9135_s0 + $0xb8] sm:$0xff]  }
  0x61   :  { %1628 = vmatmul.mubr.bf16.gmra.mrb[16].mxu0 %v7242_v9  ;;  %2783 = vmatprep.subr.bf16.mxu1 %v6899_v0 }
  0x62   :  { %1635 = vmatprep.mubr.bf16.mxu0 %v7253_v12  ;;  %1805 = vmatpush1.bf16.msra.mxu0 %v6645_v16  ;;  %v7622_v16 = vld [vmem:[%s9135_s0 + $0xb0] sm:$0xff]  }
  0x63   :  { %6189 = vmatmul.mubr.bf16.gmra.mrb[32].mxu1 %v6609_v11  ;;  %1806 = vmatprep.subr.bf16.mxu0 %v6899_v0  ;;  %v7585_v11 = vld [vmem:[%s9135_s0 + $0xa8] sm:$0xff]  }
  0x64   :  { %6192 = vmatprep.mubr.bf16.mxu1 %v6615_v14  ;;  %v7608_v14 = vld [vmem:[%s9135_s0 + $0xa8] sm:$0xff]  }
  0x66   :  { %1807 = vmatpush1.bf16.msra.mxu0 %v6649_v19  ;;  %v7641_v19 = vld [vmem:[%s9135_s0 + $0x18] sm:$0xff]  }
  0x67   :  { %1808 = vmatprep.subr.bf16.mxu0 %v6899_v0 }
  0x69   :  { %1636 = vmatmul.mubr.bf16.gmra.mrb[20].mxu0 %v7276_v17 }
  0x6a   :  { %1643 = vmatprep.mubr.bf16.mxu0 %v7281_v18  ;;  %1809 = vmatpush1.bf16.msra.mxu0 %v6655_v24 }
  0x6b   :  { %6193 = vmatmul.mubr.bf16.gmra.mrb[36].mxu1 %v6616_v20  ;;  %1810 = vmatprep.subr.bf16.mxu0 %v6899_v0 }
  0x6c   :  { %6196 = vmatprep.mubr.bf16.mxu1 %v6621_v22 }
  0x6e   :  { %1811 = vmatpush1.bf16.msra.mxu0 %v6659_v28  ;;  %v6694_v28 = vld [vmem:[%s9136_s2 + $0x108] sm:$0xff]  }
  0x6f   :  { %1812 = vmatprep.subr.bf16.mxu0 %v6899_v0 }
  0x71   :  { %1644 = vmatmul.mubr.bf16.gmra.mrb[24].mxu0 %v7299_v23 }
  0x72   :  { %1651 = vmatprep.mubr.bf16.mxu0 %v7311_v26  ;;  %1813 = vmatpush1.bf16.msra.mxu0 %v6665_v31 }
  0x73   :  { %6197 = vmatmul.mubr.bf16.gmra.mrb[40].mxu1 %v6623_v25  ;;  %1814 = vmatprep.subr.bf16.mxu0 %v6899_v0  ;;  %v7658_v25 = vld [vmem:[%s9135_s0 + $0x10] sm:$0xff]  }
  0x74   :  { %6200 = vmatprep.mubr.bf16.mxu1 %v6628_v27 }
  0x76   :  { %1815 = vmatpush1.bf16.msra.mxu0 %v6669_v33  ;;  %v7687_v33 = vld [vmem:[%s9135_s0 + $0x18] sm:$0xff]  }
  0x77   :  { %1816 = vmatprep.subr.bf16.mxu0 %v6899_v0 }
  0x79   :  { %1652 = vmatmul.mubr.bf16.gmra.mrb[28].mxu0 %v7326_v29 }
  0x7a   :  { %1659 = vmatprep.mubr.bf16.mxu0 %v7331_v30 }
  0x7b   :  { %6201 = vmatmul.mubr.bf16.gmra.mrb[44].mxu1 %v6629_v32  ;;  %v6703_v32 = vld [vmem:[%s9136_s2 + $0x110] sm:$0xff]  }
  0x7c   :  { %2590 = vmatprep.mubr.bf16.mxu1 %v7034_v21  ;;  %v6675_v21 = vld [vmem:[%s9134_s1 + $0xf0] sm:$0xff]  }
  0x7d   :  { %1817 = vmatpush1.bf16.msra.mxu0 %v6675_v21  ;;  %v6714_v21 = vld [vmem:[%s9136_s2 + $0x118] sm:$0xff]  }
  0x7e   :  { %1818 = vmatprep.subr.bf16.mxu0 %v6899_v0 }
  0x81   :  { %1660 = vmatmul.mubr.bf16.gmra.mrb[32].mxu0 %v7349_v34 }
  0x82   :  { %1667 = vmatprep.mubr.bf16.mxu0 %v7355_v35  ;;  %1819 = vmatpush1.bf16.msra.mxu0 %v6679_v38 }
  0x83   :  { %2591 = vmatmul.mubr.bf16.vlgmr.msra.gmra.mrb[48].mxu1 %v7110_v41  ;;  %v6658_v41 = vld [vmem:[%s9136_s2 + $0x90] sm:$0xff]   ;;  %6204 = vmatprep.subr.bf16.mxu0 %v7394_v42 }
  0x84   :  { %2598 = vmatprep.mubr.bf16.mxu1 %v7125_v45  ;;  %2784 = vmatpush1.bf16.msra.mxu1 %v6648_v36  ;;  %v7411_v45 = vld [vmem:[%s9135_s0 + $0x60] sm:$0xff]  }
  0x85   :  { %2785 = vmatprep.subr.bf16.mxu1 %v6899_v0 }
  0x88   :  { %2786 = vmatpush1.bf16.msra.mxu1 %v6652_v37 }
  0x89   :  { %1668 = vmatmul.mubr.bf16.gmra.mrb[36].mxu0 %v7377_v39  ;;  %2787 = vmatprep.subr.bf16.mxu1 %v6899_v0 }
  0x8a   :  { %1675 = vmatprep.mubr.bf16.mxu0 %v7383_v40 }
  0x8b   :  { %2599 = vmatmul.mubr.bf16.gmra.mrb[52].mxu1 %v7143_v49  ;;  %v7432_v49 = vld [vmem:[%s9135_s0 + $0x68] sm:$0xff]  }
  0x8c   :  { %2606 = vmatprep.mubr.bf16.mxu1 %v7155_v52  ;;  %2788 = vmatpush1.bf16.msra.mxu1 %v6658_v41  ;;  %v6682_v52 = vld [vmem:[%s9136_s2 + $0xb8] sm:$0xff]   ;;  %v7720_v41 = vld [vmem:[%s9135_s0 + $0x30] sm:$0xff]  }
  0x8d   :  { %2789 = vmatprep.subr.bf16.mxu1 %v6899_v0 }
  0x90   :  { %2790 = vmatpush1.bf16.msra.mxu1 %v6662_v43 }
  0x91   :  { %1676 = vmatmul.mubr.bf16.gmra.mrb[40].mxu0 %v7404_v44  ;;  %2791 = vmatprep.subr.bf16.mxu1 %v6899_v0 }
  0x92   :  { %1683 = vmatprep.mubr.bf16.mxu0 %v7411_v45 }
  0x93   :  { %2607 = vmatmul.mubr.bf16.gmra.mrb[56].mxu1 %v7177_v57  ;;  %v7476_v57 = vld [vmem:[%s9135_s0 + $0x78] sm:$0xff]  }
  0x94   :  { %2614 = vmatprep.mubr.bf16.mxu1 %v7189_v60  ;;  %2792 = vmatpush1.bf16.msra.mxu1 %v6668_v46  ;;  %v6700_v60 = vld [vmem:[%s9136_s2 + $0xd8] sm:$0xff]  }
  0x95   :  { %2793 = vmatprep.subr.bf16.mxu1 %v6899_v0 }
  0x98   :  { %2794 = vmatpush1.bf16.msra.mxu1 %v6672_v48  ;;  %v7743_v48 = vld [vmem:[%s9135_s0 + $0x28] sm:$0xff]  }
  0x99   :  { %1684 = vmatmul.mubr.bf16.gmra.mrb[44].mxu0 %v7423_v47  ;;  %2795 = vmatprep.subr.bf16.mxu1 %v6899_v0 }
  0x9a   :  { %1691 = vmatprep.mubr.bf16.mxu0 %v7432_v49 }
  0x9b   :  { %2615 = vmatmul.mubr.bf16.gmra.mrb[60].mxu1 %v7208_v1  ;;  %v6705_v1 = vld [vmem:[%s9136_s2 + $0xe8] sm:$0xff]  }
  0x9c   :  { %2622 = vmatprep.mubr.bf16.mxu1 %v7224_v5  ;;  %2796 = vmatpush1.bf16.msra.mxu1 %v6678_v50  ;;  %v7537_v5 = vld [vmem:[%s9135_s0 + $0x80] sm:$0xff]  }
  0x9d   :  { %2797 = vmatprep.subr.bf16.mxu1 %v6899_v0 }
  0xa0   :  { %2798 = vmatpush1.bf16.msra.mxu1 %v6682_v52 }
  0xa1   :  { %1692 = vmatmul.mubr.bf16.gmra.mrb[48].mxu0 %v7445_v51  ;;  %2799 = vmatprep.subr.bf16.mxu1 %v6899_v0 }
  0xa2   :  { %1699 = vmatprep.mubr.bf16.mxu0 %v7454_v53 }
  0xa3   :  { %2623 = vmatmul.mubr.bf16.gmra.mrb[64].mxu1 %v7242_v9  ;;  %v7571_v9 = vld [vmem:[%s9135_s0 + $0xa0] sm:$0xff]  }
  0xa4   :  { %2630 = vmatprep.mubr.bf16.mxu1 %v7253_v12  ;;  %2800 = vmatpush1.bf16.msra.mxu1 %v6688_v54  ;;  %v7594_v12 = vld [vmem:[%s9135_s0 + $0xa0] sm:$0xff]   ;;  %v7765_v54 = vld [vmem:[%s9135_s0 + $0x30] sm:$0xff]  }
  0xa5   :  { %2801 = vmatprep.subr.bf16.mxu1 %v6899_v0 }
  0xa8   :  { %2802 = vmatpush1.bf16.msra.mxu1 %v6691_v56 }
  0xa9   :  { %1700 = vmatmul.mubr.bf16.gmra.mrb[52].mxu0 %v7467_v55  ;;  %2803 = vmatprep.subr.bf16.mxu1 %v6899_v0 }
  0xaa   :  { %1707 = vmatprep.mubr.bf16.mxu0 %v7476_v57 }
  0xab   :  { %2631 = vmatmul.mubr.bf16.gmra.mrb[68].mxu1 %v7276_v17  ;;  %v7627_v17 = vld [vmem:[%s9135_s0 + $0xc0] sm:$0xff]  }
  0xac   :  { %2638 = vmatprep.mubr.bf16.mxu1 %v7281_v18  ;;  %2804 = vmatpush1.bf16.msra.mxu1 %v6697_v58  ;;  %v7636_v18 = vld [vmem:[%s9135_s0 + $0xb8] sm:$0xff]  }
  0xad   :  { %2805 = vmatprep.subr.bf16.mxu1 %v6899_v0 }
  0xb0   :  { %2806 = vmatpush1.bf16.msra.mxu1 %v6700_v60  ;;  %v7787_v60 = vld [vmem:[%s9135_s0 + $0x38] sm:$0xff]  }
  0xb1   :  { %1708 = vmatmul.mubr.bf16.gmra.mrb[56].mxu0 %v7489_v59  ;;  %2807 = vmatprep.subr.bf16.mxu1 %v6899_v0 }
  0xb2   :  { %1715 = vmatprep.mubr.bf16.mxu0 %v7498_v61 }
  0xb3   :  { %2639 = vmatmul.mubr.bf16.gmra.mrb[72].mxu1 %v7299_v23 }
  0xb4   :  { %2646 = vmatprep.mubr.bf16.mxu1 %v7311_v26  ;;  %2808 = vmatpush1.bf16.msra.mxu1 %v6704_v62  ;;  %v7663_v26 = vld [vmem:[%s9135_s0 + $0x20] sm:$0xff]  }
  0xb5   :  { %2809 = vmatprep.subr.bf16.mxu1 %v6899_v0 }
  0xb8   :  { %2810 = vmatpush1.bf16.msra.mxu1 %v6705_v1 }
  0xb9   :  { %1716 = vmatmul.mubr.bf16.gmra.mrb[60].mxu0 %v7511_v63  ;;  %2811 = vmatprep.subr.bf16.mxu1 %v6899_v0 }
  0xba   :  { %1723 = vmatprep.mubr.bf16.mxu0 %v7520_v2 }
  0xbb   :  { %2647 = vmatmul.mubr.bf16.gmra.mrb[76].mxu1 %v7326_v29 }
  0xbc   :  { %2654 = vmatprep.mubr.bf16.mxu1 %v7331_v30  ;;  %2812 = vmatpush1.bf16.msra.mxu1 %v6708_v3  ;;  %v6742_v3 = vld [vmem:[%s9136_s2 + $0x138] sm:$0xff]  }
  0xbd   :  { %2813 = vmatprep.subr.bf16.mxu1 %v6899_v0  ;;  %v7557_v0 = vld [vmem:[%s9135_s0 + $0x98] sm:$0xff]  }
  0xc0   :  { %2814 = vmatpush1.bf16.msra.mxu1 %v6709_v4  ;;  %v7812_v4 = vld [vmem:[%s9135_s0 + $0x40] sm:$0xff]  }
  0xc1   :  { %1724 = vmatmul.mubr.bf16.gmra.mrb[64].mxu0 %v7537_v5 }
  0xc2   :  { %1731 = vmatprep.mubr.bf16.mxu0 %v7543_v6 }
  0xc3   :  { %2655 = vmatmul.mubr.bf16.gmra.mrb[80].mxu1 %v7349_v34  ;;  %v7692_v34 = vld [vmem:[%s9135_s0 + $0x28] sm:$0xff]  }
  0xc4   :  { %2662 = vmatprep.mubr.bf16.mxu1 %v7355_v35 }
  0xc9   :  { %1732 = vmatmul.mubr.bf16.gmra.mrb[68].mxu0 %v7552_v7 }
  0xca   :  { %1739 = vmatprep.mubr.bf16.mxu0 %v7557_v0 }
  0xcb   :  { %2663 = vmatmul.mubr.bf16.gmra.mrb[84].mxu1 %v7377_v39  ;;  %v6721_v39 = vld [vmem:[%s9136_s2 + $0x120] sm:$0xff]  }
  0xcc   :  { %2670 = vmatprep.mubr.bf16.mxu1 %v7383_v40  ;;  %v7715_v40 = vld [vmem:[%s9135_s0 + $0x20] sm:$0xff]  }
  0xd1   :  { %1740 = vmatmul.mubr.bf16.gmra.mrb[72].mxu0 %v7566_v8 }
  0xd2   :  { %1747 = vmatprep.mubr.bf16.mxu0 %v7571_v9 }
  0xd3   :  { %2671 = vmatmul.mubr.bf16.gmra.mrb[88].mxu1 %v7404_v44  ;;  %v6728_v44 = vld [vmem:[%s9136_s2 + $0x128] sm:$0xff]  }
  0xd4   :  { %2678 = vmatprep.mubr.bf16.mxu1 %v7411_v45 }
  0xd9   :  { %1748 = vmatmul.mubr.bf16.gmra.mrb[76].mxu0 %v7580_v10 }
  0xda   :  { %1755 = vmatprep.mubr.bf16.mxu0 %v7585_v11 }
  0xdb   :  { %2679 = vmatmul.mubr.bf16.gmra.mrb[92].mxu1 %v7423_v47  ;;  %v6735_v47 = vld [vmem:[%s9136_s2 + $0x130] sm:$0xff]  }
  0xdc   :  { %2686 = vmatprep.mubr.bf16.mxu1 %v7432_v49  ;;  %v7748_v49 = vld [vmem:[%s9135_s0 + $0x38] sm:$0xff]  }
  0xe1   :  { %1756 = vmatmul.mubr.bf16.gmra.mrb[80].mxu0 %v7594_v12 }
  0xe2   :  { %1763 = vmatprep.mubr.bf16.mxu0 %v7599_v13 }
  0xe3   :  { %2687 = vmatmul.mubr.bf16.gmra.mrb[96].mxu1 %v7445_v51 }
  0xe4   :  { %2694 = vmatprep.mubr.bf16.mxu1 %v7454_v53 }
  0xe9   :  { %1764 = vmatmul.mubr.bf16.gmra.mrb[84].mxu0 %v7608_v14 }
  0xea   :  { %1771 = vmatprep.mubr.bf16.mxu0 %v7613_v15 }
  0xeb   :  { %2695 = vmatmul.mubr.bf16.gmra.mrb[100].mxu1 %v7467_v55  ;;  %v7770_v55 = vld [vmem:[%s9135_s0 + $0x40] sm:$0xff]  }
  0xec   :  { %2702 = vmatprep.mubr.bf16.mxu1 %v7476_v57 }
  0xf1   :  { %1772 = vmatmul.mubr.bf16.gmra.mrb[88].mxu0 %v7622_v16 }
  0xf2   :  { %1779 = vmatprep.mubr.bf16.mxu0 %v7627_v17 }
  0xf3   :  { %2703 = vmatmul.mubr.bf16.gmra.mrb[104].mxu1 %v7489_v59 }
  0xf4   :  { %2710 = vmatprep.mubr.bf16.mxu1 %v7498_v61  ;;  %v7792_v61 = vld [vmem:[%s9135_s0 + $0x48] sm:$0xff]  }
  0xf6   :  { %v7643_v20 = vpop.f32.mrb[0].mxu1 }
  0xf7   :  { %v7645_v22 = vpop.f32.mrb[1].mxu1 }
  0xf8   :  { %v7647_v23 = vpop.f32.mrb[2].mxu1 }
  0xf9   :  { %1780 = vmatmul.mubr.bf16.gmra.mrb[92].mxu0 %v7636_v18  ;;  %v7650_v24 = vpop.f32.mrb[3].mxu1 }
  0xfa   :  { %1820 = vmatprep.mubr.bf16.mxu0 %v7641_v19 }
  0xfb   :  { %2711 = vmatmul.mubr.bf16.gmra.mrb[108].mxu1 %v7511_v63 }
  0xfc   :  { %2718 = vmatprep.mubr.bf16.mxu1 %v7520_v2 }
  0xfe   :  { %v7665_v27 = vpop.f32.mrb[4].mxu1 }
  0xff   :  { %v7670_v29 = vpop.f32.mrb[5].mxu1 }
 0x100   :  { %v7672_v30 = vpop.f32.mrb[6].mxu1 }
 0x101   :  { %1821 = vmatmul.mubr.bf16.vlgmr.msra.gmra.mrb[0].mxu0 %v7658_v25  ;;  %v7675_v31 = vpop.f32.mrb[7].mxu1 }
 0x102   :  { %6205 = vmatpush3.bf16.msra.mxu0 %v7394_v42  ;;  %1828 = vmatprep.mubr.bf16.mxu0 %v7663_v26 }
 0x103   :  { %2719 = vmatmul.mubr.bf16.gmra.mrb[112].mxu1 %v7537_v5  ;;  %6206 = vmatprep.subr.bf16.mxu0 %v6694_v28  ;;  %v7817_v5 = vld [vmem:[%s9135_s0 + $0x50] sm:$0xff]  }
 0x104   :  { %2726 = vmatprep.mubr.bf16.mxu1 %v7543_v6 }
 0x106   :  { %6207 = vmatpush3.bf16.msra.mxu0 %v6694_v28  ;;  %v7694_v35 = vpop.f32.mrb[8].mxu1 }
 0x107   :  { %v7696_v36 = vpop.f32.mrb[9].mxu1  ;;  %6208 = vmatprep.subr.bf16.mxu0 %v6703_v32 }
 0x108   :  { %v7701_v37 = vpop.f32.mrb[10].mxu1 }
 0x109   :  { %1829 = vmatmul.mubr.bf16.gmra.mrb[4].mxu0 %v7687_v33  ;;  %v7704_v38 = vpop.f32.mrb[11].mxu1 }
 0x10a   :  { %1836 = vmatprep.mubr.bf16.mxu0 %v7692_v34  ;;  %6209 = vmatpush3.bf16.msra.mxu0 %v6703_v32 }
 0x10b   :  { %2727 = vmatmul.mubr.bf16.gmra.mrb[116].mxu1 %v7552_v7  ;;  %6210 = vmatprep.subr.bf16.mxu0 %v6714_v21 }
 0x10c   :  { %2734 = vmatprep.mubr.bf16.mxu1 %v7557_v0 }
 0x10e   :  { %v7722_v42 = vpop.f32.mrb[12].mxu1  ;;  %6211 = vmatpush3.bf16.msra.mxu0 %v6714_v21  ;;  %v7883_v21 = vld [vmem:[%s9135_s0 + $0x68] sm:$0xff]  }
 0x10f   :  { %v7724_v43 = vpop.f32.mrb[13].mxu1  ;;  %6212 = vmatprep.subr.bf16.mxu0 %v6721_v39 }
 0x110   :  { %v7729_v45 = vpop.f32.mrb[14].mxu1 }
 0x111   :  { %1837 = vmatmul.mubr.bf16.gmra.mrb[8].mxu0 %v7715_v40  ;;  %v7732_v46 = vpop.f32.mrb[15].mxu1 }
 0x112   :  { %1844 = vmatprep.mubr.bf16.mxu0 %v7720_v41  ;;  %6213 = vmatpush3.bf16.msra.mxu0 %v6721_v39 }
 0x113   :  { %2735 = vmatmul.mubr.bf16.gmra.mrb[120].mxu1 %v7566_v8  ;;  %6214 = vmatprep.subr.bf16.mxu0 %v6728_v44 }
 0x114   :  { %2742 = vmatprep.mubr.bf16.mxu1 %v7571_v9  ;;  %v7834_v9 = vld [vmem:[%s9135_s0 + $0x48] sm:$0xff]  }
 0x116   :  { %v7750_v50 = vpop.f32.mrb[16].mxu1  ;;  %6215 = vmatpush3.bf16.msra.mxu0 %v6728_v44 }
 0x117   :  { %v7752_v51 = vpop.f32.mrb[17].mxu1  ;;  %6216 = vmatprep.subr.bf16.mxu0 %v6735_v47 }
 0x118   :  { %v7754_v52 = vpop.f32.mrb[18].mxu1 }
 0x119   :  { %1845 = vmatmul.mubr.bf16.gmra.mrb[12].mxu0 %v7743_v48  ;;  %v7757_v53 = vpop.f32.mrb[19].mxu1 }
 0x11a   :  { %1852 = vmatprep.mubr.bf16.mxu0 %v7748_v49  ;;  %6217 = vmatpush3.bf16.msra.mxu0 %v6735_v47 }
 0x11b   :  { %2743 = vmatmul.mubr.bf16.gmra.mrb[124].mxu1 %v7580_v10  ;;  %6218 = vmatprep.subr.bf16.mxu0 %v6742_v3  ;;  %v7839_v10 = vld [vmem:[%s9135_s0 + $0x58] sm:$0xff]  }
 0x11c   :  { %2750 = vmatprep.mubr.bf16.mxu1 %v7585_v11 }
 0x11e   :  { %v7772_v56 = vpop.f32.mrb[20].mxu1  ;;  %6219 = vmatpush3.bf16.msra.mxu0 %v6742_v3  ;;  %v7903_v3 = vld [vmem:[%s9135_s0 + $0x70] sm:$0xff]  }
 0x11f   :  { %v7774_v57 = vpop.f32.mrb[21].mxu1 }
 0x120   :  { %v7776_v58 = vpop.f32.mrb[22].mxu1 }
 0x121   :  { %1853 = vmatmul.mubr.bf16.gmra.mrb[16].mxu0 %v7765_v54  ;;  %v7779_v59 = vpop.f32.mrb[23].mxu1 }
 0x122   :  { %1860 = vmatprep.mubr.bf16.mxu0 %v7770_v55 }
 0x123   :  { %2751 = vmatmul.mubr.bf16.gmra.mrb[128].mxu1 %v7594_v12 }
 0x124   :  { %2758 = vmatprep.mubr.bf16.mxu1 %v7599_v13 }
 0x126   :  { %v7794_v62 = vpop.f32.mrb[24].mxu1 }
 0x127   :  { %v7796_v63 = vpop.f32.mrb[25].mxu1 }
 0x128   :  { %v7798_v1 = vpop.f32.mrb[26].mxu1 }
 0x129   :  { %1861 = vmatmul.mubr.bf16.gmra.mrb[20].mxu0 %v7787_v60  ;;  %v7801_v2 = vpop.f32.mrb[27].mxu1 }
 0x12a   :  { %1868 = vmatprep.mubr.bf16.mxu0 %v7792_v61 }
 0x12b   :  { %2759 = vmatmul.mubr.bf16.gmra.mrb[132].mxu1 %v7608_v14 }
 0x12c   :  { %2766 = vmatprep.mubr.bf16.mxu1 %v7613_v15  ;;  %v7856_v15 = vld [vmem:[%s9135_s0 + $0x50] sm:$0xff]  }
 0x12e   :  { %v7819_v6 = vpop.f32.mrb[28].mxu1 }
 0x12f   :  { %v7821_v7 = vpop.f32.mrb[29].mxu1 }
 0x130   :  { %v7823_v0 = vpop.f32.mrb[30].mxu1 }
 0x131   :  { %1869 = vmatmul.mubr.bf16.gmra.mrb[24].mxu0 %v7812_v4  ;;  %v7826_v8 = vpop.f32.mrb[31].mxu1 }
 0x132   :  { %1876 = vmatprep.mubr.bf16.mxu0 %v7817_v5 }
 0x133   :  { %2767 = vmatmul.mubr.bf16.gmra.mrb[136].mxu1 %v7622_v16  ;;  %v7861_v16 = vld [vmem:[%s9135_s0 + $0x60] sm:$0xff]  }
 0x134   :  { %2774 = vmatprep.mubr.bf16.mxu1 %v7627_v17 }
 0x136   :  { %v7841_v11 = vpop.f32.mrb[32].mxu1 }
 0x137   :  { %v7843_v12 = vpop.f32.mrb[33].mxu1 }
 0x138   :  { %v7845_v13 = vpop.f32.mrb[34].mxu1 }
 0x139   :  { %1877 = vmatmul.mubr.bf16.gmra.mrb[28].mxu0 %v7834_v9  ;;  %v7848_v14 = vpop.f32.mrb[35].mxu1 }
 0x13a   :  { %1884 = vmatprep.mubr.bf16.mxu0 %v7839_v10 }
 0x13b   :  { %2775 = vmatmul.mubr.bf16.gmra.mrb[140].mxu1 %v7636_v18 }
 0x13c   :  { %2815 = vmatprep.mubr.bf16.mxu1 %v7641_v19  ;;  %v7878_v19 = vld [vmem:[%s9135_s0 + $0x58] sm:$0xff]  }
 0x13e   :  { %v7863_v17 = vpop.f32.mrb[36].mxu1 }
 0x13f   :  { %v7865_v28 = vpop.f32.mrb[37].mxu1 }
 0x140   :  { %v7867_v32 = vpop.f32.mrb[38].mxu1 }
 0x141   :  { %1885 = vmatmul.mubr.bf16.gmra.mrb[32].mxu0 %v7856_v15  ;;  %v7870_v18 = vpop.f32.mrb[39].mxu1 }
 0x142   :  { %1892 = vmatprep.mubr.bf16.mxu0 %v7861_v16 }
 0x143   :  { %2816 = vmatmul.mubr.bf16.vlgmr.msra.gmra.mrb[48].mxu1 %v7658_v25 }
 0x144   :  { %2823 = vmatprep.mubr.bf16.mxu1 %v7663_v26  ;;  %v6716_v26 = vld [vmem:[%s9135_s0 + $0x60] sm:$0xff]  }
 0x146   :  { %v7885_v39 = vpop.f32.mrb[40].mxu1 }
 0x147   :  { %9146 = vst [vmem:[#allocation5_spill] sm:$0xff] %v7885_v39  ;;  %v7887_v44 = vpop.f32.mrb[41].mxu1 }
 0x148   :  { %9147 = vst [vmem:[#allocation6_spill] sm:$0xff] %v7887_v44  ;;  %v7889_v47 = vpop.f32.mrb[42].mxu1 }
 0x149   :  { %9148 = vst [vmem:[#allocation7_spill] sm:$0xff] %v7889_v47  ;;  %1893 = vmatmul.mubr.bf16.gmra.mrb[36].mxu0 %v7878_v19  ;;  %v7892_v25 = vpop.f32.mrb[43].mxu1 }
 0x14a   :  { %9149 = vst [vmem:[#allocation8_spill] sm:$0xff] %v7892_v25  ;;  %1900 = vmatprep.mubr.bf16.mxu0 %v7883_v21 }
 0x14b   :  { %2824 = vmatmul.mubr.bf16.gmra.mrb[52].mxu1 %v7687_v33  ;;  %v6718_v33 = vld [vmem:[%s9135_s0 + $0x68] sm:$0xff]  }
 0x14c   :  { %2831 = vmatprep.mubr.bf16.mxu1 %v7692_v34  ;;  %v6719_v34 = vld [vmem:[%s9135_s0 + $0x78] sm:$0xff]  }
 0x14e   :  { %v7905_v47 = vpop.f32.mrb[44].mxu1 }
 0x14f   :  { %9150 = vst [vmem:[#allocation9_spill] sm:$0xff] %v7905_v47  ;;  %v7907_v39 = vpop.f32.mrb[45].mxu1  ;;  %v7985_v47 = vld [vmem:[%s9135_s0 + $0xa0] sm:$0xff]  }
 0x150   :  { %v7909_v25 = vpop.f32.mrb[46].mxu1 }
 0x151   :  { %9151 = vst [vmem:[#allocation10_spill] sm:$0xff] %v7909_v25  ;;  %1901 = vmatmul.mubr.bf16.gmra.mrb[40].mxu0 %v6716_v26  ;;  %v7911_v44 = vpop.f32.mrb[47].mxu1  ;;  %v6748_v25 = vld [vmem:[%s9137_s4] sm:$0xff]  }
 0x152   :  { %1908 = vmatprep.mubr.bf16.mxu0 %v7903_v3 }
 0x153   :  { %2832 = vmatmul.mubr.bf16.gmra.mrb[56].mxu1 %v7715_v40  ;;  %v6720_v40 = vld [vmem:[%s9135_s0 + $0x70] sm:$0xff]  }
 0x154   :  { %2839 = vmatprep.mubr.bf16.mxu1 %v7720_v41  ;;  %v6722_v41 = vld [vmem:[%s9135_s0 + $0x80] sm:$0xff]  }
 0x159   :  { %1909 = vmatmul.mubr.bf16.gmra.mrb[44].mxu0 %v6718_v33 }
 0x15a   :  { %1916 = vmatprep.mubr.bf16.mxu0 %v6719_v34 }
 0x15b   :  { %2840 = vmatmul.mubr.bf16.gmra.mrb[60].mxu1 %v7743_v48  ;;  %v6723_v48 = vld [vmem:[%s9135_s0 + $0x78] sm:$0xff]  }
 0x15c   :  { %2847 = vmatprep.mubr.bf16.mxu1 %v7748_v49  ;;  %v7938_v49 = vld [vmem:[%s9135_s0 + $0x88] sm:$0xff]  }
 0x161   :  { %1917 = vmatmul.mubr.bf16.gmra.mrb[48].mxu0 %v6720_v40 }
 0x162   :  { %1924 = vmatprep.mubr.bf16.mxu0 %v6722_v41 }
 0x163   :  { %2848 = vmatmul.mubr.bf16.gmra.mrb[64].mxu1 %v7765_v54  ;;  %v7946_v54 = vld [vmem:[%s9135_s0 + $0x80] sm:$0xff]  }
 0x164   :  { %2855 = vmatprep.mubr.bf16.mxu1 %v7770_v55  ;;  %v7951_v55 = vld [vmem:[%s9135_s0 + $0x90] sm:$0xff]  }
 0x169   :  { %1925 = vmatmul.mubr.bf16.gmra.mrb[52].mxu0 %v6723_v48 }
 0x16a   :  { %1932 = vmatprep.mubr.bf16.mxu0 %v7938_v49 }
 0x16b   :  { %2856 = vmatmul.mubr.bf16.gmra.mrb[68].mxu1 %v7787_v60  ;;  %v7960_v60 = vld [vmem:[%s9135_s0 + $0x88] sm:$0xff]  }
 0x16c   :  { %2863 = vmatprep.mubr.bf16.mxu1 %v7792_v61  ;;  %v7965_v61 = vld [vmem:[%s9135_s0 + $0x98] sm:$0xff]  }
 0x171   :  { %1933 = vmatmul.mubr.bf16.gmra.mrb[56].mxu0 %v7946_v54 }
 0x172   :  { %1940 = vmatprep.mubr.bf16.mxu0 %v7951_v55 }
 0x173   :  { %2864 = vmatmul.mubr.bf16.gmra.mrb[72].mxu1 %v7812_v4  ;;  %v6747_v4 = vld [vmem:[%s9137_s4 + $0x40] sm:$0xff]  }
 0x174   :  { %2871 = vmatprep.mubr.bf16.mxu1 %v7817_v5  ;;  %v7976_v5 = vld [vmem:[%s9135_s0 + $0x90] sm:$0xff]   ;;  %5799 = vmatprep.subr.bf16.mxu1 %v6747_v4  ;;  %v8032_v4 = vld [vmem:[%s9135_s0 + $0xb8] sm:$0xff]  }
 0x175   :  { %5800 = vmatpush3.bf16.msra.mxu1 %v6748_v25  ;;  %v6749_v25 = vld [vmem:[%s9137_s4 + $0x48] sm:$0xff]  }
 0x176   :  { %5801 = vmatprep.subr.bf16.mxu1 %v6749_v25  ;;  %v6751_v25 = vld [vmem:[%s9137_s4 + $0x50] sm:$0xff]  }
 0x179   :  { %1941 = vmatmul.mubr.bf16.gmra.mrb[60].mxu0 %v7960_v60 }
 0x17a   :  { %1948 = vmatprep.mubr.bf16.mxu0 %v7965_v61 }
 0x17b   :  { %2872 = vmatmul.mubr.bf16.gmra.mrb[76].mxu1 %v7834_v9  ;;  %v7993_v9 = vld [vmem:[%s9135_s0 + $0x98] sm:$0xff]  }
 0x17c   :  { %2879 = vmatprep.mubr.bf16.mxu1 %v7839_v10  ;;  %v7999_v10 = vld [vmem:[%s9135_s0 + $0xa8] sm:$0xff]  }
 0x181   :  { %1949 = vmatmul.mubr.bf16.gmra.mrb[64].mxu0 %v7976_v5 }
 0x182   :  { %1956 = vmatprep.mubr.bf16.mxu0 %v7985_v47 }
 0x183   :  { %2880 = vmatmul.mubr.bf16.gmra.mrb[80].mxu1 %v7856_v15  ;;  %v8007_v15 = vld [vmem:[%s9135_s0 + $0xa0] sm:$0xff]  }
 0x184   :  { %2887 = vmatprep.mubr.bf16.mxu1 %v7861_v16  ;;  %v8013_v16 = vld [vmem:[%s9135_s0 + $0xb0] sm:$0xff]  }
 0x189   :  { %1957 = vmatmul.mubr.bf16.gmra.mrb[68].mxu0 %v7993_v9 }
 0x18a   :  { %1964 = vmatprep.mubr.bf16.mxu0 %v7999_v10 }
 0x18b   :  { %2888 = vmatmul.mubr.bf16.gmra.mrb[84].mxu1 %v7878_v19  ;;  %v6750_v19 = vld [vmem:[%s9137_s4 + $0x8] sm:$0xff]  }
 0x18c   :  { %2895 = vmatprep.mubr.bf16.mxu1 %v7883_v21  ;;  %v8026_v21 = vld [vmem:[%s9135_s0 + $0xa8] sm:$0xff]   ;;  %5802 = vmatpush3.bf16.msra.mxu1 %v6750_v19  ;;  %v8075_v19 = vld [vmem:[%s9135_s0 + $0xd0] sm:$0xff]  }
 0x18d   :  { %5803 = vmatprep.subr.bf16.mxu1 %v6751_v25  ;;  %v6754_v25 = vld [vmem:[%s9137_s4 + $0x18] sm:$0xff]  }
 0x191   :  { %1965 = vmatmul.mubr.bf16.gmra.mrb[72].mxu0 %v8007_v15 }
 0x192   :  { %1972 = vmatprep.mubr.bf16.mxu0 %v8013_v16 }
 0x193   :  { %2896 = vmatmul.mubr.bf16.gmra.mrb[88].mxu1 %v6716_v26  ;;  %v8039_v26 = vld [vmem:[%s9135_s0 + $0xb0] sm:$0xff]  }
 0x194   :  { %2903 = vmatprep.mubr.bf16.mxu1 %v7903_v3  ;;  %v8044_v3 = vld [vmem:[%s9135_s0 + $0xc0] sm:$0xff]  }
 0x199   :  { %1973 = vmatmul.mubr.bf16.gmra.mrb[76].mxu0 %v8026_v21 }
 0x19a   :  { %1980 = vmatprep.mubr.bf16.mxu0 %v8032_v4 }
 0x19b   :  { %2904 = vmatmul.mubr.bf16.gmra.mrb[92].mxu1 %v6718_v33  ;;  %v8051_v33 = vld [vmem:[%s9135_s0 + $0xb8] sm:$0xff]  }
 0x19c   :  { %2911 = vmatprep.mubr.bf16.mxu1 %v6719_v34  ;;  %v8056_v34 = vld [vmem:[%s9135_s0 + $0xc8] sm:$0xff]  }
 0x1a1   :  { %1981 = vmatmul.mubr.bf16.gmra.mrb[80].mxu0 %v8039_v26 }
 0x1a2   :  { %1988 = vmatprep.mubr.bf16.mxu0 %v8044_v3 }
 0x1a3   :  { %2912 = vmatmul.mubr.bf16.gmra.mrb[96].mxu1 %v6720_v40  ;;  %v6752_v40 = vld [vmem:[%s9137_s4 + $0x10] sm:$0xff]  }
 0x1a4   :  { %2919 = vmatprep.mubr.bf16.mxu1 %v6722_v41  ;;  %5804 = vmatpush3.bf16.msra.mxu1 %v6752_v40  ;;  %v8070_v41 = vld [vmem:[%s9135_s0 + $0xc0] sm:$0xff]   ;;  %v6877_v40 = vld [vmem:[%s9135_s0 + $0x30] sm:$0xff]  }
 0x1a9   :  { %1989 = vmatmul.mubr.bf16.gmra.mrb[84].mxu0 %v8051_v33 }
 0x1aa   :  { %1996 = vmatprep.mubr.bf16.mxu0 %v8056_v34 }
 0x1ab   :  { %2920 = vmatmul.mubr.bf16.gmra.mrb[100].mxu1 %v6723_v48  ;;  %v8084_v48 = vld [vmem:[%s9135_s0 + $0xc8] sm:$0xff]  }
 0x1ac   :  { %2927 = vmatprep.mubr.bf16.mxu1 %v7938_v49  ;;  %v6875_v49 = vld [vmem:[%s9135_s0 + $0x20] sm:$0xff]  }
 0x1b1   :  { %1997 = vmatmul.mubr.bf16.gmra.mrb[88].mxu0 %v8070_v41 }
 0x1b2   :  { %2004 = vmatprep.mubr.bf16.mxu0 %v8075_v19 }
 0x1b3   :  { %2928 = vmatmul.mubr.bf16.gmra.mrb[104].mxu1 %v7946_v54  ;;  %v6876_v54 = vld [vmem:[%s9135_s0 + $0x28] sm:$0xff]  }
 0x1b4   :  { %2935 = vmatprep.mubr.bf16.mxu1 %v7951_v55  ;;  %v6753_v55 = vld [vmem:[%s9137_s4 + $0x58] sm:$0xff]  }
 0x1b5   :  { %5805 = vmatprep.subr.bf16.mxu1 %v6753_v55 }
 0x1b6   :  { %5806 = vmatpush3.bf16.msra.mxu1 %v6754_v25 }
 0x1b9   :  { %2005 = vmatmul.mubr.bf16.gmra.mrb[92].mxu0 %v8084_v48 }
 0x1ba   :  { %6220 = vmatprep.mubr.bf16.mxu0 %v6875_v49 }
 0x1bb   :  { %2936 = vmatmul.mubr.bf16.gmra.mrb[108].mxu1 %v7960_v60  ;;  %v6878_v60 = vld [vmem:[%s9135_s0 + $0x38] sm:$0xff]  }
 0x1bc   :  { %2943 = vmatprep.mubr.bf16.mxu1 %v7965_v61  ;;  %v6879_v61 = vld [vmem:[%s9135_s0 + $0x40] sm:$0xff]  }
 0x1c1   :  { %6221 = vmatmul.mubr.bf16.vlgmr.msra.gmra.mrb[96].mxu0 %v6876_v54 }
 0x1c2   :  { %6224 = vmatprep.mubr.bf16.mxu0 %v6877_v40  ;;  %v6882_v40 = vld [vmem:[%s9135_s0 + $0x58] sm:$0xff]  }
 0x1c3   :  { %2944 = vmatmul.mubr.bf16.gmra.mrb[112].mxu1 %v7976_v5  ;;  %v6880_v5 = vld [vmem:[%s9135_s0 + $0x48] sm:$0xff]  }
 0x1c4   :  { %2951 = vmatprep.mubr.bf16.mxu1 %v7985_v47  ;;  %v6881_v47 = vld [vmem:[%s9135_s0 + $0x50] sm:$0xff]  }
 0x1c9   :  { %6225 = vmatmul.mubr.bf16.gmra.mrb[100].mxu0 %v6878_v60 }
 0x1ca   :  { %6228 = vmatprep.mubr.bf16.mxu0 %v6879_v61 }
 0x1cb   :  { %2952 = vmatmul.mubr.bf16.gmra.mrb[116].mxu1 %v7993_v9 }
 0x1cc   :  { %2959 = vmatprep.mubr.bf16.mxu1 %v7999_v10 }
 0x1d1   :  { %6229 = vmatmul.mubr.bf16.gmra.mrb[104].mxu0 %v6880_v5 }
 0x1d2   :  { %6232 = vmatprep.mubr.bf16.mxu0 %v6881_v47  ;;  %v6757_v47 = vld [vmem:[%s9137_s4 + $0xc0] sm:$0xff]  }
 0x1d3   :  { %2960 = vmatmul.mubr.bf16.gmra.mrb[120].mxu1 %v8007_v15  ;;  %v6755_v15 = vld [vmem:[%s9137_s4 + $0x60] sm:$0xff]   ;;  %5863 = vmatprep.subr.bf16.mxu0 %v6757_v47 }
 0x1d4   :  { %v1822_v49 = vpop.f32.mrb[0].mxu0  ;;  %2967 = vmatprep.mubr.bf16.mxu1 %v8013_v16  ;;  %v6883_v16 = vld [vmem:[%s9135_s0 + $0x60] sm:$0xff]   ;;  %5807 = vmatprep.subr.bf16.mxu1 %v6755_v15 }
 0x1d5   :  { %v8123_v54 = vadd.f32 %v7645_v22, %v1822_v49  ;;  %v1824_v9 = vpop.f32.mrb[1].mxu0  ;;  %v6756_v22 = vld [vmem:[%s9137_s4 + $0x20] sm:$0xff]  }
 0x1d6   :  { %v1825_v10 = vpop.f32.mrb[2].mxu0  ;;  %5808 = vmatpush3.bf16.msra.mxu1 %v6756_v22 }
 0x1d7   :  { %v8126_v55 = vadd.f32 %v7650_v24, %v1825_v10  ;;  %v1827_v25 = vpop.f32.mrb[3].mxu0 }
 0x1d9   :  { %6233 = vmatmul.mubr.bf16.gmra.mrb[108].mxu0 %v6882_v40 }
 0x1da   :  { %6236 = vmatprep.mubr.bf16.mxu0 %v6883_v16  ;;  %v6886_v16 = vld [vmem:[%s9135_s0 + $0x78] sm:$0xff]  }
 0x1db   :  { %2968 = vmatmul.mubr.bf16.gmra.mrb[124].mxu1 %v8026_v21  ;;  %v6758_v21 = vld [vmem:[%s9137_s4 + $0x80] sm:$0xff]  }
 0x1dc   :  { %v1830_v24 = vpop.f32.mrb[4].mxu0  ;;  %2975 = vmatprep.mubr.bf16.mxu1 %v8032_v4  ;;  %v6885_v4 = vld [vmem:[%s9135_s0 + $0x70] sm:$0xff]   ;;  %5864 = vmatpush3.bf16.msra.mxu0 %v6758_v21  ;;  %v6888_v21 = vld [vmem:[%s9135_s0 + $0x88] sm:$0xff]  }
 0x1dd   :  { %v8143_v60 = vadd.f32 %v7643_v20, %v1830_v24  ;;  %v1832_v61 = vpop.f32.mrb[5].mxu0  ;;  %v6884_v20 = vld [vmem:[%s9135_s0 + $0x68] sm:$0xff]  }
 0x1de   :  { %v1833_v5 = vpop.f32.mrb[6].mxu0 }
 0x1df   :  { %v8149_v49 = vadd.f32 %v7647_v23, %v1833_v5  ;;  %v1835_v9 = vpop.f32.mrb[7].mxu0 }
 0x1e1   :  { %6237 = vmatmul.mubr.bf16.gmra.mrb[112].mxu0 %v6884_v20 }
 0x1e2   :  { %6240 = vmatprep.mubr.bf16.mxu0 %v6885_v4 }
 0x1e3   :  { %2976 = vmatmul.mubr.bf16.gmra.mrb[128].mxu1 %v8039_v26  ;;  %v6759_v26 = vld [vmem:[%s9137_s4 + $0xc8] sm:$0xff]  }
 0x1e4   :  { %v1838_v23 = vpop.f32.mrb[8].mxu0  ;;  %2983 = vmatprep.mubr.bf16.mxu1 %v8044_v3  ;;  %v6887_v3 = vld [vmem:[%s9135_s0 + $0x80] sm:$0xff]   ;;  %5865 = vmatprep.subr.bf16.mxu0 %v6759_v26 }
 0x1e5   :  { %v8163_v10 = vadd.f32 %v7670_v29, %v1838_v23  ;;  %v1840_v25 = vpop.f32.mrb[9].mxu0  ;;  %v6760_v29 = vld [vmem:[%s9137_s4 + $0x88] sm:$0xff]  }
 0x1e6   :  { %v1841_v40 = vpop.f32.mrb[10].mxu0  ;;  %5866 = vmatpush3.bf16.msra.mxu0 %v6760_v29  ;;  %v6763_v25 = vld [vmem:[%s9137_s4 + $0xd0] sm:$0xff]  }
 0x1e7   :  { %v8166_v15 = vadd.f32 %v7675_v31, %v1841_v40  ;;  %v1843_v22 = vpop.f32.mrb[11].mxu0  ;;  %5867 = vmatprep.subr.bf16.mxu0 %v6763_v25 }
 0x1e9   :  { %6241 = vmatmul.mubr.bf16.gmra.mrb[116].mxu0 %v6886_v16 }
 0x1ea   :  { %6244 = vmatprep.mubr.bf16.mxu0 %v6887_v3 }
 0x1eb   :  { %2984 = vmatmul.mubr.bf16.gmra.mrb[132].mxu1 %v8051_v33  ;;  %v6761_v33 = vld [vmem:[%s9137_s4 + $0x68] sm:$0xff]  }
 0x1ec   :  { %v1846_v31 = vpop.f32.mrb[12].mxu0  ;;  %2991 = vmatprep.mubr.bf16.mxu1 %v8056_v34  ;;  %v6889_v34 = vld [vmem:[%s9135_s0 + $0x90] sm:$0xff]   ;;  %5809 = vmatprep.subr.bf16.mxu1 %v6761_v33 }
 0x1ed   :  { %v8183_v24 = vadd.f32 %v7665_v27, %v1846_v31  ;;  %v1848_v61 = vpop.f32.mrb[13].mxu0  ;;  %v6762_v27 = vld [vmem:[%s9137_s4 + $0x28] sm:$0xff]  }
 0x1ee   :  { %v1849_v5 = vpop.f32.mrb[14].mxu0  ;;  %5810 = vmatpush3.bf16.msra.mxu1 %v6762_v27  ;;  %v6892_v61 = vld [vmem:[%s9135_s0 + $0xa8] sm:$0xff]  }
 0x1ef   :  { %v8186_v47 = vadd.f32 %v7672_v30, %v1849_v5  ;;  %v1851_v9 = vpop.f32.mrb[15].mxu0  ;;  %v6765_v5 = vld [vmem:[%s9137_s4 + $0xd8] sm:$0xff]  }
 0x1f1   :  { %6245 = vmatmul.mubr.bf16.gmra.mrb[120].mxu0 %v6888_v21 }
 0x1f2   :  { %6248 = vmatprep.mubr.bf16.mxu0 %v6889_v34 }
 0x1f3   :  { %2992 = vmatmul.mubr.bf16.gmra.mrb[136].mxu1 %v8070_v41  ;;  %v6764_v41 = vld [vmem:[%s9137_s4 + $0x90] sm:$0xff]  }
 0x1f4   :  { %v1854_v30 = vpop.f32.mrb[16].mxu0  ;;  %2999 = vmatprep.mubr.bf16.mxu1 %v8075_v19  ;;  %v6891_v19 = vld [vmem:[%s9135_s0 + $0xa0] sm:$0xff]   ;;  %5868 = vmatpush3.bf16.msra.mxu0 %v6764_v41 }
 0x1f5   :  { %v8203_v20 = vadd.f32 %v7696_v36, %v1854_v30  ;;  %v1856_v4 = vpop.f32.mrb[17].mxu0  ;;  %v6890_v36 = vld [vmem:[%s9135_s0 + $0x98] sm:$0xff]   ;;  %5869 = vmatprep.subr.bf16.mxu0 %v6765_v5 }
 0x1f6   :  { %v1857_v23 = vpop.f32.mrb[18].mxu0  ;;  %v6894_v30 = vld [vmem:[%s9135_s0 + $0xb8] sm:$0xff]   ;;  %v6767_v4 = vld [vmem:[%s9137_s4 + $0x70] sm:$0xff]  }
 0x1f7   :  { %v8209_v40 = vadd.f32 %v7704_v38, %v1857_v23  ;;  %v1859_v22 = vpop.f32.mrb[19].mxu0  ;;  %v6895_v23 = vld [vmem:[%s9135_s0 + $0xc0] sm:$0xff]   ;;  %5811 = vmatprep.subr.bf16.mxu1 %v6767_v4 }
 0x1f9   :  { %6249 = vmatmul.mubr.bf16.gmra.mrb[124].mxu0 %v6890_v36  ;;  %v6769_v36 = vld [vmem:[%s9137_s4 + $0xe0] sm:$0xff]  }
 0x1fa   :  { %6252 = vmatprep.mubr.bf16.mxu0 %v6891_v19 }
 0x1fb   :  { %3000 = vmatmul.mubr.bf16.gmra.mrb[140].mxu1 %v8084_v48  ;;  %v6893_v48 = vld [vmem:[%s9135_s0 + $0xb0] sm:$0xff]  }
 0x1fc   :  { %v1862_v38 = vpop.f32.mrb[20].mxu0 }
 0x1fd   :  { %v8222_v16 = vadd.f32 %v7694_v35, %v1862_v38  ;;  %v1864_v26 = vpop.f32.mrb[21].mxu0  ;;  %v6766_v35 = vld [vmem:[%s9137_s4 + $0x98] sm:$0xff]  }
 0x1fe   :  { %v1865_v29 = vpop.f32.mrb[22].mxu0  ;;  %5870 = vmatpush3.bf16.msra.mxu0 %v6766_v35  ;;  %v6770_v26 = vld [vmem:[%s9137_s4 + $0xa0] sm:$0xff]  }
 0x1ff   :  { %v8225_v3 = vadd.f32 %v7701_v37, %v1865_v29  ;;  %v1867_v31 = vpop.f32.mrb[23].mxu0  ;;  %5871 = vmatprep.subr.bf16.mxu0 %v6769_v36  ;;  %v6897_v29 = vld [vmem:[%s9135_s0 + $0xd0] sm:$0xff]  }
 0x201   :  { %6253 = vmatmul.mubr.bf16.gmra.mrb[128].mxu0 %v6892_v61 }
 0x202   :  { %6256 = vmatprep.mubr.bf16.mxu0 %v6893_v48  ;;  %5872 = vmatpush3.bf16.msra.mxu0 %v6770_v26  ;;  %v6771_v26 = vld [vmem:[%s9137_s4 + $0xe8] sm:$0xff]  }
 0x203   :  { %5873 = vmatprep.subr.bf16.mxu0 %v6771_v26  ;;  %v6776_v26 = vld [vmem:[%s9137_s4 + $0xb0] sm:$0xff]  }
 0x204   :  { %v1870_v37 = vpop.f32.mrb[24].mxu0 }
 0x205   :  { %v8240_v9 = vadd.f32 %v7724_v43, %v1870_v37  ;;  %v1872_v21 = vpop.f32.mrb[25].mxu0  ;;  %v6768_v43 = vld [vmem:[%s9137_s4 + $0x30] sm:$0xff]  }
 0x206   :  { %v1873_v33 = vpop.f32.mrb[26].mxu0  ;;  %5812 = vmatpush3.bf16.msra.mxu1 %v6768_v43 }
 0x207   :  { %v8243_v27 = vadd.f32 %v7732_v46, %v1873_v33  ;;  %v1875_v34 = vpop.f32.mrb[27].mxu0 }
 0x209   :  { %6257 = vmatmul.mubr.bf16.gmra.mrb[132].mxu0 %v6894_v30  ;;  %v6898_v30 = vld [vmem:[%s9135_s0 + $0xd8] sm:$0xff]  }
 0x20a   :  { %6260 = vmatprep.mubr.bf16.mxu0 %v6895_v23 }
 0x20c   :  { %v1878_v46 = vpop.f32.mrb[28].mxu0 }
 0x20d   :  { %v8258_v25 = vadd.f32 %v7722_v42, %v1878_v46  ;;  %v1880_v22 = vpop.f32.mrb[29].mxu0  ;;  %v6896_v42 = vld [vmem:[%s9135_s0 + $0xc8] sm:$0xff]  }
 0x20e   :  { %v1881_v41 = vpop.f32.mrb[30].mxu0 }
 0x20f   :  { %v8264_v19 = vadd.f32 %v7729_v45, %v1881_v41  ;;  %v1883_v38 = vpop.f32.mrb[31].mxu0 }
 0x211   :  { %6261 = vmatmul.mubr.bf16.gmra.mrb[136].mxu0 %v6896_v42 }
 0x212   :  { %6264 = vmatprep.mubr.bf16.mxu0 %v6897_v29 }
 0x214   :  { %v1886_v31 = vpop.f32.mrb[32].mxu0 }
 0x215   :  { %v8276_v45 = vadd.f32 %v7752_v51, %v1886_v31  ;;  %v1888_v61 = vpop.f32.mrb[33].mxu0 }
 0x216   :  { %v8278_v5 = vpop.f32.mrb[48].mxu1  ;;  %v1889_v35 = vpop.f32.mrb[34].mxu0 }
 0x217   :  { %v8281_v48 = vadd.f32 %v7757_v53, %v1889_v35  ;;  %v2819_v37 = vpop.f32.mrb[49].mxu1  ;;  %v1891_v21 = vpop.f32.mrb[35].mxu0 }
 0x218   :  { %v8283_v33 = vpop.f32.mrb[50].mxu1 }
 0x219   :  { %v2822_v34 = vpop.f32.mrb[51].mxu1  ;;  %6265 = vmatmul.mubr.bf16.gmra.mrb[140].mxu0 %v6898_v30  ;;  %v6773_v30 = vld [vmem:[%s9137_s4 + $0x78] sm:$0xff]  }
 0x21a   :  { %5813 = vmatprep.subr.bf16.mxu1 %v6773_v30 }
 0x21c   :  { %v1894_v4 = vpop.f32.mrb[36].mxu0 }
 0x21d   :  { %v8289_v51 = vadd.f32 %v7750_v50, %v1894_v4  ;;  %v1896_v43 = vpop.f32.mrb[37].mxu0  ;;  %v6772_v50 = vld [vmem:[%s9137_s4 + $0xa8] sm:$0xff]  }
 0x21e   :  { %v8291_v23 = vpop.f32.mrb[52].mxu1  ;;  %v1897_v46 = vpop.f32.mrb[38].mxu0  ;;  %5874 = vmatpush3.bf16.msra.mxu0 %v6772_v50 }
 0x21f   :  { %v8294_v53 = vadd.f32 %v7754_v52, %v1897_v46  ;;  %v2827_v22 = vpop.f32.mrb[53].mxu1  ;;  %v1899_v41 = vpop.f32.mrb[39].mxu0 }
 0x220   :  { %v8296_v36 = vpop.f32.mrb[54].mxu1 }
 0x221   :  { %v2830_v38 = vpop.f32.mrb[55].mxu1 }
 0x222   :  { %v6775_v38 = vld [vmem:[%s9137_s4 + $0xf0] sm:$0xff]  }
 0x223   :  { %5875 = vmatprep.subr.bf16.mxu0 %v6775_v38  ;;  %v6777_v38 = vld [vmem:[%s9137_s4 + $0xf8] sm:$0xff]  }
 0x224   :  { %v1902_v42 = vpop.f32.mrb[40].mxu0  ;;  %5876 = vmatpush3.bf16.msra.mxu0 %v6776_v26 }
 0x225   :  { %v8305_v29 = vadd.f32 %v7774_v57, %v1902_v42  ;;  %v1904_v52 = vpop.f32.mrb[41].mxu0  ;;  %v6774_v57 = vld [vmem:[%s9137_s4 + $0x38] sm:$0xff]   ;;  %5877 = vmatprep.subr.bf16.mxu0 %v6777_v38  ;;  %v8365_v38 = vld [vmem:[%s9137_s4 + $0x100] sm:$0xff]  }
 0x226   :  { %v8307_v31 = vpop.f32.mrb[56].mxu1  ;;  %v1905_v61 = vpop.f32.mrb[42].mxu0  ;;  %5814 = vmatpush3.bf16.msra.mxu1 %v6774_v57 }
 0x227   :  { %9152 = vst [vmem:[#allocation11_spill] sm:$0xff] %v8305_v29  ;;  %v8310_v35 = vadd.f32 %v7779_v59, %v1905_v61  ;;  %v2835_v37 = vpop.f32.mrb[57].mxu1  ;;  %v1907_v21 = vpop.f32.mrb[43].mxu0  ;;  %6268 = vmatprep.subr.bf16.mxu1 %v8365_v38 }
 0x228   :  { %v8312_v34 = vpop.f32.mrb[58].mxu1 }
 0x229   :  { %9153 = vst [vmem:[#allocation12_spill] sm:$0xff] %v8310_v35  ;;  %v2838_v4 = vpop.f32.mrb[59].mxu1 }
 0x22c   :  { %v1910_v43 = vpop.f32.mrb[44].mxu0 }
 0x22d   :  { %v8321_v46 = vadd.f32 %v7772_v56, %v1910_v43  ;;  %v1912_v59 = vpop.f32.mrb[45].mxu0 }
 0x22e   :  { %v8323_v22 = vpop.f32.mrb[60].mxu1  ;;  %v1913_v41 = vpop.f32.mrb[46].mxu0 }
 0x22f   :  { %v8332_v50 = vadd.f32 %v7776_v58, %v1913_v41  ;;  %v2843_v42 = vpop.f32.mrb[61].mxu1  ;;  %v1915_v52 = vpop.f32.mrb[47].mxu0 }
 0x230   :  { %v8334_v61 = vpop.f32.mrb[62].mxu1 }
 0x231   :  { %9154 = vst [vmem:[#allocation13_spill] sm:$0xff] %v8332_v50  ;;  %v2846_v56 = vpop.f32.mrb[63].mxu1 }
 0x234   :  { %v1918_v37 = vpop.f32.mrb[48].mxu0 }
 0x235   :  { %v8337_v21 = vadd.f32 %v7796_v63, %v1918_v37  ;;  %v1920_v30 = vpop.f32.mrb[49].mxu0  ;;  %v6778_v63 = vld [vmem:[%s9137_s4 + $0xb8] sm:$0xff]  }
 0x236   :  { %v8339_v57 = vpop.f32.mrb[64].mxu1  ;;  %v1921_v4 = vpop.f32.mrb[50].mxu0  ;;  %5878 = vmatpush3.bf16.msra.mxu0 %v6778_v63 }
 0x237   :  { %9155 = vst [vmem:[#allocation14_spill] sm:$0xff] %v8337_v21  ;;  %v8342_v43 = vadd.f32 %v7801_v2, %v1921_v4  ;;  %v2851_v58 = vpop.f32.mrb[65].mxu1  ;;  %v1923_v59 = vpop.f32.mrb[51].mxu0 }
 0x238   :  { %v8344_v41 = vpop.f32.mrb[66].mxu1 }
 0x239   :  { %9156 = vst [vmem:[#allocation15_spill] sm:$0xff] %v8342_v43  ;;  %v2854_v26 = vpop.f32.mrb[67].mxu1  ;;  %v6780_v43 = vld [vmem:[%s9138_s5 + $0x40] sm:$0xff]  }
 0x23a   :  { %5943 = vmatprep.subr.bf16.mxu0 %v6780_v43 }
 0x23c   :  { %v1926_v42 = vpop.f32.mrb[52].mxu0 }
 0x23d   :  { %v8353_v52 = vadd.f32 %v7794_v62, %v1926_v42  ;;  %v1928_v2 = vpop.f32.mrb[53].mxu0 }
 0x23e   :  { %v8355_v56 = vpop.f32.mrb[68].mxu1  ;;  %v1929_v37 = vpop.f32.mrb[54].mxu0 }
 0x23f   :  { %9157 = vst [vmem:[#allocation16_spill] sm:$0xff] %v8353_v52  ;;  %v8358_v30 = vadd.f32 %v7798_v1, %v1929_v37  ;;  %v2859_v4 = vpop.f32.mrb[69].mxu1  ;;  %v1931_v58 = vpop.f32.mrb[55].mxu0 }
 0x240   :  { %v8360_v59 = vpop.f32.mrb[70].mxu1 }
 0x241   :  { %9158 = vst [vmem:[#allocation17_spill] sm:$0xff] %v8358_v30  ;;  %v2862_v26 = vpop.f32.mrb[71].mxu1 }
 0x244   :  { %v1934_v63 = vpop.f32.mrb[56].mxu0 }
 0x245   :  { %v8369_v62 = vadd.f32 %v7821_v7, %v1934_v63  ;;  %v1936_v42 = vpop.f32.mrb[57].mxu0 }
 0x246   :  { %v8371_v2 = vpop.f32.mrb[72].mxu1  ;;  %v1937_v1 = vpop.f32.mrb[58].mxu0 }
 0x247   :  { %9159 = vst [vmem:[#allocation18_spill] sm:$0xff] %v8369_v62  ;;  %v8374_v37 = vadd.f32 %v7826_v8, %v1937_v1  ;;  %v2867_v4 = vpop.f32.mrb[73].mxu1  ;;  %v1939_v58 = vpop.f32.mrb[59].mxu0 }
 0x248   :  { %v8376_v26 = vpop.f32.mrb[74].mxu1 }
 0x249   :  { %9160 = vst [vmem:[#allocation19_spill] sm:$0xff] %v8374_v37  ;;  %v2870_v30 = vpop.f32.mrb[75].mxu1 }
 0x24c   :  { %v1942_v21 = vpop.f32.mrb[60].mxu0 }
 0x24d   :  { %v8382_v7 = vadd.f32 %v7819_v6, %v1942_v21  ;;  %v1944_v63 = vpop.f32.mrb[61].mxu0 }
 0x24e   :  { %v8384_v42 = vpop.f32.mrb[76].mxu1  ;;  %v1945_v62 = vpop.f32.mrb[62].mxu0 }
 0x24f   :  { %9161 = vst [vmem:[#allocation20_spill] sm:$0xff] %v8382_v7  ;;  %v8387_v8 = vadd.f32 %v7823_v0, %v1945_v62  ;;  %v2875_v1 = vpop.f32.mrb[77].mxu1  ;;  %v1947_v4 = vpop.f32.mrb[63].mxu0 }
 0x250   :  { %v8389_v58 = vpop.f32.mrb[78].mxu1 }
 0x251   :  { %9162 = vst [vmem:[#allocation21_spill] sm:$0xff] %v8387_v8  ;;  %v2878_v37 = vpop.f32.mrb[79].mxu1 }
 0x254   :  { %v1950_v52 = vpop.f32.mrb[64].mxu0 }
 0x255   :  { %v8392_v30 = vadd.f32 %v7843_v12, %v1950_v52  ;;  %v1952_v43 = vpop.f32.mrb[65].mxu0 }
 0x256   :  { %v8394_v35 = vpop.f32.mrb[80].mxu1  ;;  %v1953_v6 = vpop.f32.mrb[66].mxu0 }
 0x257   :  { %9163 = vst [vmem:[#allocation22_spill] sm:$0xff] %v8392_v30  ;;  %v8397_v21 = vadd.f32 %v7848_v14, %v1953_v6  ;;  %v2883_v63 = vpop.f32.mrb[81].mxu1  ;;  %v1955_v7 = vpop.f32.mrb[67].mxu0 }
 0x258   :  { %v8399_v0 = vpop.f32.mrb[82].mxu1 }
 0x259   :  { %9164 = vst [vmem:[#allocation23_spill] sm:$0xff] %v8397_v21  ;;  %v2886_v62 = vpop.f32.mrb[83].mxu1 }
 0x25c   :  { %v1958_v1 = vpop.f32.mrb[68].mxu0 }
 0x25d   :  { %v8402_v4 = vadd.f32 %v7841_v11, %v1958_v1  ;;  %v1960_v37 = vpop.f32.mrb[69].mxu0 }
 0x25e   :  { %v8404_v8 = vpop.f32.mrb[84].mxu1  ;;  %v1961_v12 = vpop.f32.mrb[70].mxu0 }
 0x25f   :  { %9165 = vst [vmem:[#allocation24_spill] sm:$0xff] %v8402_v4  ;;  %v8407_v52 = vadd.f32 %v7845_v13, %v1961_v12  ;;  %v2891_v43 = vpop.f32.mrb[85].mxu1  ;;  %v1963_v30 = vpop.f32.mrb[71].mxu0 }
 0x260   :  { %v8409_v14 = vpop.f32.mrb[86].mxu1 }
 0x261   :  { %9166 = vst [vmem:[#allocation25_spill] sm:$0xff] %v8407_v52  ;;  %v2894_v6 = vpop.f32.mrb[87].mxu1 }
 0x264   :  { %v1966_v7 = vpop.f32.mrb[72].mxu0 }
 0x265   :  { %v8412_v63 = vadd.f32 %v7865_v28, %v1966_v7  ;;  %v1968_v62 = vpop.f32.mrb[73].mxu0 }
 0x266   :  { %v8414_v21 = vpop.f32.mrb[88].mxu1  ;;  %v1969_v11 = vpop.f32.mrb[74].mxu0 }
 0x267   :  { %9167 = vst [vmem:[#allocation26_spill] sm:$0xff] %v8412_v63  ;;  %v8417_v1 = vadd.f32 %v7870_v18, %v1969_v11  ;;  %v2899_v37 = vpop.f32.mrb[89].mxu1  ;;  %v1971_v4 = vpop.f32.mrb[75].mxu0 }
 0x268   :  { %v8419_v13 = vpop.f32.mrb[90].mxu1  ;;  %v9172_v37 = vld [vmem:[#allocation6_spill] sm:$0xff] }
 0x269   :  { %9168 = vst [vmem:[#allocation27_spill] sm:$0xff] %v8417_v1  ;;  %9169 = vst [vmem:[#allocation28_spill] sm:$0xff] %v8419_v13  ;;  %v2902_v12 = vpop.f32.mrb[91].mxu1 }
 0x26c   :  { %v1974_v30 = vpop.f32.mrb[76].mxu0 }
 0x26d   :  { %v8422_v43 = vadd.f32 %v7863_v17, %v1974_v30  ;;  %v1976_v6 = vpop.f32.mrb[77].mxu0  ;;  %v9175_v30 = vld [vmem:[#allocation8_spill] sm:$0xff] }
 0x26e   :  { %v8424_v52 = vpop.f32.mrb[92].mxu1  ;;  %v1977_v28 = vpop.f32.mrb[78].mxu0 }
 0x26f   :  { %9170 = vst [vmem:[#allocation29_spill] sm:$0xff] %v8422_v43  ;;  %v8427_v7 = vadd.f32 %v7867_v32, %v1977_v28  ;;  %v2907_v62 = vpop.f32.mrb[93].mxu1  ;;  %v1979_v63 = vpop.f32.mrb[79].mxu0 }
 0x270   :  { %v8429_v18 = vpop.f32.mrb[94].mxu1  ;;  %v9178_v62 = vld [vmem:[#allocation5_spill] sm:$0xff] }
 0x271   :  { %9171 = vst [vmem:[#allocation30_spill] sm:$0xff] %v8427_v7  ;;  %v2910_v11 = vpop.f32.mrb[95].mxu1 }
 0x274   :  { %v1982_v4 = vpop.f32.mrb[80].mxu0 }
 0x275   :  { %v8432_v1 = vadd.f32 %v9172_v37, %v1982_v4  ;;  %v1984_v12 = vpop.f32.mrb[81].mxu0  ;;  %v9180_v37 = vld [vmem:[#allocation7_spill] sm:$0xff] }
 0x276   :  { %v8434_v50 = vpop.f32.mrb[96].mxu1  ;;  %v1985_v17 = vpop.f32.mrb[82].mxu0 }
 0x277   :  { %9173 = vst [vmem:[#allocation6_spill] sm:$0xff] %v8432_v1  ;;  %9174 = vst [vmem:[#allocation31_spill] sm:$0xff] %v8434_v50  ;;  %v8437_v6 = vadd.f32 %v9175_v30, %v1985_v17  ;;  %v2915_v43 = vpop.f32.mrb[97].mxu1  ;;  %v1987_v13 = vpop.f32.mrb[83].mxu0 }
 0x278   :  { %v8439_v32 = vpop.f32.mrb[98].mxu1 }
 0x279   :  { %9176 = vst [vmem:[#allocation8_spill] sm:$0xff] %v8437_v6  ;;  %9177 = vst [vmem:[#allocation32_spill] sm:$0xff] %v8439_v32  ;;  %v2918_v28 = vpop.f32.mrb[99].mxu1 }
 0x27c   :  { %v1990_v63 = vpop.f32.mrb[84].mxu0 }
 0x27d   :  { %v8442_v7 = vadd.f32 %v9178_v62, %v1990_v63  ;;  %v1992_v11 = vpop.f32.mrb[85].mxu0 }
 0x27e   :  { %v8444_v29 = vpop.f32.mrb[100].mxu1  ;;  %v1993_v4 = vpop.f32.mrb[86].mxu0 }
 0x27f   :  { %9179 = vst [vmem:[#allocation5_spill] sm:$0xff] %v8442_v7  ;;  %v8447_v12 = vadd.f32 %v9180_v37, %v1993_v4  ;;  %v2923_v1 = vpop.f32.mrb[101].mxu1  ;;  %v1995_v50 = vpop.f32.mrb[87].mxu0  ;;  %v9185_v37 = vld [vmem:[#allocation9_spill] sm:$0xff] }
 0x280   :  { %v8449_v17 = vpop.f32.mrb[102].mxu1 }
 0x281   :  { %9181 = vst [vmem:[#allocation7_spill] sm:$0xff] %v8447_v12  ;;  %v2926_v43 = vpop.f32.mrb[103].mxu1 }
 0x284   :  { %v1998_v13 = vpop.f32.mrb[88].mxu0 }
 0x285   :  { %v8452_v30 = vadd.f32 %v7907_v39, %v1998_v13  ;;  %v2000_v28 = vpop.f32.mrb[89].mxu0  ;;  %v9187_v13 = vld [vmem:[#allocation10_spill] sm:$0xff] }
 0x286   :  { %v8454_v6 = vpop.f32.mrb[104].mxu1  ;;  %v2001_v63 = vpop.f32.mrb[90].mxu0 }
 0x287   :  { %9182 = vst [vmem:[#allocation33_spill] sm:$0xff] %v8452_v30  ;;  %9183 = vst [vmem:[#allocation34_spill] sm:$0xff] %v8454_v6  ;;  %v8457_v62 = vadd.f32 %v7911_v44, %v2001_v63  ;;  %v2931_v11 = vpop.f32.mrb[105].mxu1  ;;  %v2003_v7 = vpop.f32.mrb[91].mxu0 }
 0x288   :  { %v8459_v4 = vpop.f32.mrb[106].mxu1 }
 0x289   :  { %9184 = vst [vmem:[#allocation35_spill] sm:$0xff] %v8457_v62  ;;  %v2934_v1 = vpop.f32.mrb[107].mxu1 }
 0x28c   :  { %v2006_v50 = vpop.f32.mrb[92].mxu0 }
 0x28d   :  { %v8462_v12 = vadd.f32 %v9185_v37, %v2006_v50  ;;  %v2008_v43 = vpop.f32.mrb[93].mxu0 }
 0x28e   :  { %v8464_v32 = vpop.f32.mrb[108].mxu1  ;;  %v2009_v39 = vpop.f32.mrb[94].mxu0 }
 0x28f   :  { %9186 = vst [vmem:[#allocation9_spill] sm:$0xff] %v8462_v12  ;;  %v8467_v28 = vadd.f32 %v9187_v13, %v2009_v39  ;;  %v2939_v30 = vpop.f32.mrb[109].mxu1  ;;  %v2011_v6 = vpop.f32.mrb[95].mxu0 }
 0x290   :  { %v8469_v44 = vpop.f32.mrb[110].mxu1 }
 0x291   :  { %9188 = vst [vmem:[#allocation10_spill] sm:$0xff] %v8467_v28  ;;  %v2942_v63 = vpop.f32.mrb[111].mxu1 }
 0x294   :  { %v6222_v7 = vpop.f32.mrb[96].mxu0 }
 0x295   :  { %v3051_v11 = vadd.f32 %v6222_v7, %v8291_v23  ;;  %v3042_v1 = vpop.f32.mrb[97].mxu0  ;;  %v8484_v23 = vld [vmem:[%s9139_s3] ss:$0 sm:$0xff] }
 0x296   :  { %v8472_v62 = vpop.f32.mrb[112].mxu1  ;;  %v3043_v50 = vadd.f32 %v3042_v1, %v8278_v5  ;;  %v6223_v37 = vpop.f32.mrb[98].mxu0 }
 0x297   :  { %v3235_v43 = vmax.f32 %v8143_v60, %v3051_v11  ;;  %v2947_v12 = vpop.f32.mrb[113].mxu1  ;;  %v3054_v39 = vadd.f32 %v6223_v37, %v8296_v36  ;;  %v3045_v13 = vpop.f32.mrb[99].mxu0 }
 0x298   :  { %v3233_v6 = vmax.f32 %v8123_v54, %v3043_v50  ;;  %v8478_v30 = vpop.f32.mrb[114].mxu1  ;;  %v3046_v63 = vadd.f32 %v3045_v13, %v8283_v33 }
 0x299   :  { %v3236_v5 = vmax.f32 %v8149_v49, %v3054_v39  ;;  %v2950_v7 = vpop.f32.mrb[115].mxu1 }
 0x29a   :  { %v3281_v1 = vmax.f32 %v3233_v6, %v3235_v43  ;;  %v3234_v60 = vmax.f32 %v8126_v55, %v3046_v63 }
 0x29c   :  { %v3312_v36 = vadd.f32 %v8484_v23, %v3281_v1  ;;  %v3282_v12 = vmax.f32 %v3234_v60, %v3236_v5  ;;  %v6226_v11 = vpop.f32.mrb[100].mxu0 }
 0x29d   :  { %v3067_v54 = vadd.f32 %v6226_v11, %v8323_v22  ;;  %v3058_v50 = vpop.f32.mrb[101].mxu0 }
 0x29e   :  { %v3313_v33 = vadd.f32 %v8484_v23, %v3282_v12  ;;  %v8491_v37 = vpop.f32.mrb[116].mxu1  ;;  %v3059_v13 = vadd.f32 %v3058_v50, %v8307_v31  ;;  %v6227_v28 = vpop.f32.mrb[102].mxu0  ;;  %v3336_v6 = vmax.f32 %v3312_v36, 0.0 }
 0x29f   :  { %v3239_v49 = vmax.f32 %v8183_v24, %v3067_v54  ;;  %v2955_v39 = vpop.f32.mrb[117].mxu1  ;;  %v3070_v43 = vadd.f32 %v6227_v28, %v8334_v61  ;;  %v3061_v55 = vpop.f32.mrb[103].mxu0 }
 0x2a0   :  { %v3337_v63 = vmax.f32 %v3313_v33, 0.0  ;;  %v3237_v5 = vmax.f32 %v8163_v10, %v3059_v13  ;;  %v8497_v7 = vpop.f32.mrb[118].mxu1  ;;  %v3062_v22 = vadd.f32 %v3061_v55, %v8312_v34 }
 0x2a1   :  { %v3240_v1 = vmax.f32 %v8186_v47, %v3070_v43  ;;  %v2958_v60 = vpop.f32.mrb[119].mxu1 }
 0x2a2   :  { %v8501_v12 = vpack.c.bf16 %v3337_v63, %v3336_v6  ;;  %v3283_v31 = vmax.f32 %v3237_v5, %v3239_v49  ;;  %v3238_v24 = vmax.f32 %v8166_v15, %v3062_v22 }
 0x2a4   :  { %v3314_v11 = vadd.f32 %v8484_v23, %v3283_v31  ;;  %v3284_v61 = vmax.f32 %v3238_v24, %v3240_v1  ;;  %v6230_v28 = vpop.f32.mrb[104].mxu0 }
 0x2a5   :  { %v3083_v36 = vadd.f32 %v6230_v28, %v8355_v56  ;;  %v3074_v54 = vpop.f32.mrb[105].mxu0 }
 0x2a6   :  { %v3315_v10 = vadd.f32 %v8484_v23, %v3284_v61  ;;  %v8507_v50 = vpop.f32.mrb[120].mxu1  ;;  %v3075_v34 = vadd.f32 %v3074_v54, %v8339_v57  ;;  %v6231_v47 = vpop.f32.mrb[106].mxu0  ;;  %v3338_v39 = vmax.f32 %v3314_v11, 0.0 }
 0x2a7   :  { %v3243_v33 = vmax.f32 %v8222_v16, %v3083_v36  ;;  %v2963_v13 = vpop.f32.mrb[121].mxu1  ;;  %v3086_v49 = vadd.f32 %v6231_v47, %v8360_v59  ;;  %v3077_v15 = vpop.f32.mrb[107].mxu0  ;;  %v6782_v16 = vld [vmem:[%s9137_s4 + $0x108] sm:$0xff]  }
 0x2a8   :  { %v3339_v43 = vmax.f32 %v3315_v10, 0.0  ;;  %v3241_v55 = vmax.f32 %v8203_v20, %v3075_v34  ;;  %v8513_v6 = vpop.f32.mrb[122].mxu1  ;;  %v3078_v56 = vadd.f32 %v3077_v15, %v8344_v41  ;;  %v6788_v15 = vld [vmem:[%s9137_s4 + $0x118] sm:$0xff]  }
 0x2a9   :  { %v3244_v63 = vmax.f32 %v8225_v3, %v3086_v49  ;;  %v2966_v5 = vpop.f32.mrb[123].mxu1 }
 0x2aa   :  { %v3285_v22 = vmax.f32 %v3241_v55, %v3243_v33  ;;  %v3242_v57 = vmax.f32 %v8209_v40, %v3078_v56  ;;  %v8518_v1 = vpack.c.bf16 %v3339_v43, %v3338_v39 }
 0x2ac   :  { %v3316_v59 = vadd.f32 %v8484_v23, %v3285_v22  ;;  %v3286_v60 = vmax.f32 %v3242_v57, %v3244_v63  ;;  %v6234_v20 = vpop.f32.mrb[108].mxu0  ;;  %3804 = vmatprep.mubr.bf16.mxu1 %v8518_v1 }
 0x2ad   :  { %v3099_v41 = vadd.f32 %v6234_v20, %v8384_v42  ;;  %v3090_v31 = vpop.f32.mrb[109].mxu0  ;;  %3805 = vmatmul.mubr.bf16.vlgmr.msra.gmra.mrb[144].mxu1 %v8501_v12  ;;  %v6785_v42 = vld [vmem:[%s9137_s4 + $0x110] sm:$0xff]  }
 0x2ae   :  { %v3317_v3 = vadd.f32 %v8484_v23, %v3286_v60  ;;  %v8528_v40 = vpop.f32.mrb[124].mxu1  ;;  %v3091_v24 = vadd.f32 %v3090_v31, %v8371_v2  ;;  %v6235_v11 = vpop.f32.mrb[110].mxu0  ;;  %6269 = vmatpush3.bf16.msra.mxu1 %v8365_v38  ;;  %v3340_v10 = vmax.f32 %v3316_v59, 0.0 }
 0x2af   :  { %v3247_v61 = vmax.f32 %v8258_v25, %v3099_v41  ;;  %v2971_v28 = vpop.f32.mrb[125].mxu1  ;;  %v3102_v36 = vadd.f32 %v6235_v11, %v8389_v58  ;;  %v3093_v54 = vpop.f32.mrb[111].mxu0  ;;  %6270 = vmatprep.subr.bf16.mxu1 %v6782_v16  ;;  %v6781_v11 = vld [vmem:[%s9138_s5] sm:$0xff]  }
 0x2b0   :  { %v3341_v34 = vmax.f32 %v3317_v3, 0.0  ;;  %v3245_v47 = vmax.f32 %v8240_v9, %v3091_v24  ;;  %v8538_v33 = vpop.f32.mrb[126].mxu1  ;;  %v3094_v2 = vadd.f32 %v3093_v54, %v8376_v26 }
 0x2b1   :  { %v3248_v38 = vmax.f32 %v8264_v19, %v3102_v36  ;;  %v2974_v25 = vpop.f32.mrb[127].mxu1 }
 0x2b2   :  { %v8542_v13 = vpack.c.bf16 %v3341_v34, %v3340_v10  ;;  %v3287_v58 = vmax.f32 %v3245_v47, %v3247_v61  ;;  %v3246_v49 = vmax.f32 %v8243_v27, %v3094_v2  ;;  %6271 = vmatpush3.bf16.msra.mxu1 %v6782_v16  ;;  %v6784_v47 = vld [vmem:[%s9138_s5 + $0x8] sm:$0xff]  }
 0x2b3   :  { %6272 = vmatprep.subr.bf16.mxu1 %v6785_v42 }
 0x2b4   :  { %v3318_v9 = vadd.f32 %v8484_v23, %v3287_v58  ;;  %v3288_v39 = vmax.f32 %v3246_v49, %v3248_v38  ;;  %v6238_v43 = vpop.f32.mrb[112].mxu0  ;;  %3812 = vmatprep.mubr.bf16.mxu1 %v8542_v13  ;;  %v6786_v58 = vld [vmem:[%s9138_s5 + $0x50] sm:$0xff]  }
 0x2b5   :  { %v3115_v19 = vadd.f32 %v6238_v43, %v8404_v8  ;;  %v3106_v26 = vpop.f32.mrb[113].mxu0  ;;  %3813 = vmatmul.mubr.bf16.gmra.mrb[148].mxu1 %v8518_v1  ;;  %v6791_v8 = vld [vmem:[%s9137_s4 + $0x120] sm:$0xff]  }
 0x2b6   :  { %v3319_v55 = vadd.f32 %v8484_v23, %v3288_v39  ;;  %v8553_v27 = vpop.f32.mrb[128].mxu1  ;;  %v3107_v56 = vadd.f32 %v3106_v26, %v8394_v35  ;;  %v6239_v63 = vpop.f32.mrb[114].mxu0  ;;  %6273 = vmatpush3.bf16.msra.mxu1 %v6785_v42  ;;  %v3342_v59 = vmax.f32 %v3318_v9, 0.0  ;;  %v9189_v9 = vld [vmem:[#allocation11_spill] sm:$0xff] }
 0x2b7   :  { %v3251_v5 = vmax.f32 %v8289_v51, %v3115_v19  ;;  %v2979_v22 = vpop.f32.mrb[129].mxu1  ;;  %v3118_v57 = vadd.f32 %v6239_v63, %v8409_v14  ;;  %v3109_v16 = vpop.f32.mrb[115].mxu0  ;;  %6274 = vmatprep.subr.bf16.mxu1 %v6788_v15 }
 0x2b8   :  { %v3343_v60 = vmax.f32 %v3319_v55, 0.0  ;;  %v3249_v20 = vmax.f32 %v8276_v45, %v3107_v56  ;;  %v8562_v41 = vpop.f32.mrb[130].mxu1  ;;  %v3110_v35 = vadd.f32 %v3109_v16, %v8399_v0  ;;  %v6783_v45 = vld [vmem:[%s9138_s5 + $0x48] sm:$0xff]   ;;  %v6789_v16 = vld [vmem:[%s9138_s5 + $0x58] sm:$0xff]  }
 0x2b9   :  { %v3252_v31 = vmax.f32 %v8294_v53, %v3118_v57  ;;  %v2982_v51 = vpop.f32.mrb[131].mxu1  ;;  %v6794_v53 = vld [vmem:[%s9137_s4 + $0x128] sm:$0xff]   ;;  %v6787_v57 = vld [vmem:[%s9138_s5 + $0x10] sm:$0xff]  }
 0x2ba   :  { %v8566_v3 = vpack.c.bf16 %v3343_v60, %v3342_v59  ;;  %v3289_v14 = vmax.f32 %v3249_v20, %v3251_v5  ;;  %v3250_v24 = vmax.f32 %v8281_v48, %v3110_v35  ;;  %6275 = vmatpush3.bf16.msra.mxu1 %v6788_v15  ;;  %v9192_v5 = vld [vmem:[#allocation12_spill] sm:$0xff] }
 0x2bb   :  { %6276 = vmatprep.subr.bf16.mxu1 %v6791_v8 }
 0x2bc   :  { %v3320_v0 = vadd.f32 %v8484_v23, %v3289_v14  ;;  %v3290_v61 = vmax.f32 %v3250_v24, %v3252_v31  ;;  %v6242_v28 = vpop.f32.mrb[116].mxu0  ;;  %3820 = vmatprep.mubr.bf16.mxu1 %v8566_v3  ;;  %3901 = vmatprep.mubr.bf16.mxu0 %v8566_v3  ;;  %v9193_v24 = vld [vmem:[#allocation31_spill] sm:$0xff] }
 0x2bd   :  { %v3131_v48 = vadd.f32 %v6242_v28, %v8424_v52  ;;  %v3122_v36 = vpop.f32.mrb[117].mxu0  ;;  %3821 = vmatmul.mubr.bf16.gmra.mrb[152].mxu1 %v8542_v13  ;;  %3902 = vmatmul.mubr.bf16.vlgmr.msra.gmra.mrb[144].mxu0 %v8542_v13 }
 0x2be   :  { %v3321_v54 = vadd.f32 %v8484_v23, %v3290_v61  ;;  %v8585_v42 = vpop.f32.mrb[132].mxu1  ;;  %v3123_v10 = vadd.f32 %v3122_v36, %v8414_v21  ;;  %v6243_v34 = vpop.f32.mrb[118].mxu0  ;;  %5944 = vmatpush3.bf16.msra.mxu0 %v6781_v11  ;;  %6277 = vmatpush3.bf16.msra.mxu1 %v6791_v8  ;;  %v6795_v21 = vld [vmem:[%s9137_s4 + $0x130] sm:$0xff]   ;;  %v3344_v49 = vmax.f32 %v3320_v0, 0.0  ;;  %v6798_v8 = vld [vmem:[%s9137_s4 + $0x138] sm:$0xff]   ;;  %v9194_v0 = vld [vmem:[#allocation16_spill] sm:$0xff] }
 0x2bf   :  { %v3255_v52 = vmax.f32 %v8321_v46, %v3131_v48  ;;  %v2987_v2 = vpop.f32.mrb[133].mxu1  ;;  %v3134_v38 = vadd.f32 %v6243_v34, %v8429_v18  ;;  %v3125_v25 = vpop.f32.mrb[119].mxu0  ;;  %5945 = vmatprep.subr.bf16.mxu0 %v6783_v45  ;;  %6278 = vmatprep.subr.bf16.mxu1 %v6794_v53  ;;  %v9190_v46 = vld [vmem:[#allocation28_spill] sm:$0xff]  ;;  %v9191_v18 = vld [vmem:[#allocation13_spill] sm:$0xff]  ;;  %v6792_v36 = vld [vmem:[%s9138_s5 + $0x60] sm:$0xff]  }
 0x2c0   :  { %v3345_v15 = vmax.f32 %v3321_v54, 0.0  ;;  %v3253_v39 = vmax.f32 %v9189_v9, %v3123_v10  ;;  %v8600_v43 = vpop.f32.mrb[134].mxu1  ;;  %v3126_v19 = vadd.f32 %v3125_v25, %v9190_v46  ;;  %v6800_v54 = vld [vmem:[%s9138_s5 + $0xc0] sm:$0xff]  }
 0x2c1   :  { %v3256_v26 = vmax.f32 %v9191_v18, %v3134_v38  ;;  %v2990_v55 = vpop.f32.mrb[135].mxu1  ;;  %v9196_v38 = vld [vmem:[#allocation32_spill] sm:$0xff]  ;;  %v9198_v9 = vld [vmem:[#allocation15_spill] sm:$0xff] }
 0x2c2   :  { %v8604_v56 = vpack.c.bf16 %v3345_v15, %v3344_v49  ;;  %v3291_v63 = vmax.f32 %v3253_v39, %v3255_v52  ;;  %v3254_v22 = vmax.f32 %v9192_v5, %v3126_v19  ;;  %5946 = vmatpush3.bf16.msra.mxu0 %v6784_v47  ;;  %6279 = vmatpush3.bf16.msra.mxu1 %v6794_v53  ;;  %v6790_v53 = vld [vmem:[%s9138_s5 + $0x18] sm:$0xff]   ;;  %v6793_v46 = vld [vmem:[%s9138_s5 + $0x20] sm:$0xff]   ;;  %v6796_v19 = vld [vmem:[%s9138_s5 + $0x68] sm:$0xff]  }
 0x2c3   :  { %5947 = vmatprep.subr.bf16.mxu0 %v6786_v58  ;;  %6280 = vmatprep.subr.bf16.mxu1 %v6795_v21  ;;  %v9195_v47 = vld [vmem:[#allocation14_spill] sm:$0xff] }
 0x2c4   :  { %v3322_v59 = vadd.f32 %v8484_v23, %v3291_v63  ;;  %v3292_v60 = vmax.f32 %v3254_v22, %v3256_v26  ;;  %v6246_v20 = vpop.f32.mrb[120].mxu0  ;;  %3828 = vmatprep.mubr.bf16.mxu1 %v8604_v56  ;;  %3909 = vmatprep.mubr.bf16.mxu0 %v8604_v56 }
 0x2c5   :  { %v3147_v35 = vadd.f32 %v6246_v20, %v8444_v29  ;;  %v3138_v31 = vpop.f32.mrb[121].mxu0  ;;  %3829 = vmatmul.mubr.bf16.gmra.mrb[156].mxu1 %v8566_v3  ;;  %3910 = vmatmul.mubr.bf16.gmra.mrb[148].mxu0 %v8566_v3  ;;  %v9200_v20 = vld [vmem:[#allocation20_spill] sm:$0xff] }
 0x2c6   :  { %v3323_v51 = vadd.f32 %v8484_v23, %v3292_v60  ;;  %v8623_v14 = vpop.f32.mrb[136].mxu1  ;;  %v3139_v11 = vadd.f32 %v3138_v31, %v9193_v24  ;;  %v6247_v45 = vpop.f32.mrb[122].mxu0  ;;  %5948 = vmatpush3.bf16.msra.mxu0 %v6787_v57  ;;  %6281 = vmatpush3.bf16.msra.mxu1 %v6795_v21  ;;  %v3346_v10 = vmax.f32 %v3322_v59, 0.0  ;;  %v6797_v60 = vld [vmem:[%s9138_s5 + $0x28] sm:$0xff]   ;;  %v6799_v24 = vld [vmem:[%s9138_s5 + $0x70] sm:$0xff]  }
 0x2c7   :  { %v3259_v29 = vmax.f32 %v9194_v0, %v3147_v35  ;;  %v2995_v61 = vpop.f32.mrb[137].mxu1  ;;  %v3150_v28 = vadd.f32 %v6247_v45, %v8449_v17  ;;  %v3141_v48 = vpop.f32.mrb[123].mxu0  ;;  %5949 = vmatprep.subr.bf16.mxu0 %v6789_v16  ;;  %6282 = vmatprep.subr.bf16.mxu1 %v6798_v8  ;;  %v9197_v17 = vld [vmem:[#allocation17_spill] sm:$0xff]  ;;  %v9199_v16 = vld [vmem:[#allocation34_spill] sm:$0xff] }
 0x2c8   :  { %v3347_v34 = vmax.f32 %v3323_v51, 0.0  ;;  %v3257_v52 = vmax.f32 %v9195_v47, %v3139_v11  ;;  %v8638_v2 = vpop.f32.mrb[138].mxu1  ;;  %v3142_v25 = vadd.f32 %v3141_v48, %v9196_v38  ;;  %v6801_v47 = vld [vmem:[%s9138_s5 + $0x30] sm:$0xff]  }
 0x2c9   :  { %v3260_v58 = vmax.f32 %v9197_v17, %v3150_v28  ;;  %v2998_v21 = vpop.f32.mrb[139].mxu1  ;;  %v9202_v28 = vld [vmem:[#allocation21_spill] sm:$0xff] }
 0x2ca   :  { %v8642_v49 = vpack.c.bf16 %v3347_v34, %v3346_v10  ;;  %v3293_v15 = vmax.f32 %v3257_v52, %v3259_v29  ;;  %v3258_v39 = vmax.f32 %v9198_v9, %v3142_v25  ;;  %5950 = vmatpush3.bf16.msra.mxu0 %v6790_v53  ;;  %6283 = vmatpush3.bf16.msra.mxu1 %v6798_v8  ;;  %v9201_v53 = vld [vmem:[#allocation18_spill] sm:$0xff]  ;;  %v9203_v10 = vld [vmem:[#allocation19_spill] sm:$0xff] }
 0x2cb   :  { %5951 = vmatprep.subr.bf16.mxu0 %v6792_v36  ;;  %6007 = vmatprep.subr.bf16.mxu1 %v6800_v54  ;;  %v6805_v52 = vld [vmem:[%s9138_s5 + $0x78] sm:$0xff]  }
 0x2cc   :  { %v3324_v18 = vadd.f32 %v8484_v23, %v3293_v15  ;;  %v3294_v26 = vmax.f32 %v3258_v39, %v3260_v58  ;;  %v6250_v55 = vpop.f32.mrb[124].mxu0  ;;  %3836 = vmatprep.mubr.bf16.mxu1 %v8642_v49  ;;  %3917 = vmatprep.mubr.bf16.mxu0 %v8642_v49  ;;  %v6807_v39 = vld [vmem:[%s9138_s5 + $0x38] sm:$0xff]  }
 0x2cd   :  { %v3163_v63 = vadd.f32 %v6250_v55, %v8464_v32  ;;  %v3154_v5 = vpop.f32.mrb[125].mxu0  ;;  %3837 = vmatmul.mubr.bf16.gmra.mrb[160].mxu1 %v8604_v56  ;;  %3918 = vmatmul.mubr.bf16.gmra.mrb[152].mxu0 %v8604_v56 }
 0x2ce   :  { %v3325_v22 = vadd.f32 %v8484_v23, %v3294_v26  ;;  %v8658_v57 = vpop.f32.mrb[140].mxu1  ;;  %v3155_v8 = vadd.f32 %v3154_v5, %v9199_v16  ;;  %v6251_v59 = vpop.f32.mrb[126].mxu0  ;;  %5952 = vmatpush3.bf16.msra.mxu0 %v6793_v46  ;;  %v3348_v11 = vmax.f32 %v3324_v18, 0.0  ;;  %v9204_v46 = vld [vmem:[#allocation24_spill] sm:$0xff]  ;;  %v8699_v26 = vld [vmem:[%s9138_s5 + $0x100] sm:$0xff]   ;;  %v9206_v16 = vld [vmem:[#allocation25_spill] sm:$0xff] }
 0x2cf   :  { %v3263_v35 = vmax.f32 %v9200_v20, %v3163_v63  ;;  %v3003_v32 = vpop.f32.mrb[141].mxu1  ;;  %v3166_v31 = vadd.f32 %v6251_v59, %v8469_v44  ;;  %v3157_v51 = vpop.f32.mrb[127].mxu0  ;;  %5953 = vmatprep.subr.bf16.mxu0 %v6796_v19  ;;  %v9207_v20 = vld [vmem:[#allocation23_spill] sm:$0xff] }
 0x2d0   :  { %v3349_v45 = vmax.f32 %v3325_v22, 0.0  ;;  %v3261_v0 = vmax.f32 %v9201_v53, %v3155_v8  ;;  %v8670_v29 = vpop.f32.mrb[142].mxu1  ;;  %v3158_v61 = vadd.f32 %v3157_v51, %v8459_v4  ;;  %v9208_v53 = vld [vmem:[#allocation29_spill] sm:$0xff] }
 0x2d1   :  { %v3264_v48 = vmax.f32 %v9202_v28, %v3166_v31  ;;  %v3006_v36 = vpop.f32.mrb[143].mxu1 }
 0x2d2   :  { %v8674_v54 = vpack.c.bf16 %v3349_v45, %v3348_v11  ;;  %v3295_v44 = vmax.f32 %v3261_v0, %v3263_v35  ;;  %v3262_v34 = vmax.f32 %v9203_v10, %v3158_v61  ;;  %5954 = vmatpush3.bf16.msra.mxu0 %v6797_v60 }
 0x2d3   :  { %5955 = vmatprep.subr.bf16.mxu0 %v6799_v24 }
 0x2d4   :  { %v3326_v4 = vadd.f32 %v8484_v23, %v3295_v44  ;;  %v3296_v38 = vmax.f32 %v3262_v34, %v3264_v48  ;;  %v6254_v25 = vpop.f32.mrb[128].mxu0  ;;  %3844 = vmatprep.mubr.bf16.mxu1 %v8674_v54  ;;  %3925 = vmatprep.mubr.bf16.mxu0 %v8674_v54  ;;  %v9209_v44 = vld [vmem:[#allocation26_spill] sm:$0xff] }
 0x2d5   :  { %v3179_v17 = vadd.f32 %v6254_v25, %v8491_v37  ;;  %v3170_v58 = vpop.f32.mrb[129].mxu0  ;;  %3845 = vmatmul.mubr.bf16.gmra.mrb[164].mxu1 %v8642_v49  ;;  %3926 = vmatmul.mubr.bf16.gmra.mrb[156].mxu0 %v8642_v49  ;;  %v9210_v34 = vld [vmem:[#allocation30_spill] sm:$0xff] }
 0x2d6   :  { %v3327_v21 = vadd.f32 %v8484_v23, %v3296_v38  ;;  %v3171_v15 = vadd.f32 %v3170_v58, %v8472_v62  ;;  %v6255_v9 = vpop.f32.mrb[130].mxu0  ;;  %5956 = vmatpush3.bf16.msra.mxu0 %v6801_v47  ;;  %v3350_v55 = vmax.f32 %v3326_v4, 0.0  ;;  %v9205_v62 = vld [vmem:[#allocation22_spill] sm:$0xff]  ;;  %v9211_v38 = vld [vmem:[#allocation27_spill] sm:$0xff] }
 0x2d7   :  { %v3267_v19 = vmax.f32 %v9204_v46, %v3179_v17  ;;  %v3182_v18 = vadd.f32 %v6255_v9, %v8497_v7  ;;  %v3173_v37 = vpop.f32.mrb[131].mxu0  ;;  %5957 = vmatprep.subr.bf16.mxu0 %v6805_v52 }
 0x2d8   :  { %v3351_v63 = vmax.f32 %v3327_v21, 0.0  ;;  %v3265_v5 = vmax.f32 %v9205_v62, %v3171_v15  ;;  %v3174_v22 = vadd.f32 %v3173_v37, %v8478_v30 }
 0x2d9   :  { %v3268_v8 = vmax.f32 %v9206_v16, %v3182_v18 }
 0x2da   :  { %v8704_v59 = vpack.c.bf16 %v3351_v63, %v3350_v55  ;;  %v3297_v60 = vmax.f32 %v3265_v5, %v3267_v19  ;;  %v3266_v7 = vmax.f32 %v9207_v20, %v3174_v22  ;;  %5958 = vmatpush3.bf16.msra.mxu0 %v6807_v39  ;;  %v9212_v39 = vld [vmem:[#allocation5_spill] sm:$0xff]  ;;  %v9214_v5 = vld [vmem:[#allocation7_spill] sm:$0xff] }
 0x2db   :  { %6300 = vmatprep.subr.bf16.mxu0 %v8699_v26  ;;  %v6802_v20 = vld [vmem:[%s9138_s5 + $0x80] sm:$0xff]  }
 0x2dc   :  { %v3328_v35 = vadd.f32 %v8484_v23, %v3297_v60  ;;  %v3298_v32 = vmax.f32 %v3266_v7, %v3268_v8  ;;  %v6258_v31 = vpop.f32.mrb[132].mxu0  ;;  %3852 = vmatprep.mubr.bf16.mxu1 %v8704_v59  ;;  %3933 = vmatprep.mubr.bf16.mxu0 %v8704_v59 }
 0x2dd   :  { %v3195_v30 = vadd.f32 %v6258_v31, %v8528_v40  ;;  %v3186_v51 = vpop.f32.mrb[133].mxu0  ;;  %3853 = vmatmul.mubr.bf16.gmra.mrb[168].mxu1 %v8674_v54  ;;  %3934 = vmatmul.mubr.bf16.gmra.mrb[160].mxu0 %v8674_v54 }
 0x2de   :  { %v3329_v24 = vadd.f32 %v8484_v23, %v3298_v32  ;;  %v3187_v11 = vadd.f32 %v3186_v51, %v8507_v50  ;;  %v6259_v45 = vpop.f32.mrb[134].mxu0  ;;  %v3352_v48 = vmax.f32 %v3328_v35, 0.0 }
 0x2df   :  { %v3271_v0 = vmax.f32 %v9208_v53, %v3195_v30  ;;  %v3198_v61 = vadd.f32 %v6259_v45, %v8538_v33  ;;  %v3189_v28 = vpop.f32.mrb[135].mxu0  ;;  %v9216_v45 = vld [vmem:[#allocation9_spill] sm:$0xff] }
 0x2e0   :  { %v3353_v36 = vmax.f32 %v3329_v24, 0.0  ;;  %v3269_v10 = vmax.f32 %v9209_v44, %v3187_v11  ;;  %v3190_v40 = vadd.f32 %v3189_v28, %v8513_v6  ;;  %v6804_v11 = vld [vmem:[%s9138_s5 + $0x88] sm:$0xff]  }
 0x2e1   :  { %v3272_v47 = vmax.f32 %v9210_v34, %v3198_v61  ;;  %v6806_v61 = vld [vmem:[%s9138_s5 + $0xd0] sm:$0xff]  }
 0x2e2   :  { %v8721_v52 = vpack.c.bf16 %v3353_v36, %v3352_v48  ;;  %v3299_v4 = vmax.f32 %v3269_v10, %v3271_v0  ;;  %v3270_v25 = vmax.f32 %v9211_v38, %v3190_v40  ;;  %v9217_v48 = vld [vmem:[#allocation33_spill] sm:$0xff]  ;;  %v9218_v10 = vld [vmem:[#allocation10_spill] sm:$0xff] }
 0x2e4   :  { %v3330_v50 = vadd.f32 %v8484_v23, %v3299_v4  ;;  %v3300_v17 = vmax.f32 %v3270_v25, %v3272_v47  ;;  %v6262_v58 = vpop.f32.mrb[136].mxu0  ;;  %3860 = vmatprep.mubr.bf16.mxu1 %v8721_v52  ;;  %3941 = vmatprep.mubr.bf16.mxu0 %v8721_v52  ;;  %v9219_v47 = vld [vmem:[#allocation35_spill] sm:$0xff] }
 0x2e5   :  { %v3211_v33 = vadd.f32 %v6262_v58, %v8585_v42  ;;  %v3202_v21 = vpop.f32.mrb[137].mxu0  ;;  %3861 = vmatmul.mubr.bf16.gmra.mrb[172].mxu1 %v8704_v59  ;;  %3942 = vmatmul.mubr.bf16.gmra.mrb[164].mxu0 %v8704_v59  ;;  %v9213_v42 = vld [vmem:[#allocation6_spill] sm:$0xff] }
 0x2e6   :  { %v3331_v6 = vadd.f32 %v8484_v23, %v3300_v17  ;;  %v3203_v15 = vadd.f32 %v3202_v21, %v8553_v27  ;;  %v6263_v9 = vpop.f32.mrb[138].mxu0  ;;  %6284 = vmatprep.mubr.bf16.mxu1 %v8604_v56  ;;  %v3354_v37 = vmax.f32 %v3330_v50, 0.0  ;;  %v9215_v27 = vld [vmem:[#allocation8_spill] sm:$0xff]  ;;  %v6810_v58 = vld [vmem:[%s9138_s5 + $0x98] sm:$0xff]  }
 0x2e7   :  { %v3275_v46 = vmax.f32 %v9212_v39, %v3211_v33  ;;  %v3214_v19 = vadd.f32 %v6263_v9, %v8600_v43  ;;  %v3205_v18 = vpop.f32.mrb[139].mxu0  ;;  %v6803_v43 = vld [vmem:[%s9138_s5 + $0xc8] sm:$0xff]   ;;  %v6811_v33 = vld [vmem:[%s9138_s5 + $0xe0] sm:$0xff]  }
 0x2e8   :  { %v3355_v55 = vmax.f32 %v3331_v6, 0.0  ;;  %v3273_v63 = vmax.f32 %v9213_v42, %v3203_v15  ;;  %v3206_v62 = vadd.f32 %v3205_v18, %v8562_v41  ;;  %v6813_v9 = vld [vmem:[%s9138_s5 + $0xa0] sm:$0xff]   ;;  %v6817_v39 = vld [vmem:[%s9138_s5 + $0x108] sm:$0xff]   ;;  %v6818_v18 = vld [vmem:[%s9138_s5 + $0xb0] sm:$0xff]  }
 0x2e9   :  { %v3276_v22 = vmax.f32 %v9214_v5, %v3214_v19  ;;  %v6816_v19 = vld [vmem:[%s9138_s5 + $0xf0] sm:$0xff]   ;;  %v6823_v42 = vld [vmem:[%s9138_s5 + $0x120] sm:$0xff]  }
 0x2ea   :  { %v8738_v16 = vpack.c.bf16 %v3355_v55, %v3354_v37  ;;  %v3301_v8 = vmax.f32 %v3273_v63, %v3275_v46  ;;  %v3274_v60 = vmax.f32 %v9215_v27, %v3206_v62  ;;  %v6815_v46 = vld [vmem:[%s9138_s5 + $0xa8] sm:$0xff]   ;;  %v6822_v37 = vld [vmem:[%s9138_s5 + $0x118] sm:$0xff]   ;;  %v6825_v63 = vld [vmem:[%s9138_s5 + $0x130] sm:$0xff]  }
 0x2eb   :  { %v6820_v55 = vld [vmem:[%s9138_s5 + $0xb8] sm:$0xff]  }
 0x2ec   :  { %v3332_v7 = vadd.f32 %v8484_v23, %v3301_v8  ;;  %v3302_v35 = vmax.f32 %v3274_v60, %v3276_v22  ;;  %v6266_v32 = vpop.f32.mrb[140].mxu0  ;;  %3949 = vmatprep.mubr.bf16.mxu0 %v8738_v16  ;;  %v6826_v62 = vld [vmem:[%s9138_s5 + $0x138] sm:$0xff]   ;;  %v6831_v8 = vld [vmem:[%s9140_s7 + $0x50] sm:$0xff]  }
 0x2ed   :  { %v3227_v41 = vadd.f32 %v6266_v32, %v8658_v57  ;;  %v3218_v31 = vpop.f32.mrb[141].mxu0  ;;  %3950 = vmatmul.mubr.bf16.gmra.mrb[168].mxu0 %v8721_v52  ;;  %6285 = vmatmul.mubr.bf16.vlgmr.msra.gmra.mrb[176].mxu1 %v8642_v49 }
 0x2ee   :  { %v3333_v30 = vadd.f32 %v8484_v23, %v3302_v35  ;;  %v3219_v51 = vadd.f32 %v3218_v31, %v8623_v14  ;;  %v6267_v24 = vpop.f32.mrb[142].mxu0  ;;  %6288 = vmatprep.mubr.bf16.mxu1 %v8674_v54  ;;  %6008 = vmatpush3.bf16.msra.mxu1 %v6802_v20  ;;  %v3356_v28 = vmax.f32 %v3332_v7, 0.0  ;;  %v6832_v20 = vld [vmem:[%s9140_s7 + $0x10] sm:$0xff]  }
 0x2ef   :  { %v3279_v53 = vmax.f32 %v9216_v45, %v3227_v41  ;;  %v3230_v57 = vadd.f32 %v6267_v24, %v8670_v29  ;;  %v3221_v0 = vpop.f32.mrb[143].mxu0  ;;  %6009 = vmatprep.subr.bf16.mxu1 %v6803_v43  ;;  %v6808_v29 = vld [vmem:[%s9138_s5 + $0x90] sm:$0xff]   ;;  %v6833_v41 = vld [vmem:[%s9140_s7 + $0x58] sm:$0xff]  }
 0x2f0   :  { %v3357_v14 = vmax.f32 %v3333_v30, 0.0  ;;  %v3277_v36 = vmax.f32 %v9217_v48, %v3219_v51  ;;  %v3222_v44 = vadd.f32 %v3221_v0, %v8638_v2  ;;  %v6809_v2 = vld [vmem:[%s9138_s5 + $0xd8] sm:$0xff]  }
 0x2f1   :  { %v3280_v40 = vmax.f32 %v9218_v10, %v3230_v57 }
 0x2f2   :  { %v3303_v34 = vmax.f32 %v3277_v36, %v3279_v53  ;;  %v3278_v4 = vmax.f32 %v9219_v47, %v3222_v44  ;;  %6010 = vmatpush3.bf16.msra.mxu1 %v6804_v11  ;;  %v8767_v38 = vpack.c.bf16 %v3357_v14, %v3356_v28  ;;  %v6834_v28 = vld [vmem:[%s9140_s7 + $0x18] sm:$0xff]   ;;  %v6837_v47 = vld [vmem:[%s9140_s7 + $0xc0] sm:$0xff]  }
 0x2f3   :  { %6011 = vmatprep.subr.bf16.mxu1 %v6806_v61 }
 0x2f4   :  { %v3304_v25 = vmax.f32 %v3278_v4, %v3280_v40  ;;  %3957 = vmatprep.mubr.bf16.mxu0 %v8767_v38  ;;  %v3334_v50 = vadd.f32 %v8484_v23, %v3303_v34  ;;  %v6835_v34 = vld [vmem:[%s9140_s7 + $0x60] sm:$0xff]  }
 0x2f5   :  { %3958 = vmatmul.mubr.bf16.gmra.mrb[172].mxu0 %v8738_v16  ;;  %6289 = vmatmul.mubr.bf16.gmra.mrb[180].mxu1 %v8704_v59 }
 0x2f6   :  { %6292 = vmatprep.mubr.bf16.mxu1 %v8721_v52  ;;  %4415 = vmatprep.mubr.bf16.mxu0 %v8518_v1  ;;  %v3335_v17 = vadd.f32 %v8484_v23, %v3304_v25  ;;  %v3358_v21 = vmax.f32 %v3334_v50, 0.0  ;;  %v6814_v23 = vld [vmem:[%s9138_s5 + $0xe8] sm:$0xff]   ;;  %v6838_v25 = vld [vmem:[%s9140_s7 + $0x80] sm:$0xff]  }
 0x2f7   :  { %6012 = vmatpush3.bf16.msra.mxu1 %v6808_v29  ;;  %v6836_v29 = vld [vmem:[%s9140_s7 + $0x20] sm:$0xff]  }
 0x2f8   :  { %6013 = vmatprep.subr.bf16.mxu1 %v6809_v2  ;;  %v3359_v6 = vmax.f32 %v3335_v17, 0.0 }
 0x2fa   :  { %v8788_v15 = vpack.c.bf16 %v3359_v6, %v3358_v21 }
 0x2fb   :  { %6014 = vmatpush3.bf16.msra.mxu1 %v6810_v58 }
 0x2fc   :  { %6015 = vmatprep.subr.bf16.mxu1 %v6811_v33 }
 0x2fd   :  { %6293 = vmatmul.mubr.bf16.gmra.mrb[184].mxu1 %v8738_v16  ;;  %4416 = vmatmul.mubr.bf16.vlgmr.msra.gmra.mrb[176].mxu0 %v8501_v12  ;;  %v6821_v12 = vld [vmem:[%s9138_s5 + $0x110] sm:$0xff]  }
 0x2fe   :  { %6296 = vmatprep.mubr.bf16.mxu1 %v8767_v38  ;;  %4423 = vmatprep.mubr.bf16.mxu0 %v8542_v13 }
 0x2ff   :  { %6016 = vmatpush3.bf16.msra.mxu1 %v6813_v9  ;;  %6301 = vmatpush3.bf16.msra.mxu0 %v8699_v26  ;;  %v6819_v26 = vld [vmem:[%s9138_s5 + $0xf8] sm:$0xff]  }
 0x300   :  { %6017 = vmatprep.subr.bf16.mxu1 %v6814_v23  ;;  %6302 = vmatprep.subr.bf16.mxu0 %v6817_v39  ;;  %v6839_v23 = vld [vmem:[%s9140_s7 + $0x68] sm:$0xff]  }
 0x303   :  { %6018 = vmatpush3.bf16.msra.mxu1 %v6815_v46  ;;  %6303 = vmatpush3.bf16.msra.mxu0 %v6817_v39  ;;  %v6840_v39 = vld [vmem:[%s9140_s7 + $0xc8] sm:$0xff]  }
 0x304   :  { %6019 = vmatprep.subr.bf16.mxu1 %v6816_v19  ;;  %6304 = vmatprep.subr.bf16.mxu0 %v6821_v12  ;;  %v6841_v46 = vld [vmem:[%s9140_s7 + $0x28] sm:$0xff]  }
 0x305   :  { %6297 = vmatmul.mubr.bf16.gmra.mrb[188].mxu1 %v8788_v15  ;;  %4424 = vmatmul.mubr.bf16.gmra.mrb[180].mxu0 %v8518_v1  ;;  %v6824_v1 = vld [vmem:[%s9138_s5 + $0x128] sm:$0xff]  }
 0x306   :  { %4431 = vmatprep.mubr.bf16.mxu0 %v8566_v3  ;;  %4512 = vmatprep.mubr.bf16.mxu1 %v8566_v3  ;;  %v6842_v19 = vld [vmem:[%s9140_s7 + $0x88] sm:$0xff]  }
 0x307   :  { %6020 = vmatpush3.bf16.msra.mxu1 %v6818_v18  ;;  %6305 = vmatpush3.bf16.msra.mxu0 %v6821_v12 }
 0x308   :  { %6021 = vmatprep.subr.bf16.mxu1 %v6819_v26  ;;  %6306 = vmatprep.subr.bf16.mxu0 %v6822_v37 }
 0x30b   :  { %6022 = vmatpush3.bf16.msra.mxu1 %v6820_v55  ;;  %6307 = vmatpush3.bf16.msra.mxu0 %v6822_v37  ;;  %v6843_v37 = vld [vmem:[%s9140_s7 + $0x70] sm:$0xff]  }
 0x30c   :  { %6308 = vmatprep.subr.bf16.mxu0 %v6823_v42  ;;  %v6844_v55 = vld [vmem:[%s9140_s7 + $0xd0] sm:$0xff]  }
 0x30d   :  { %4432 = vmatmul.mubr.bf16.gmra.mrb[184].mxu0 %v8542_v13 }
 0x30e   :  { %4513 = vmatmul.mubr.bf16.vlgmr.msra.gmra.mrb[192].mxu1 %v8542_v13  ;;  %4439 = vmatprep.mubr.bf16.mxu0 %v8604_v56  ;;  %v6827_v13 = vld [vmem:[%s9140_s7 + $0x40] sm:$0xff]  }
 0x30f   :  { %4520 = vmatprep.mubr.bf16.mxu1 %v8604_v56  ;;  %6309 = vmatpush3.bf16.msra.mxu0 %v6823_v42 }
 0x310   :  { %6310 = vmatprep.subr.bf16.mxu0 %v6824_v1  ;;  %6087 = vmatprep.subr.bf16.mxu1 %v6827_v13 }
 0x313   :  { %6311 = vmatpush3.bf16.msra.mxu0 %v6824_v1 }
 0x314   :  { %6312 = vmatprep.subr.bf16.mxu0 %v6825_v63 }
 0x315   :  { %4440 = vmatmul.mubr.bf16.gmra.mrb[188].mxu0 %v8566_v3 }
 0x316   :  { %4521 = vmatmul.mubr.bf16.gmra.mrb[196].mxu1 %v8566_v3  ;;  %4447 = vmatprep.mubr.bf16.mxu0 %v8642_v49  ;;  %v6828_v3 = vld [vmem:[%s9140_s7] sm:$0xff]  }
 0x317   :  { %4528 = vmatprep.mubr.bf16.mxu1 %v8642_v49  ;;  %6313 = vmatpush3.bf16.msra.mxu0 %v6825_v63  ;;  %v6845_v63 = vld [vmem:[%s9140_s7 + $0x30] sm:$0xff]  }
 0x318   :  { %6314 = vmatprep.subr.bf16.mxu0 %v6826_v62  ;;  %6088 = vmatpush3.bf16.msra.mxu1 %v6828_v3 }
 0x31b   :  { %6315 = vmatpush3.bf16.msra.mxu0 %v6826_v62  ;;  %v6846_v62 = vld [vmem:[%s9140_s7 + $0x90] sm:$0xff]  }
 0x31c   :  { %6109 = vmatprep.subr.bf16.mxu0 %v6837_v47  ;;  %v6856_v47 = vld [vmem:[%s9140_s7 + $0xb0] sm:$0xff]  }
 0x31d   :  { %4448 = vmatmul.mubr.bf16.gmra.mrb[192].mxu0 %v8604_v56 }
 0x31e   :  { %4529 = vmatmul.mubr.bf16.gmra.mrb[200].mxu1 %v8604_v56  ;;  %4455 = vmatprep.mubr.bf16.mxu0 %v8674_v54 }
 0x31f   :  { %4536 = vmatprep.mubr.bf16.mxu1 %v8674_v54 }
 0x325   :  { %4456 = vmatmul.mubr.bf16.gmra.mrb[196].mxu0 %v8642_v49 }
 0x326   :  { %4537 = vmatmul.mubr.bf16.gmra.mrb[204].mxu1 %v8642_v49  ;;  %4463 = vmatprep.mubr.bf16.mxu0 %v8704_v59 }
 0x327   :  { %4544 = vmatprep.mubr.bf16.mxu1 %v8704_v59 }
 0x32d   :  { %4464 = vmatmul.mubr.bf16.gmra.mrb[200].mxu0 %v8674_v54 }
 0x32e   :  { %4545 = vmatmul.mubr.bf16.gmra.mrb[208].mxu1 %v8674_v54  ;;  %4471 = vmatprep.mubr.bf16.mxu0 %v8721_v52 }
 0x32f   :  { %4552 = vmatprep.mubr.bf16.mxu1 %v8721_v52 }
 0x335   :  { %4472 = vmatmul.mubr.bf16.gmra.mrb[204].mxu0 %v8704_v59 }
 0x336   :  { %4553 = vmatmul.mubr.bf16.gmra.mrb[212].mxu1 %v8704_v59  ;;  %6316 = vmatprep.mubr.bf16.mxu0 %v8604_v56  ;;  %v6829_v56 = vld [vmem:[%s9140_s7 + $0x48] sm:$0xff]  }
 0x337   :  { %4560 = vmatprep.mubr.bf16.mxu1 %v8738_v16  ;;  %6089 = vmatprep.subr.bf16.mxu1 %v6829_v56 }
 0x33d   :  { %6317 = vmatmul.mubr.bf16.vlgmr.msra.gmra.mrb[208].mxu0 %v8642_v49 }
 0x33e   :  { %4561 = vmatmul.mubr.bf16.gmra.mrb[216].mxu1 %v8721_v52  ;;  %6320 = vmatprep.mubr.bf16.mxu0 %v8674_v54 }
 0x33f   :  { %4568 = vmatprep.mubr.bf16.mxu1 %v8767_v38  ;;  %6110 = vmatpush3.bf16.msra.mxu0 %v6838_v25 }
 0x340   :  { %6111 = vmatprep.subr.bf16.mxu0 %v6840_v39 }
 0x343   :  { %6112 = vmatpush3.bf16.msra.mxu0 %v6842_v19 }
 0x344   :  { %6113 = vmatprep.subr.bf16.mxu0 %v6844_v55 }
 0x345   :  { %6321 = vmatmul.mubr.bf16.gmra.mrb[212].mxu0 %v8704_v59  ;;  %v6830_v59 = vld [vmem:[%s9140_s7 + $0x8] sm:$0xff]  }
 0x346   :  { %4569 = vmatmul.mubr.bf16.gmra.mrb[220].mxu1 %v8738_v16  ;;  %6324 = vmatprep.mubr.bf16.mxu0 %v8721_v52 }
 0x347   :  { %6090 = vmatpush3.bf16.msra.mxu1 %v6830_v59  ;;  %6114 = vmatpush3.bf16.msra.mxu0 %v6846_v62 }
 0x348   :  { %6091 = vmatprep.subr.bf16.mxu1 %v6831_v8  ;;  %v6848_v8 = vld [vmem:[%s9140_s7 + $0xd8] sm:$0xff]  }
 0x349   :  { %6115 = vmatprep.subr.bf16.mxu0 %v6848_v8 }
 0x34b   :  { %6092 = vmatpush3.bf16.msra.mxu1 %v6832_v20 }
 0x34c   :  { %6093 = vmatprep.subr.bf16.mxu1 %v6833_v41 }
 0x34d   :  { %6325 = vmatmul.mubr.bf16.gmra.mrb[216].mxu0 %v8738_v16 }
 0x34e   :  { %6328 = vmatprep.mubr.bf16.mxu0 %v8767_v38 }
 0x34f   :  { %6094 = vmatpush3.bf16.msra.mxu1 %v6834_v28  ;;  %v6853_v28 = vld [vmem:[%s9140_s7 + $0xe8] sm:$0xff]  }
 0x350   :  { %6095 = vmatprep.subr.bf16.mxu1 %v6835_v34  ;;  %v6855_v34 = vld [vmem:[%s9140_s7 + $0xf0] sm:$0xff]  }
 0x353   :  { %6096 = vmatpush3.bf16.msra.mxu1 %v6836_v29 }
 0x354   :  { %6097 = vmatprep.subr.bf16.mxu1 %v6839_v23 }
 0x355   :  { %6329 = vmatmul.mubr.bf16.gmra.mrb[220].mxu0 %v8788_v15 }
 0x357   :  { %6098 = vmatpush3.bf16.msra.mxu1 %v6841_v46 }
 0x358   :  { %6099 = vmatprep.subr.bf16.mxu1 %v6843_v37 }
 0x35b   :  { %6100 = vmatpush3.bf16.msra.mxu1 %v6845_v63  ;;  %v6900_v63 = vmov 0.0  }
 0x380   :  { %v5815_v49 = vpop.f32.mrb[144].mxu1 }
 0x381   :  { %v5816_v54 = vpop.f32.mrb[145].mxu1 }
 0x382   :  { %v5817_v52 = vadd.f32 %v5816_v54, %v5815_v49  ;;  %v5818_v5 = vpop.f32.mrb[146].mxu1 }
 0x383   :  { %v5819_v22 = vpop.f32.mrb[147].mxu1 }
 0x384   :  { %v5820_v16 = vadd.f32 %v5819_v22, %v5818_v5 }
 0x388   :  { %v5821_v27 = vpop.f32.mrb[148].mxu1 }
 0x389   :  { %v5822_v60 = vpop.f32.mrb[149].mxu1 }
 0x38a   :  { %v5823_v43 = vadd.f32 %v5822_v60, %v5821_v27  ;;  %v5824_v7 = vpop.f32.mrb[150].mxu1  ;;  %v6849_v27 = vld [vmem:[%s9140_s7 + $0x38] sm:$0xff]  }
 0x38b   :  { %v5825_v35 = vpop.f32.mrb[151].mxu1  ;;  %v6850_v60 = vld [vmem:[%s9140_s7 + $0x98] sm:$0xff]  }
 0x38c   :  { %v5826_v32 = vadd.f32 %v5825_v35, %v5824_v7  ;;  %6116 = vmatpush3.bf16.msra.mxu0 %v6850_v60  ;;  %v6851_v35 = vld [vmem:[%s9140_s7 + $0xe0] sm:$0xff]  }
 0x38d   :  { %6117 = vmatprep.subr.bf16.mxu0 %v6851_v35 }
 0x390   :  { %v5827_v31 = vpop.f32.mrb[152].mxu1  ;;  %v5879_v30 = vpop.f32.mrb[144].mxu0 }
 0x391   :  { %v5828_v51 = vpop.f32.mrb[153].mxu1  ;;  %v5880_v24 = vpop.f32.mrb[145].mxu0 }
 0x392   :  { %v5829_v11 = vadd.f32 %v5828_v51, %v5827_v31  ;;  %v5881_v45 = vadd.f32 %v5880_v24, %v5879_v30  ;;  %v5830_v53 = vpop.f32.mrb[154].mxu1  ;;  %v5882_v57 = vpop.f32.mrb[146].mxu0  ;;  %v6852_v31 = vld [vmem:[%s9140_s7 + $0xa0] sm:$0xff]  }
 0x393   :  { %v5831_v0 = vpop.f32.mrb[155].mxu1  ;;  %v5883_v61 = vpop.f32.mrb[147].mxu0  ;;  %6118 = vmatpush3.bf16.msra.mxu0 %v6852_v31 }
 0x394   :  { %v5832_v14 = vadd.f32 %v5831_v0, %v5830_v53  ;;  %v5884_v48 = vadd.f32 %v5883_v61, %v5882_v57  ;;  %v8899_v36 = vadd.f32 %v5881_v45, %v5817_v52  ;;  %6119 = vmatprep.subr.bf16.mxu0 %v6853_v28 }
 0x396   :  { %v8901_v44 = vadd.f32 %v5884_v48, %v5820_v16  ;;  %v6847_v16 = vld [vmem:[%s9140_s7 + $0x78] sm:$0xff]  }
 0x397   :  { %6101 = vmatprep.subr.bf16.mxu1 %v6847_v16 }
 0x398   :  { %v5833_v10 = vpop.f32.mrb[156].mxu1  ;;  %v5885_v40 = vpop.f32.mrb[148].mxu0  ;;  %6102 = vmatpush3.bf16.msra.mxu1 %v6849_v27 }
 0x399   :  { %v5834_v4 = vpop.f32.mrb[157].mxu1  ;;  %v5886_v38 = vpop.f32.mrb[149].mxu0  ;;  %6332 = vmatprep.subr.bf16.mxu1 %v6900_v63 }
 0x39a   :  { %v8915_v2 = vadd.f32 %v5834_v4, %v5833_v10  ;;  %v5887_v50 = vadd.f32 %v5886_v38, %v5885_v40  ;;  %v5836_v17 = vpop.f32.mrb[158].mxu1  ;;  %v5888_v58 = vpop.f32.mrb[150].mxu0  ;;  %v6857_v4 = vld [vmem:[%s9140_s7 + $0xf8] sm:$0xff]  }
 0x39b   :  { %v5837_v33 = vpop.f32.mrb[159].mxu1  ;;  %v5889_v21 = vpop.f32.mrb[151].mxu0 }
 0x39c   :  { %v5838_v6 = vadd.f32 %v5837_v33, %v5836_v17  ;;  %v5890_v15 = vadd.f32 %v5889_v21, %v5888_v58  ;;  %v8917_v9 = vadd.f32 %v5887_v50, %v5823_v43  ;;  %v6858_v21 = vld [vmem:[%s9140_s7 + $0xb8] sm:$0xff]  }
 0x39e   :  { %v8931_v12 = vadd.f32 %v5890_v15, %v5826_v32 }
 0x3a0   :  { %v5839_v18 = vpop.f32.mrb[160].mxu1  ;;  %v5891_v26 = vpop.f32.mrb[152].mxu0 }
 0x3a1   :  { %v5840_v42 = vpop.f32.mrb[161].mxu1  ;;  %v5892_v1 = vpop.f32.mrb[153].mxu0 }
 0x3a2   :  { %v5841_v13 = vadd.f32 %v5840_v42, %v5839_v18  ;;  %v5893_v3 = vadd.f32 %v5892_v1, %v5891_v26  ;;  %v5842_v56 = vpop.f32.mrb[162].mxu1  ;;  %v5894_v49 = vpop.f32.mrb[154].mxu0 }
 0x3a3   :  { %v5843_v54 = vpop.f32.mrb[163].mxu1  ;;  %v5895_v59 = vpop.f32.mrb[155].mxu0 }
 0x3a4   :  { %v5844_v52 = vadd.f32 %v5843_v54, %v5842_v56  ;;  %v5896_v5 = vadd.f32 %v5895_v59, %v5894_v49  ;;  %v8945_v22 = vadd.f32 %v5893_v3, %v5829_v11 }
 0x3a6   :  { %v8959_v20 = vadd.f32 %v5896_v5, %v5832_v14  ;;  %v6854_v14 = vld [vmem:[%s9140_s7 + $0xa8] sm:$0xff]  }
 0x3a7   :  { %6120 = vmatpush3.bf16.msra.mxu0 %v6854_v14 }
 0x3a8   :  { %v5845_v43 = vpop.f32.mrb[164].mxu1  ;;  %v5897_v7 = vpop.f32.mrb[156].mxu0  ;;  %6121 = vmatprep.subr.bf16.mxu0 %v6855_v34 }
 0x3a9   :  { %v5846_v32 = vpop.f32.mrb[165].mxu1  ;;  %v5898_v41 = vpop.f32.mrb[157].mxu0 }
 0x3aa   :  { %v5847_v30 = vadd.f32 %v5846_v32, %v5845_v43  ;;  %v5899_v51 = vadd.f32 %v5898_v41, %v5897_v7  ;;  %v5848_v24 = vpop.f32.mrb[166].mxu1  ;;  %v5900_v11 = vpop.f32.mrb[158].mxu0 }
 0x3ab   :  { %v5849_v45 = vpop.f32.mrb[167].mxu1  ;;  %v5901_v53 = vpop.f32.mrb[159].mxu0  ;;  %6122 = vmatpush3.bf16.msra.mxu0 %v6856_v47 }
 0x3ac   :  { %v5850_v57 = vadd.f32 %v5849_v45, %v5848_v24  ;;  %v5902_v0 = vadd.f32 %v5901_v53, %v5900_v11  ;;  %v8968_v61 = vadd.f32 %v5899_v51, %v8915_v2  ;;  %6123 = vmatprep.subr.bf16.mxu0 %v6857_v4 }
 0x3ae   :  { %v8976_v48 = vadd.f32 %v5902_v0, %v5838_v6 }
 0x3af   :  { %6124 = vmatpush3.bf16.msra.mxu0 %v6858_v21 }
 0x3b0   :  { %v5851_v10 = vpop.f32.mrb[168].mxu1  ;;  %v5903_v40 = vpop.f32.mrb[160].mxu0 }
 0x3b1   :  { %v5852_v38 = vpop.f32.mrb[169].mxu1  ;;  %v5904_v29 = vpop.f32.mrb[161].mxu0 }
 0x3b2   :  { %v5853_v25 = vadd.f32 %v5852_v38, %v5851_v10  ;;  %v5905_v2 = vadd.f32 %v5904_v29, %v5903_v40  ;;  %v5854_v50 = vpop.f32.mrb[170].mxu1  ;;  %v5906_v17 = vpop.f32.mrb[162].mxu0 }
 0x3b3   :  { %v5855_v58 = vpop.f32.mrb[171].mxu1  ;;  %v5907_v33 = vpop.f32.mrb[163].mxu0 }
 0x3b4   :  { %v5856_v6 = vadd.f32 %v5855_v58, %v5854_v50  ;;  %v5908_v15 = vadd.f32 %v5907_v33, %v5906_v17  ;;  %v3936_v23 = vadd.f32 %v5905_v2, %v5841_v13 }
 0x3b6   :  { %v8990_v39 = vadd.f32 %v5908_v15, %v5844_v52 }
 0x3b8   :  { %v5857_v46 = vpop.f32.mrb[172].mxu1  ;;  %v5909_v19 = vpop.f32.mrb[164].mxu0 }
 0x3b9   :  { %v5858_v18 = vpop.f32.mrb[173].mxu1  ;;  %v5910_v26 = vpop.f32.mrb[165].mxu0 }
 0x3ba   :  { %v5859_v37 = vadd.f32 %v5858_v18, %v5857_v46  ;;  %v5911_v55 = vadd.f32 %v5910_v26, %v5909_v19  ;;  %v5860_v42 = vpop.f32.mrb[174].mxu1  ;;  %v5912_v1 = vpop.f32.mrb[166].mxu0 }
 0x3bb   :  { %v5861_v62 = vpop.f32.mrb[175].mxu1  ;;  %v5913_v3 = vpop.f32.mrb[167].mxu0 }
 0x3bc   :  { %v5862_v56 = vadd.f32 %v5861_v62, %v5860_v42  ;;  %v5914_v49 = vadd.f32 %v5913_v3, %v5912_v1  ;;  %v3944_v13 = vadd.f32 %v5911_v55, %v5847_v30 }
 0x3be   :  { %v3947_v54 = vadd.f32 %v5914_v49, %v5850_v57 }
 0x3c0   :  { %v5915_v59 = vpop.f32.mrb[168].mxu0  ;;  %v6286_v52 = vpop.f32.mrb[176].mxu1 }
 0x3c1   :  { %v8994_v5 = vadd.f32 %v6286_v52, %v8917_v9  ;;  %v5916_v16 = vpop.f32.mrb[169].mxu0  ;;  %v4000_v8 = vpop.f32.mrb[177].mxu1 }
 0x3c2   :  { %v5917_v27 = vadd.f32 %v5916_v16, %v5915_v59  ;;  %v8997_v60 = vadd.f32 %v4000_v8, %v8899_v36  ;;  %v5918_v43 = vpop.f32.mrb[170].mxu0  ;;  %v6287_v7 = vpop.f32.mrb[178].mxu1 }
 0x3c3   :  { %v9000_v35 = vadd.f32 %v6287_v7, %v8931_v12  ;;  %v5919_v32 = vpop.f32.mrb[171].mxu0  ;;  %v4003_v41 = vpop.f32.mrb[179].mxu1 }
 0x3c4   :  { %v5920_v31 = vadd.f32 %v5919_v32, %v5918_v43  ;;  %v9003_v30 = vadd.f32 %v4003_v41, %v8901_v44  ;;  %v3952_v51 = vadd.f32 %v5917_v27, %v5853_v25 }
 0x3c6   :  { %v3955_v9 = vadd.f32 %v5920_v31, %v5856_v6 }
 0x3c8   :  { %v5921_v24 = vpop.f32.mrb[172].mxu0  ;;  %v6290_v11 = vpop.f32.mrb[180].mxu1 }
 0x3c9   :  { %v9006_v45 = vadd.f32 %v6290_v11, %v8968_v61  ;;  %v5922_v36 = vpop.f32.mrb[173].mxu0  ;;  %v4016_v53 = vpop.f32.mrb[181].mxu1 }
 0x3ca   :  { %v5923_v57 = vadd.f32 %v5922_v36, %v5921_v24  ;;  %v9009_v0 = vadd.f32 %v4016_v53, %v8945_v22  ;;  %v5924_v12 = vpop.f32.mrb[174].mxu0  ;;  %v6291_v28 = vpop.f32.mrb[182].mxu1 }
 0x3cb   :  { %v9012_v14 = vadd.f32 %v6291_v28, %v8976_v48  ;;  %v5925_v44 = vpop.f32.mrb[175].mxu0  ;;  %v4019_v10 = vpop.f32.mrb[183].mxu1 }
 0x3cc   :  { %v5926_v40 = vadd.f32 %v5925_v44, %v5924_v12  ;;  %v9015_v34 = vadd.f32 %v4019_v10, %v8959_v20  ;;  %v3960_v47 = vadd.f32 %v5923_v57, %v5859_v37 }
 0x3ce   :  { %v3963_v61 = vadd.f32 %v5926_v40, %v5862_v56 }
 0x3d0   :  { %v6294_v4 = vpop.f32.mrb[184].mxu1  ;;  %v5959_v38 = vpop.f32.mrb[176].mxu0 }
 0x3d1   :  { %v9017_v29 = vadd.f32 %v6294_v4, %v3944_v13  ;;  %v4032_v25 = vpop.f32.mrb[185].mxu1  ;;  %v5960_v22 = vpop.f32.mrb[177].mxu0 }
 0x3d2   :  { %v9019_v2 = vadd.f32 %v4032_v25, %v3936_v23  ;;  %v5961_v50 = vadd.f32 %v5960_v22, %v5959_v38  ;;  %v6295_v17 = vpop.f32.mrb[186].mxu1  ;;  %v5962_v48 = vpop.f32.mrb[178].mxu0 }
 0x3d3   :  { %v9021_v58 = vadd.f32 %v6295_v17, %v3947_v54  ;;  %v4035_v33 = vpop.f32.mrb[187].mxu1  ;;  %v5963_v21 = vpop.f32.mrb[179].mxu0 }
 0x3d4   :  { %v9024_v20 = vadd.f32 %v4035_v33, %v8990_v39  ;;  %v5964_v6 = vadd.f32 %v5963_v21, %v5962_v48 }
 0x3d8   :  { %v6298_v15 = vpop.f32.mrb[188].mxu1  ;;  %v5965_v46 = vpop.f32.mrb[180].mxu0 }
 0x3d9   :  { %v9026_v19 = vadd.f32 %v6298_v15, %v3960_v47  ;;  %v4048_v18 = vpop.f32.mrb[189].mxu1  ;;  %v5966_v26 = vpop.f32.mrb[181].mxu0 }
 0x3da   :  { %v9028_v37 = vadd.f32 %v4048_v18, %v3952_v51  ;;  %v5967_v23 = vadd.f32 %v5966_v26, %v5965_v46  ;;  %v6299_v55 = vpop.f32.mrb[190].mxu1  ;;  %v5968_v42 = vpop.f32.mrb[182].mxu0 }
 0x3db   :  { %v9030_v1 = vadd.f32 %v6299_v55, %v3963_v61  ;;  %v4051_v62 = vpop.f32.mrb[191].mxu1  ;;  %v5969_v3 = vpop.f32.mrb[183].mxu0 }
 0x3dc   :  { %v9032_v56 = vadd.f32 %v4051_v62, %v3955_v9  ;;  %v5970_v39 = vadd.f32 %v5969_v3, %v5968_v42 }
 0x3e0   :  { %v5971_v49 = vpop.f32.mrb[184].mxu0 }
 0x3e1   :  { %v6023_v13 = vpop.f32.mrb[192].mxu1  ;;  %v5972_v54 = vpop.f32.mrb[185].mxu0 }
 0x3e2   :  { %v5973_v59 = vadd.f32 %v5972_v54, %v5971_v49  ;;  %v6024_v52 = vpop.f32.mrb[193].mxu1  ;;  %v5974_v16 = vpop.f32.mrb[186].mxu0 }
 0x3e3   :  { %v6025_v8 = vadd.f32 %v6024_v52, %v6023_v13  ;;  %v6026_v27 = vpop.f32.mrb[194].mxu1  ;;  %v5975_v43 = vpop.f32.mrb[187].mxu0 }
 0x3e4   :  { %v5976_v7 = vadd.f32 %v5975_v43, %v5974_v16  ;;  %v6027_v32 = vpop.f32.mrb[195].mxu1 }
 0x3e5   :  { %v6028_v41 = vadd.f32 %v6027_v32, %v6026_v27  ;;  %v9034_v31 = vadd.f32 %v6025_v8, %v5961_v50 }
 0x3e7   :  { %v9036_v51 = vadd.f32 %v6028_v41, %v5964_v6 }
 0x3e8   :  { %v5977_v24 = vpop.f32.mrb[188].mxu0 }
 0x3e9   :  { %v6029_v9 = vpop.f32.mrb[196].mxu1  ;;  %v5978_v11 = vpop.f32.mrb[189].mxu0 }
 0x3ea   :  { %v5979_v36 = vadd.f32 %v5978_v11, %v5977_v24  ;;  %v6030_v53 = vpop.f32.mrb[197].mxu1  ;;  %v5980_v57 = vpop.f32.mrb[190].mxu0 }
 0x3eb   :  { %v6031_v12 = vadd.f32 %v6030_v53, %v6029_v9  ;;  %v6032_v28 = vpop.f32.mrb[198].mxu1  ;;  %v5981_v44 = vpop.f32.mrb[191].mxu0 }
 0x3ec   :  { %v5982_v10 = vadd.f32 %v5981_v44, %v5980_v57  ;;  %v6033_v40 = vpop.f32.mrb[199].mxu1 }
 0x3ed   :  { %v6034_v47 = vadd.f32 %v6033_v40, %v6032_v28  ;;  %v4523_v61 = vadd.f32 %v6031_v12, %v5967_v23 }
 0x3ef   :  { %v9038_v4 = vadd.f32 %v6034_v47, %v5970_v39 }
 0x3f0   :  { %v5983_v38 = vpop.f32.mrb[192].mxu0 }
 0x3f1   :  { %v6035_v25 = vpop.f32.mrb[200].mxu1  ;;  %v5984_v22 = vpop.f32.mrb[193].mxu0 }
 0x3f2   :  { %v5985_v50 = vadd.f32 %v5984_v22, %v5983_v38  ;;  %v6036_v17 = vpop.f32.mrb[201].mxu1  ;;  %v5986_v48 = vpop.f32.mrb[194].mxu0 }
 0x3f3   :  { %v6037_v33 = vadd.f32 %v6036_v17, %v6035_v25  ;;  %v6038_v21 = vpop.f32.mrb[202].mxu1  ;;  %v5987_v6 = vpop.f32.mrb[195].mxu0 }
 0x3f4   :  { %v5988_v15 = vadd.f32 %v5987_v6, %v5986_v48  ;;  %v6039_v46 = vpop.f32.mrb[203].mxu1 }
 0x3f5   :  { %v6040_v18 = vadd.f32 %v6039_v46, %v6038_v21  ;;  %v9040_v26 = vadd.f32 %v6037_v33, %v5973_v59 }
 0x3f7   :  { %v9042_v55 = vadd.f32 %v6040_v18, %v5976_v7 }
 0x3f8   :  { %v5989_v42 = vpop.f32.mrb[196].mxu0 }
 0x3f9   :  { %v6041_v23 = vpop.f32.mrb[204].mxu1  ;;  %v5990_v62 = vpop.f32.mrb[197].mxu0 }
 0x3fa   :  { %v5991_v3 = vadd.f32 %v5990_v62, %v5989_v42  ;;  %v6042_v39 = vpop.f32.mrb[205].mxu1  ;;  %v5992_v49 = vpop.f32.mrb[198].mxu0 }
 0x3fb   :  { %v6043_v13 = vadd.f32 %v6042_v39, %v6041_v23  ;;  %v6044_v54 = vpop.f32.mrb[206].mxu1  ;;  %v5993_v52 = vpop.f32.mrb[199].mxu0 }
 0x3fc   :  { %v5994_v16 = vadd.f32 %v5993_v52, %v5992_v49  ;;  %v6045_v8 = vpop.f32.mrb[207].mxu1 }
 0x3fd   :  { %v6046_v27 = vadd.f32 %v6045_v8, %v6044_v54  ;;  %v4539_v43 = vadd.f32 %v6043_v13, %v5979_v36 }
 0x3ff   :  { %v9044_v32 = vadd.f32 %v6046_v27, %v5982_v10 }
 0x400   :  { %v5995_v41 = vpop.f32.mrb[200].mxu0 }
 0x401   :  { %v6047_v59 = vpop.f32.mrb[208].mxu1  ;;  %v5996_v24 = vpop.f32.mrb[201].mxu0 }
 0x402   :  { %v5997_v7 = vadd.f32 %v5996_v24, %v5995_v41  ;;  %v6048_v9 = vpop.f32.mrb[209].mxu1  ;;  %v5998_v11 = vpop.f32.mrb[202].mxu0 }
 0x403   :  { %v6049_v53 = vadd.f32 %v6048_v9, %v6047_v59  ;;  %v6050_v57 = vpop.f32.mrb[210].mxu1  ;;  %v5999_v12 = vpop.f32.mrb[203].mxu0 }
 0x404   :  { %v6000_v28 = vadd.f32 %v5999_v12, %v5998_v11  ;;  %v6051_v44 = vpop.f32.mrb[211].mxu1 }
 0x405   :  { %v6052_v40 = vadd.f32 %v6051_v44, %v6050_v57  ;;  %v9046_v47 = vadd.f32 %v6049_v53, %v5985_v50 }
 0x407   :  { %v9048_v38 = vadd.f32 %v6052_v40, %v5988_v15 }
 0x408   :  { %v6001_v25 = vpop.f32.mrb[204].mxu0 }
 0x409   :  { %v6053_v36 = vpop.f32.mrb[212].mxu1  ;;  %v6002_v10 = vpop.f32.mrb[205].mxu0 }
 0x40a   :  { %v6003_v22 = vadd.f32 %v6002_v10, %v6001_v25  ;;  %v6054_v17 = vpop.f32.mrb[213].mxu1  ;;  %v6004_v48 = vpop.f32.mrb[206].mxu0 }
 0x40b   :  { %v6055_v33 = vadd.f32 %v6054_v17, %v6053_v36  ;;  %v6056_v21 = vpop.f32.mrb[214].mxu1  ;;  %v6005_v6 = vpop.f32.mrb[207].mxu0 }
 0x40c   :  { %v6006_v46 = vadd.f32 %v6005_v6, %v6004_v48  ;;  %v6057_v18 = vpop.f32.mrb[215].mxu1 }
 0x40d   :  { %v6058_v42 = vadd.f32 %v6057_v18, %v6056_v21  ;;  %v4555_v23 = vadd.f32 %v6055_v33, %v5991_v3 }
 0x40f   :  { %v4558_v62 = vadd.f32 %v6058_v42, %v5994_v16 }
 0x410   :  { %v6318_v39 = vpop.f32.mrb[208].mxu0 }
 0x411   :  { %v6059_v49 = vpop.f32.mrb[216].mxu1  ;;  %v4620_v50 = vadd.f32 %v6318_v39, %v4523_v61  ;;  %v4611_v13 = vpop.f32.mrb[209].mxu0  ;;  %v9058_v61 = vld [vmem:[%s9142_s6] ss:$0 sm:$0xff] }
 0x412   :  { %v6060_v15 = vpop.f32.mrb[217].mxu1  ;;  %v4612_v54 = vadd.f32 %v4611_v13, %v9034_v31  ;;  %v6319_v52 = vpop.f32.mrb[210].mxu0 }
 0x413   :  { %v4676_v8 = vmax.f32 %v8994_v5, %v4620_v50  ;;  %v6061_v27 = vadd.f32 %v6060_v15, %v6059_v49  ;;  %v6062_v41 = vpop.f32.mrb[218].mxu1  ;;  %v4623_v59 = vadd.f32 %v6319_v52, %v9038_v4  ;;  %v4614_v24 = vpop.f32.mrb[211].mxu0 }
 0x414   :  { %v4674_v9 = vmax.f32 %v8997_v60, %v4612_v54  ;;  %v6063_v11 = vpop.f32.mrb[219].mxu1  ;;  %v4615_v3 = vadd.f32 %v4614_v24, %v9036_v51 }
 0x415   :  { %v4677_v31 = vmax.f32 %v9000_v35, %v4623_v59  ;;  %v6064_v16 = vadd.f32 %v6063_v11, %v6062_v41  ;;  %v4563_v53 = vadd.f32 %v6061_v27, %v5997_v7 }
 0x416   :  { %v4690_v5 = vmax.f32 %v4674_v9, %v4676_v8  ;;  %v4675_v57 = vmax.f32 %v9003_v30, %v4615_v3 }
 0x417   :  { %v9062_v12 = vadd.f32 %v6064_v16, %v6000_v28 }
 0x418   :  { %v4705_v4 = vadd.f32 %v9058_v61, %v4690_v5  ;;  %v4691_v60 = vmax.f32 %v4675_v57, %v4677_v31  ;;  %v6322_v44 = vpop.f32.mrb[212].mxu0 }
 0x419   :  { %v6065_v40 = vpop.f32.mrb[220].mxu1  ;;  %v4636_v51 = vadd.f32 %v6322_v44, %v4539_v43  ;;  %v4627_v25 = vpop.f32.mrb[213].mxu0 }
 0x41a   :  { %v4706_v36 = vadd.f32 %v9058_v61, %v4691_v60  ;;  %v6066_v10 = vpop.f32.mrb[221].mxu1  ;;  %v4628_v17 = vadd.f32 %v4627_v25, %v9040_v26  ;;  %v6323_v35 = vpop.f32.mrb[214].mxu0  ;;  %v4713_v21 = vmax.f32 %v4705_v4, 0.0 }
 0x41b   :  { %v4680_v7 = vmax.f32 %v9006_v45, %v4636_v51  ;;  %v6067_v48 = vadd.f32 %v6066_v10, %v6065_v40  ;;  %v6068_v33 = vpop.f32.mrb[222].mxu1  ;;  %v4639_v30 = vadd.f32 %v6323_v35, %v9044_v32  ;;  %v4630_v28 = vpop.f32.mrb[215].mxu0 }
 0x41c   :  { %v4714_v6 = vmax.f32 %v4706_v36, 0.0  ;;  %v4678_v18 = vmax.f32 %v9009_v0, %v4628_v17  ;;  %v6069_v42 = vpop.f32.mrb[223].mxu1  ;;  %v4631_v43 = vadd.f32 %v4630_v28, %v9042_v55  ;;  %v6865_v28 = vld [vmem:[%s9141_s9 + $0x30] sm:$0xff]  }
 0x41d   :  { %v4681_v39 = vmax.f32 %v9012_v14, %v4639_v30  ;;  %v6070_v49 = vadd.f32 %v6069_v42, %v6068_v33  ;;  %v4571_v50 = vadd.f32 %v6067_v48, %v6003_v22 }
 0x41e   :  { %v4721_v26 = vpack.c.bf16 %v4714_v6, %v4713_v21  ;;  %v4692_v13 = vmax.f32 %v4678_v18, %v4680_v7  ;;  %v4679_v45 = vmax.f32 %v9015_v34, %v4631_v43  ;;  %v6866_v21 = vld [vmem:[%s9141_s9 + $0x38] sm:$0xff]  }
 0x41f   :  { %v4574_v15 = vadd.f32 %v6070_v49, %v6006_v46 }
 0x420   :  { %v4693_v54 = vmax.f32 %v4679_v45, %v4681_v39  ;;  %v6326_v52 = vpop.f32.mrb[216].mxu0  ;;  %v4707_v32 = vadd.f32 %v9058_v61, %v4692_v13 }
 0x421   :  { %v4652_v8 = vadd.f32 %v6326_v52, %v4555_v23  ;;  %v4643_v27 = vpop.f32.mrb[217].mxu0 }
 0x422   :  { %v4644_v0 = vadd.f32 %v4643_v27, %v9046_v47  ;;  %v6327_v41 = vpop.f32.mrb[218].mxu0  ;;  %v4708_v55 = vadd.f32 %v9058_v61, %v4693_v54  ;;  %v4715_v46 = vmax.f32 %v4707_v32, 0.0  ;;  %v6859_v47 = vld [vmem:[%s9141_s9] sm:$0xff]  }
 0x423   :  { %v4684_v14 = vmax.f32 %v9017_v29, %v4652_v8  ;;  %v4655_v59 = vadd.f32 %v6327_v41, %v4558_v62  ;;  %v4646_v22 = vpop.f32.mrb[219].mxu0 }
 0x424   :  { %v4682_v24 = vmax.f32 %v9019_v2, %v4644_v0  ;;  %v4647_v34 = vadd.f32 %v4646_v22, %v9048_v38  ;;  %v4716_v9 = vmax.f32 %v4708_v55, 0.0 }
 0x425   :  { %v4685_v11 = vmax.f32 %v9021_v58, %v4655_v59 }
 0x426   :  { %v4694_v3 = vmax.f32 %v4682_v24, %v4684_v14  ;;  %v4683_v23 = vmax.f32 %v9024_v20, %v4647_v34  ;;  %v4722_v31 = vpack.c.bf16 %v4716_v9, %v4715_v46  ;;  %v5726_v14 = vld [vmem:[%s9144_s10] ss:$0 sm:$0xff] }
 0x428   :  { %v4709_v29 = vadd.f32 %v9058_v61, %v4694_v3  ;;  %v4695_v62 = vmax.f32 %v4683_v23, %v4685_v11  ;;  %v6330_v16 = vpop.f32.mrb[220].mxu0  ;;  %5028 = vmatprep.mubr.bf16.mxu1 %v4722_v31 }
 0x429   :  { %v4668_v2 = vadd.f32 %v6330_v16, %v4571_v50  ;;  %v4659_v5 = vpop.f32.mrb[221].mxu0  ;;  %5029 = vmatmul.mubr.bf16.vlgmr.msra.gmra.mrb[224].mxu1 %v4721_v26  ;;  %v5693_v50 = vld [vmem:[%s9143_s8] ss:$0 sm:$0xff] }
 0x42a   :  { %v4710_v38 = vadd.f32 %v9058_v61, %v4695_v62  ;;  %v4660_v57 = vadd.f32 %v4659_v5, %v4563_v53  ;;  %v6331_v58 = vpop.f32.mrb[222].mxu0  ;;  %6333 = vmatpush3.bf16.msra.mxu1 %v6859_v47  ;;  %v4717_v44 = vmax.f32 %v4709_v29, 0.0  ;;  %6348 = vmatprep.mubr.msk.bf16.mxu1 %vm6901_vm0, %v6900_v63 }
 0x42b   :  { %v4688_v20 = vmax.f32 %v9026_v19, %v4668_v2  ;;  %v4671_v4 = vadd.f32 %v6331_v58, %v4574_v15  ;;  %v4662_v60 = vpop.f32.mrb[223].mxu0  ;;  %6334 = vmatprep.subr.bf16.mxu1 %v6900_v63 }
 0x42c   :  { %v4718_v40 = vmax.f32 %v4710_v38, 0.0  ;;  %v4686_v51 = vmax.f32 %v9028_v37, %v4660_v57  ;;  %v4663_v25 = vadd.f32 %v4662_v60, %v9062_v12  ;;  %v6860_v37 = vld [vmem:[%s9141_s9 + $0x8] sm:$0xff]  }
 0x42d   :  { %v4689_v36 = vmax.f32 %v9030_v1, %v4671_v4  ;;  %v6861_v1 = vld [vmem:[%s9141_s9 + $0x10] sm:$0xff]   ;;  %v6864_v12 = vld [vmem:[%s9141_s9 + $0x28] sm:$0xff]  }
 0x42e   :  { %v4723_v10 = vpack.c.bf16 %v4718_v40, %v4717_v44  ;;  %v4696_v17 = vmax.f32 %v4686_v51, %v4688_v20  ;;  %v4687_v53 = vmax.f32 %v9032_v56, %v4663_v25  ;;  %6335 = vmatpush3.bf16.msra.mxu1 %v6860_v37  ;;  %v6862_v56 = vld [vmem:[%s9141_s9 + $0x18] sm:$0xff]  }
 0x42f   :  { %6336 = vmatprep.subr.bf16.mxu1 %v6900_v63 }
 0x430   :  { %v4697_v35 = vmax.f32 %v4687_v53, %v4689_v36  ;;  %v4711_v7 = vadd.f32 %v9058_v61, %v4696_v17 }
 0x432   :  { %v4712_v19 = vadd.f32 %v9058_v61, %v4697_v35  ;;  %v4719_v48 = vmax.f32 %v4711_v7, 0.0  ;;  %6337 = vmatpush3.bf16.msra.mxu1 %v6861_v1  ;;  %v6863_v61 = vld [vmem:[%s9141_s9 + $0x20] sm:$0xff]  }
 0x433   :  { %6338 = vmatprep.subr.bf16.mxu1 %v6900_v63 }
 0x434   :  { %v4720_v33 = vmax.f32 %v4712_v19, 0.0 }
 0x436   :  { %v4724_v30 = vpack.c.bf16 %v4720_v33, %v4719_v48  ;;  %6339 = vmatpush3.bf16.msra.mxu1 %v6862_v56 }
 0x437   :  { %6340 = vmatprep.subr.bf16.mxu1 %v6900_v63 }
 0x438   :  { %5069 = vmatprep.mubr.bf16.mxu0 %v4724_v30 }
 0x439   :  { %5070 = vmatmul.mubr.bf16.vlgmr.msra.gmra.mrb[224].mxu0 %v4723_v10 }
 0x43a   :  { %6341 = vmatpush3.bf16.msra.mxu1 %v6863_v61 }
 0x43b   :  { %6342 = vmatprep.subr.bf16.mxu1 %v6900_v63 }
 0x43e   :  { %6343 = vmatpush3.bf16.msra.mxu1 %v6864_v12 }
 0x43f   :  { %6344 = vmatprep.subr.bf16.mxu1 %v6900_v63 }
 0x442   :  { %6345 = vmatpush3.bf16.msra.mxu1 %v6865_v28 }
 0x443   :  { %6346 = vmatprep.subr.bf16.mxu1 %v6900_v63 }
 0x446   :  { %6347 = vmatpush3.bf16.msra.mxu1 %v6866_v21 }
 0x4fc   :  { %v6103_v6 = vpop.f32.mrb[224].mxu1 }
 0x4fd   :  { %v6104_v18 = vpop.f32.mrb[225].mxu1 }
 0x4fe   :  { %v6105_v42 = vadd.f32 %v6104_v18, %v6103_v6  ;;  %v6106_v43 = vpop.f32.mrb[226].mxu1 }
 0x4ff   :  { %v6107_v39 = vpop.f32.mrb[227].mxu1 }
 0x500   :  { %v6108_v49 = vadd.f32 %v6107_v39, %v6106_v43  ;;  %v5031_v45 = vadd.f32 %v6105_v42, %v5693_v50 }
 0x502   :  { %v5034_v32 = vadd.f32 %v6108_v49, %v5693_v50 }
 0x50c   :  { %v6125_v26 = vpop.f32.mrb[224].mxu0 }
 0x50d   :  { %v6126_v13 = vpop.f32.mrb[225].mxu0 }
 0x50e   :  { %v6127_v15 = vadd.f32 %v6126_v13, %v6125_v26  ;;  %v6128_v54 = vpop.f32.mrb[226].mxu0 }
 0x50f   :  { %v6129_v52 = vpop.f32.mrb[227].mxu0 }
 0x510   :  { %v5072_v8 = vadd.f32 %v6127_v15, %v5031_v45  ;;  %v6130_v27 = vadd.f32 %v6129_v52, %v6128_v54 }
 0x512   :  { %v5075_v63 = vadd.f32 %v6130_v27, %v5034_v32  ;;  %v5078_v0 = vmax.f32 %v5072_v8, 0.0 }
 0x514   :  { %v5079_v41 = vmax.f32 %v5075_v63, 0.0 }
 0x516   :  { %v5080_v55 = vpack.c.bf16 %v5079_v41, %v5078_v0 }
 0x518   :  { %6349 = vmatmul.mubr.bf16.vlgmr.msra.gmra.mrb[228].mxu1 %v5080_v55 }
 0x5eb   :  { %v5186_v59 = vpop.f32.mrb[228].mxu1 }
 0x5ec   :  { %v5187_v22 = vadd.f32 %v5726_v14, %v5186_v59  ;;  %v6350_v24 = vpop.f32.mrb[229].mxu1 }
 0x5ed   :  { %v5189_v34 = vpop.f32.mrb[230].mxu1 }
 0x5ee   :  { %5193 = vmax.xlane.f32.xlu0 %v5187_v22  ;;  %v6351_v46 = vpop.f32.mrb[231].mxu1  ;;  %v5190_v9 = vadd.f32 %v5726_v14, %v5189_v34 }
 0x5f2   :  { %5195 = vmax.xlane.f32.xlu0 %v5190_v9 }
 0x67b   :  { %v5194_v11 = vpop.xlane.xlu0 %5193 }
 0x67c   :  { %v5197_v3 = vsub.f32 %v5187_v22, %v5194_v11 }
 0x67e   :  { %v5199_v23 = vmul.f32 1.442695, %v5197_v3 }
 0x67f   :  { %v5196_v31 = vpop.xlane.xlu0 %5195 }
 0x680   :  { %v5198_v47 = vsub.f32 %v5190_v9, %v5196_v31  ;;  %6867 = vpow2.f32 %v5199_v23 }
 0x682   :  { %v5201_v29 = vmul.f32 1.442695, %v5198_v47 }
 0x684   :  { %6869 = vpow2.f32 %v5201_v29 }
 0x68a   :  { %v6868_v62 = vpop.eup %6867 }
 0x68b   :  { %5203 = vadd.xlane.f32.xlu1 %v6868_v62 }
 0x68e   :  { %v6870_v16 = vpop.eup %6869 }
 0x68f   :  { %5205 = vadd.xlane.f32.xlu1 %v6870_v16 }
 0x718   :  { %v5204_v2 = vpop.xlane.xlu1 %5203 }
 0x719   :  { %6871 = vlog2.f32 %v5204_v2 }
 0x71c   :  { %v5206_v5 = vpop.xlane.xlu1 %5205 }
 0x71d   :  { %6873 = vlog2.f32 %v5206_v5 }
 0x723   :  { %v6872_v38 = vpop.eup %6871 }
 0x724   :  { %v5208_v57 = vmul.f32 0.6931472, %v6872_v38 }
 0x726   :  { %v5211_v58 = vsub.f32 %v5197_v3, %v5208_v57 }
 0x727   :  { %v6874_v20 = vpop.eup %6873 }
 0x728   :  { %5213 = vst [vmem:[%s9145_s11] sm:$0xff] %v5211_v58  ;;  %v5210_v4 = vmul.f32 0.6931472, %v6874_v20 }
 0x72a   :  { %v5212_v60 = vsub.f32 %v5198_v47, %v5210_v4 }
 0x72c   :  { %5214 = vst [vmem:[%s9145_s11 + $0x8] sm:$0xff] %v5212_v60 }

</bundles_post_ra>
